<compile_context>
chip_gen: v6e
topology: v6e:2x2x1
jax: 0.10.0
libtpu: 0.0.40
codegen_flags: <defaults>
</compile_context>

<pallas_src>
import functools

import jax
import jax.numpy as jnp
from jax.experimental import pallas as pl
from jax.experimental.pallas import tpu as pltpu


def _masked_conv_kernel(x_ref, w_ref, b_ref, out_ref, nm_ref):
    # x_ref : (Bt, H+2, W+2, Cin)  zero-padded NHWC input block, float32
    # w_ref : (9*Cin, Cpad)        conv weight, rows = (ky, kx, Cin), cols = Cout
    #                              zero-padded to Cpad (lane-dense), mxu dtype
    # b_ref : (1, Cpad)            bias zero-padded to Cpad, float32
    # out_ref: (Bt, H*W, Cpad)     lane-dense output slab, float32
    # nm_ref : (Bt, H, W)          new mask (3x3 max pool of mask), float32
    Bt, Hp, Wp, Cin = x_ref.shape
    H = Hp - 2
    W = Wp - 2
    Cpad = out_ref.shape[2]
    M = Bt * H * W

    xp = x_ref[...]                                       # (Bt, Hp, Wp, Cin) f32
    # Mask from channel 0 of the *f32* padded input (padding ring is 0 -> mask 0,
    # matching PyTorch's zero padding of both masked features and the mask).
    mp = (xp[..., 0] != 0.0).astype(jnp.float32)          # (Bt, Hp, Wp), W on lanes
    masked = xp * mp[..., None]                           # (Bt, Hp, Wp, Cin)

    # ---- im2col: one matmul instead of 9 tiny K=Cin matmuls ----
    taps = []
    for dy in range(3):
        for dx in range(3):
            taps.append(masked[:, dy:dy + H, dx:dx + W, :].reshape(M, Cin))
    patches = jnp.concatenate(taps, axis=-1)              # (M, 9*Cin)
    conv = jnp.dot(patches.astype(w_ref.dtype), w_ref[...],
                   preferred_element_type=jnp.float32)    # (M, Cpad)  MXU

    # ---- separable 3x3 window sum (norm) & max (new mask) on (Bt, H, W) ----
    v_sum = mp[:, 0:H, :] + mp[:, 1:H + 1, :] + mp[:, 2:H + 2, :]        # (Bt, H, Wp)
    norm = v_sum[:, :, 0:W] + v_sum[:, :, 1:W + 1] + v_sum[:, :, 2:W + 2]
    v_max = jnp.maximum(jnp.maximum(mp[:, 0:H, :], mp[:, 1:H + 1, :]),
                        mp[:, 2:H + 2, :])
    nmax = jnp.maximum(jnp.maximum(v_max[:, :, 0:W], v_max[:, :, 1:W + 1]),
                       v_max[:, :, 2:W + 2])

    # ---- exact reciprocal: norm is an exact integer in {0..9} -> constant select ----
    inv = jnp.zeros_like(norm)
    for k in range(1, 10):
        inv = jnp.where(norm == float(k), 1.0 / float(k), inv)

    inv_rows = inv.reshape(M, 1)                          # per-pixel scale
    out = conv * inv_rows + b_ref[...]                    # (M, Cpad)
    out_ref[...] = out.reshape(Bt, H * W, Cpad)           # lane-dense unmasked store
    nm_ref[...] = nmax


@functools.partial(jax.jit, static_argnames=("batch_block", "mxu_dtype"))
def masked_conv2d(x_nchw, w_oihw, bias, *, batch_block=1, mxu_dtype=jnp.bfloat16):
    """x_nchw: (B, Cin, H, W), w_oihw: (Cout, Cin, 3, 3), bias: (Cout,)."""
    B, Cin, H, W = x_nchw.shape
    Cout = w_oihw.shape[0]
    assert B % batch_block == 0
    Bt = batch_block
    Cpad = ((Cout + 127) // 128) * 128                    # lane-dense output width

    # ---- glue: layout conversion + padding (plain JAX) ----
    x_nhwc = jnp.transpose(x_nchw, (0, 2, 3, 1)).astype(jnp.float32)
    x_pad = jnp.pad(x_nhwc, ((0, 0), (1, 1), (1, 1), (0, 0)))          # (B, H+2, W+2, Cin)
    Hp, Wp = H + 2, W + 2

    # weight: (Cout, Cin, 3, 3) -> rows (ky, kx, Cin), cols Cout, zero-pad cols to Cpad
    w_k = jnp.transpose(w_oihw, (2, 3, 1, 0)).reshape(9 * Cin, Cout)
    w_k = jnp.pad(w_k, ((0, 0), (0, Cpad - Cout))).astype(mxu_dtype)
    bias_p = jnp.pad(bias.astype(jnp.float32), (0, Cpad - Cout)).reshape(1, Cpad)

    out_slab, nm = pl.pallas_call(
        _masked_conv_kernel,
        out_shape=(jax.ShapeDtypeStruct((B, H * W, Cpad), jnp.float32),
                   jax.ShapeDtypeStruct((B, H, W), jnp.float32)),
        grid_spec=pltpu.PrefetchScalarGridSpec(
            num_scalar_prefetch=0,
            grid=(B // Bt,),
            in_specs=[
                pl.BlockSpec((Bt, Hp, Wp, Cin), lambda b: (b, 0, 0, 0)),
                pl.BlockSpec((9 * Cin, Cpad), lambda b: (0, 0)),
                pl.BlockSpec((1, Cpad), lambda b: (0, 0)),
            ],
            out_specs=[
                pl.BlockSpec((Bt, H * W, Cpad), lambda b: (b, 0, 0)),
                pl.BlockSpec((Bt, H, W), lambda b: (b, 0, 0)),
            ],
        ),
        compiler_params=pltpu.CompilerParams(
            dimension_semantics=("parallel",),
            vmem_limit_bytes=64 * 1024 * 1024),
    )(x_pad, w_k, bias_p)

    # back to PyTorch's NCHW convention
    out = out_slab[:, :, :Cout].reshape(B, H, W, Cout)
    out = jnp.transpose(out, (0, 3, 1, 2))
    new_mask = nm[:, None, :, :]                          # (B, 1, H, W), W already last
    return out, new_mask


def _reference(x_nchw, w_oihw, bias):
    """Pure-JAX reference mirroring the PyTorch forward."""
    Cout = w_oihw.shape[0]
    mask = (x_nchw[:, :1] != 0).astype(jnp.float32)
    mx = x_nchw * mask
    conv = jax.lax.conv_general_dilated(
        mx, w_oihw, (1, 1), [(1, 1), (1, 1)],
        dimension_numbers=("NCHW", "OIHW", "NCHW"))
    ones_w = jnp.ones((Cout, 1, 3, 3), jnp.float32)
    norm = jax.lax.conv_general_dilated(
        mask, ones_w, (1, 1), [(1, 1), (1, 1)],
        dimension_numbers=("NCHW", "OIHW", "NCHW"))
    inv = jnp.where(norm == 0, jnp.zeros_like(norm), 1.0 / norm)
    out = conv * inv + bias.reshape(1, -1, 1, 1)
    new_mask = jax.lax.reduce_window(
        mask, -jnp.inf, jax.lax.max,
        (1, 1, 3, 3), (1, 1, 1, 1), [(0, 0), (0, 0), (1, 1), (1, 1)])
    return out, new_mask


if __name__ == "__main__":
    B, Cin, Cout, H, W = 2, 4, 8, 16, 16

    key = jax.random.PRNGKey(0)
    kx, kz, kw, kb = jax.random.split(key, 4)

    x = jax.random.normal(kx, (B, Cin, H, W), dtype=jnp.float32)
    # Zero out channel 0 at ~30% of pixels so the mask path is exercised
    # (mask depends only on channel 0, matching the PyTorch module).
    drop = jax.random.uniform(kz, (B, 1, H, W)) < 0.3
    x = x.at[:, :1].set(jnp.where(drop, 0.0, x[:, :1]))

    w = 0.1 * jax.random.normal(kw, (Cout, Cin, 3, 3), dtype=jnp.float32)
    bias = 0.1 * jax.random.normal(kb, (Cout,), dtype=jnp.float32)

    ref_out, ref_mask = _reference(x, w, bias)

    # Default path: bf16 MXU operands (v6e/v7x fast path; mask/norm math stays f32).
    out, new_mask = masked_conv2d(x, w, bias)
    out = jax.block_until_ready(out)
    new_mask = jax.block_until_ready(new_mask)
    assert out.shape == (B, Cout, H, W) and new_mask.shape == (B, 1, H, W)
    assert jnp.allclose(out, ref_out, rtol=2e-2, atol=2e-2), "bf16 output mismatch"
    assert jnp.allclose(new_mask, ref_mask, rtol=0, atol=0), "mask mismatch"

    # f32 MXU path: tight numerical check against the f32 reference.
    out32, nm32 = masked_conv2d(x, w, bias, mxu_dtype=jnp.float32)
    out32 = jax.block_until_ready(out32)
    nm32 = jax.block_until_ready(nm32)
    assert jnp.allclose(out32, ref_out, rtol=1e-3, atol=1e-3), "f32 output mismatch"
    assert jnp.allclose(nm32, ref_mask, rtol=0, atol=0), "f32 mask mismatch"

    print("KERNEL_OK")
</pallas_src>

<mosaic_0001>
module attributes {stable_mosaic.version = 11 : i64} {
  func.func @_masked_conv_kernel(%arg0: i32, %arg1: memref<1x18x18x4xf32, #tpu.memory_space<vmem>>, %arg2: memref<36x128xbf16, #tpu.memory_space<vmem>>, %arg3: memref<1x128xf32, #tpu.memory_space<vmem>>, %arg4: memref<1x256x128xf32, #tpu.memory_space<vmem>>, %arg5: memref<1x16x16xf32, #tpu.memory_space<vmem>>) attributes {dimension_semantics = [#tpu.dimension_semantics<parallel>], iteration_bounds = array<i64: 2>, scalar_prefetch = 0 : i64, scratch_operands = 0 : i64, tpu.core_type = #tpu.core_type<tc>, window_params = [{transform_indices = @transform_0, window_bounds = array<i64: 1, 18, 18, 4>}, {pipeline_mode = #tpu.pipeline_mode<synchronous>, transform_indices = @transform_1, window_bounds = array<i64: 36, 128>}, {pipeline_mode = #tpu.pipeline_mode<synchronous>, transform_indices = @transform_2, window_bounds = array<i64: 1, 128>}, {transform_indices = @transform_3, window_bounds = array<i64: 1, 256, 128>}, {transform_indices = @transform_4, window_bounds = array<i64: 1, 16, 16>}]} {
    %c0 = arith.constant 0 : index
    %c0_0 = arith.constant 0 : index
    %c0_1 = arith.constant 0 : index
    %c0_2 = arith.constant 0 : index
    %0 = vector.load %arg1[%c0, %c0_0, %c0_1, %c0_2] : memref<1x18x18x4xf32, #tpu.memory_space<vmem>>, vector<1x18x18x4xf32>
    %1 = vector.extract_strided_slice %0 {offsets = [0, 0, 0, 0], sizes = [1, 18, 18, 1], strides = [1, 1, 1, 1]} : vector<1x18x18x4xf32> to vector<1x18x18x1xf32>
    %2 = vector.shape_cast %1 : vector<1x18x18x1xf32> to vector<1x18x18xf32>
    %cst = arith.constant 0.000000e+00 : f32
    %3 = vector.broadcast %cst : f32 to vector<1x18x18xf32>
    %4 = arith.cmpf one, %2, %3 : vector<1x18x18xf32>
    %5 = arith.extui %4 : vector<1x18x18xi1> to vector<1x18x18xi32>
    %6 = arith.sitofp %5 : vector<1x18x18xi32> to vector<1x18x18xf32>
    %7 = vector.shape_cast %6 : vector<1x18x18xf32> to vector<1x18x18x1xf32>
    %8 = vector.broadcast %7 : vector<1x18x18x1xf32> to vector<1x18x18x4xf32>
    %9 = arith.mulf %0, %8 : vector<1x18x18x4xf32>
    %10 = vector.extract_strided_slice %9 {offsets = [0, 0, 0, 0], sizes = [1, 16, 16, 4], strides = [1, 1, 1, 1]} : vector<1x18x18x4xf32> to vector<1x16x16x4xf32>
    %11 = vector.shape_cast %10 : vector<1x16x16x4xf32> to vector<256x4xf32>
    %12 = vector.extract_strided_slice %9 {offsets = [0, 0, 1, 0], sizes = [1, 16, 16, 4], strides = [1, 1, 1, 1]} : vector<1x18x18x4xf32> to vector<1x16x16x4xf32>
    %13 = vector.shape_cast %12 : vector<1x16x16x4xf32> to vector<256x4xf32>
    %14 = vector.extract_strided_slice %9 {offsets = [0, 0, 2, 0], sizes = [1, 16, 16, 4], strides = [1, 1, 1, 1]} : vector<1x18x18x4xf32> to vector<1x16x16x4xf32>
    %15 = vector.shape_cast %14 : vector<1x16x16x4xf32> to vector<256x4xf32>
    %16 = vector.extract_strided_slice %9 {offsets = [0, 1, 0, 0], sizes = [1, 16, 16, 4], strides = [1, 1, 1, 1]} : vector<1x18x18x4xf32> to vector<1x16x16x4xf32>
    %17 = vector.shape_cast %16 : vector<1x16x16x4xf32> to vector<256x4xf32>
    %18 = vector.extract_strided_slice %9 {offsets = [0, 1, 1, 0], sizes = [1, 16, 16, 4], strides = [1, 1, 1, 1]} : vector<1x18x18x4xf32> to vector<1x16x16x4xf32>
    %19 = vector.shape_cast %18 : vector<1x16x16x4xf32> to vector<256x4xf32>
    %20 = vector.extract_strided_slice %9 {offsets = [0, 1, 2, 0], sizes = [1, 16, 16, 4], strides = [1, 1, 1, 1]} : vector<1x18x18x4xf32> to vector<1x16x16x4xf32>
    %21 = vector.shape_cast %20 : vector<1x16x16x4xf32> to vector<256x4xf32>
    %22 = vector.extract_strided_slice %9 {offsets = [0, 2, 0, 0], sizes = [1, 16, 16, 4], strides = [1, 1, 1, 1]} : vector<1x18x18x4xf32> to vector<1x16x16x4xf32>
    %23 = vector.shape_cast %22 : vector<1x16x16x4xf32> to vector<256x4xf32>
    %24 = vector.extract_strided_slice %9 {offsets = [0, 2, 1, 0], sizes = [1, 16, 16, 4], strides = [1, 1, 1, 1]} : vector<1x18x18x4xf32> to vector<1x16x16x4xf32>
    %25 = vector.shape_cast %24 : vector<1x16x16x4xf32> to vector<256x4xf32>
    %26 = vector.extract_strided_slice %9 {offsets = [0, 2, 2, 0], sizes = [1, 16, 16, 4], strides = [1, 1, 1, 1]} : vector<1x18x18x4xf32> to vector<1x16x16x4xf32>
    %27 = vector.shape_cast %26 : vector<1x16x16x4xf32> to vector<256x4xf32>
    %28 = tpu.concatenate %11, %13, %15, %17, %19, %21, %23, %25, %27 in 1 : vector<256x4xf32>, vector<256x4xf32>, vector<256x4xf32>, vector<256x4xf32>, vector<256x4xf32>, vector<256x4xf32>, vector<256x4xf32>, vector<256x4xf32>, vector<256x4xf32> -> vector<256x36xf32>
    %29 = arith.truncf %28 : vector<256x36xf32> to vector<256x36xbf16>
    %c0_3 = arith.constant 0 : index
    %c0_4 = arith.constant 0 : index
    %30 = vector.load %arg2[%c0_3, %c0_4] : memref<36x128xbf16, #tpu.memory_space<vmem>>, vector<36x128xbf16>
    %cst_5 = arith.constant dense<0.000000e+00> : vector<256x128xf32>
    %31 = tpu.matmul %29, %30, %cst_5 {dimension_numbers = #tpu.dot_dimension_numbers<[1], [0], [0], [1], [0, 0, 1, 1], [], []>} : vector<256x36xbf16>, vector<36x128xbf16>, vector<256x128xf32> -> vector<256x128xf32>
    %32 = vector.extract_strided_slice %6 {offsets = [0, 0, 0], sizes = [1, 16, 18], strides = [1, 1, 1]} : vector<1x18x18xf32> to vector<1x16x18xf32>
    %33 = vector.extract_strided_slice %6 {offsets = [0, 1, 0], sizes = [1, 16, 18], strides = [1, 1, 1]} : vector<1x18x18xf32> to vector<1x16x18xf32>
    %34 = arith.addf %32, %33 : vector<1x16x18xf32>
    %35 = vector.extract_strided_slice %6 {offsets = [0, 2, 0], sizes = [1, 16, 18], strides = [1, 1, 1]} : vector<1x18x18xf32> to vector<1x16x18xf32>
    %36 = arith.addf %34, %35 : vector<1x16x18xf32>
    %37 = vector.extract_strided_slice %36 {offsets = [0, 0, 0], sizes = [1, 16, 16], strides = [1, 1, 1]} : vector<1x16x18xf32> to vector<1x16x16xf32>
    %38 = vector.extract_strided_slice %36 {offsets = [0, 0, 1], sizes = [1, 16, 16], strides = [1, 1, 1]} : vector<1x16x18xf32> to vector<1x16x16xf32>
    %39 = arith.addf %37, %38 : vector<1x16x16xf32>
    %40 = vector.extract_strided_slice %36 {offsets = [0, 0, 2], sizes = [1, 16, 16], strides = [1, 1, 1]} : vector<1x16x18xf32> to vector<1x16x16xf32>
    %41 = arith.addf %39, %40 : vector<1x16x16xf32>
    %42 = vector.extract_strided_slice %6 {offsets = [0, 0, 0], sizes = [1, 16, 18], strides = [1, 1, 1]} : vector<1x18x18xf32> to vector<1x16x18xf32>
    %43 = vector.extract_strided_slice %6 {offsets = [0, 1, 0], sizes = [1, 16, 18], strides = [1, 1, 1]} : vector<1x18x18xf32> to vector<1x16x18xf32>
    %44 = arith.maximumf %42, %43 : vector<1x16x18xf32>
    %45 = vector.extract_strided_slice %6 {offsets = [0, 2, 0], sizes = [1, 16, 18], strides = [1, 1, 1]} : vector<1x18x18xf32> to vector<1x16x18xf32>
    %46 = arith.maximumf %44, %45 : vector<1x16x18xf32>
    %47 = vector.extract_strided_slice %46 {offsets = [0, 0, 0], sizes = [1, 16, 16], strides = [1, 1, 1]} : vector<1x16x18xf32> to vector<1x16x16xf32>
    %48 = vector.extract_strided_slice %46 {offsets = [0, 0, 1], sizes = [1, 16, 16], strides = [1, 1, 1]} : vector<1x16x18xf32> to vector<1x16x16xf32>
    %49 = arith.maximumf %47, %48 : vector<1x16x16xf32>
    %50 = vector.extract_strided_slice %46 {offsets = [0, 0, 2], sizes = [1, 16, 16], strides = [1, 1, 1]} : vector<1x16x18xf32> to vector<1x16x16xf32>
    %51 = arith.maximumf %49, %50 : vector<1x16x16xf32>
    %cst_6 = arith.constant 0.000000e+00 : f32
    %52 = vector.broadcast %cst_6 : f32 to vector<1x16x16xf32>
    %cst_7 = arith.constant 1.000000e+00 : f32
    %53 = vector.broadcast %cst_7 : f32 to vector<1x16x16xf32>
    %54 = arith.cmpf oeq, %41, %53 : vector<1x16x16xf32>
    %cst_8 = arith.constant 1.000000e+00 : f32
    %55 = vector.broadcast %cst_8 : f32 to vector<1x16x16xf32>
    %56 = arith.select %54, %55, %52 : vector<1x16x16xi1>, vector<1x16x16xf32>
    %cst_9 = arith.constant 2.000000e+00 : f32
    %57 = vector.broadcast %cst_9 : f32 to vector<1x16x16xf32>
    %58 = arith.cmpf oeq, %41, %57 : vector<1x16x16xf32>
    %cst_10 = arith.constant 5.000000e-01 : f32
    %59 = vector.broadcast %cst_10 : f32 to vector<1x16x16xf32>
    %60 = arith.select %58, %59, %56 : vector<1x16x16xi1>, vector<1x16x16xf32>
    %cst_11 = arith.constant 3.000000e+00 : f32
    %61 = vector.broadcast %cst_11 : f32 to vector<1x16x16xf32>
    %62 = arith.cmpf oeq, %41, %61 : vector<1x16x16xf32>
    %cst_12 = arith.constant 0.333333343 : f32
    %63 = vector.broadcast %cst_12 : f32 to vector<1x16x16xf32>
    %64 = arith.select %62, %63, %60 : vector<1x16x16xi1>, vector<1x16x16xf32>
    %cst_13 = arith.constant 4.000000e+00 : f32
    %65 = vector.broadcast %cst_13 : f32 to vector<1x16x16xf32>
    %66 = arith.cmpf oeq, %41, %65 : vector<1x16x16xf32>
    %cst_14 = arith.constant 2.500000e-01 : f32
    %67 = vector.broadcast %cst_14 : f32 to vector<1x16x16xf32>
    %68 = arith.select %66, %67, %64 : vector<1x16x16xi1>, vector<1x16x16xf32>
    %cst_15 = arith.constant 5.000000e+00 : f32
    %69 = vector.broadcast %cst_15 : f32 to vector<1x16x16xf32>
    %70 = arith.cmpf oeq, %41, %69 : vector<1x16x16xf32>
    %cst_16 = arith.constant 2.000000e-01 : f32
    %71 = vector.broadcast %cst_16 : f32 to vector<1x16x16xf32>
    %72 = arith.select %70, %71, %68 : vector<1x16x16xi1>, vector<1x16x16xf32>
    %cst_17 = arith.constant 6.000000e+00 : f32
    %73 = vector.broadcast %cst_17 : f32 to vector<1x16x16xf32>
    %74 = arith.cmpf oeq, %41, %73 : vector<1x16x16xf32>
    %cst_18 = arith.constant 0.166666672 : f32
    %75 = vector.broadcast %cst_18 : f32 to vector<1x16x16xf32>
    %76 = arith.select %74, %75, %72 : vector<1x16x16xi1>, vector<1x16x16xf32>
    %cst_19 = arith.constant 7.000000e+00 : f32
    %77 = vector.broadcast %cst_19 : f32 to vector<1x16x16xf32>
    %78 = arith.cmpf oeq, %41, %77 : vector<1x16x16xf32>
    %cst_20 = arith.constant 0.142857149 : f32
    %79 = vector.broadcast %cst_20 : f32 to vector<1x16x16xf32>
    %80 = arith.select %78, %79, %76 : vector<1x16x16xi1>, vector<1x16x16xf32>
    %cst_21 = arith.constant 8.000000e+00 : f32
    %81 = vector.broadcast %cst_21 : f32 to vector<1x16x16xf32>
    %82 = arith.cmpf oeq, %41, %81 : vector<1x16x16xf32>
    %cst_22 = arith.constant 1.250000e-01 : f32
    %83 = vector.broadcast %cst_22 : f32 to vector<1x16x16xf32>
    %84 = arith.select %82, %83, %80 : vector<1x16x16xi1>, vector<1x16x16xf32>
    %cst_23 = arith.constant 9.000000e+00 : f32
    %85 = vector.broadcast %cst_23 : f32 to vector<1x16x16xf32>
    %86 = arith.cmpf oeq, %41, %85 : vector<1x16x16xf32>
    %cst_24 = arith.constant 0.111111112 : f32
    %87 = vector.broadcast %cst_24 : f32 to vector<1x16x16xf32>
    %88 = arith.select %86, %87, %84 : vector<1x16x16xi1>, vector<1x16x16xf32>
    %89 = vector.shape_cast %88 : vector<1x16x16xf32> to vector<256x1xf32>
    %90 = vector.broadcast %89 : vector<256x1xf32> to vector<256x128xf32>
    %91 = arith.mulf %31, %90 : vector<256x128xf32>
    %c0_25 = arith.constant 0 : index
    %c0_26 = arith.constant 0 : index
    %92 = vector.load %arg3[%c0_25, %c0_26] : memref<1x128xf32, #tpu.memory_space<vmem>>, vector<1x128xf32>
    %93 = vector.broadcast %92 : vector<1x128xf32> to vector<256x128xf32>
    %94 = arith.addf %91, %93 : vector<256x128xf32>
    %95 = vector.shape_cast %94 : vector<256x128xf32> to vector<1x256x128xf32>
    %c0_27 = arith.constant 0 : index
    %c0_28 = arith.constant 0 : index
    %c0_29 = arith.constant 0 : index
    %96 = vector.load %arg4[%c0_27, %c0_28, %c0_29] : memref<1x256x128xf32, #tpu.memory_space<vmem>>, vector<1x256x128xf32>
    tpu.vector_store %arg4[%c0_27, %c0_28, %c0_29], %95 {strides = array<i32>} : memref<1x256x128xf32, #tpu.memory_space<vmem>>, vector<1x256x128xf32>,
    %c0_30 = arith.constant 0 : index
    %c0_31 = arith.constant 0 : index
    %c0_32 = arith.constant 0 : index
    %97 = vector.load %arg5[%c0_30, %c0_31, %c0_32] : memref<1x16x16xf32, #tpu.memory_space<vmem>>, vector<1x16x16xf32>
    tpu.vector_store %arg5[%c0_30, %c0_31, %c0_32], %51 {strides = array<i32>} : memref<1x16x16xf32, #tpu.memory_space<vmem>>, vector<1x16x16xf32>,
    return
  }
  func.func @transform_0(%arg0: i32) -> (i32, i32, i32, i32) {
    %c0_i32 = arith.constant 0 : i32
    %c0_i32_0 = arith.constant 0 : i32
    %c0_i32_1 = arith.constant 0 : i32
    %c0_i32_2 = arith.constant 0 : i32
    return %arg0, %c0_i32, %c0_i32_0, %c0_i32_1 : i32, i32, i32, i32
  }
  func.func @transform_1(%arg0: i32) -> (i32, i32) {
    %c0_i32 = arith.constant 0 : i32
    %c0_i32_0 = arith.constant 0 : i32
    %c0_i32_1 = arith.constant 0 : i32
    return %c0_i32, %c0_i32_0 : i32, i32
  }
  func.func @transform_2(%arg0: i32) -> (i32, i32) {
    %c0_i32 = arith.constant 0 : i32
    %c0_i32_0 = arith.constant 0 : i32
    %c0_i32_1 = arith.constant 0 : i32
    return %c0_i32, %c0_i32_0 : i32, i32
  }
  func.func @transform_3(%arg0: i32) -> (i32, i32, i32) {
    %c0_i32 = arith.constant 0 : i32
    %c0_i32_0 = arith.constant 0 : i32
    %c0_i32_1 = arith.constant 0 : i32
    return %arg0, %c0_i32, %c0_i32_0 : i32, i32, i32
  }
  func.func @transform_4(%arg0: i32) -> (i32, i32, i32) {
    %c0_i32 = arith.constant 0 : i32
    %c0_i32_0 = arith.constant 0 : i32
    %c0_i32_1 = arith.constant 0 : i32
    return %arg0, %c0_i32, %c0_i32_0 : i32, i32, i32
  }
}

</mosaic_0001>

<bundles_post_ra>
// kernel: masked_conv2d.1
= control target key start
LH: loop header
LB: loop body
LE: loop exit
PB: predicated region body
PF: predicated region fallthrough
CT: control target
= control target key end

     0   :  { %10 = vsyncpa [#allocation3], 0  ;;  %s9545_s0 = inlined_call_operand.vmem [shape: f32[2,18,18,4], index: 0, kind: input, shape index: {}]   ;;  %s9546_s1 = inlined_call_operand.vmem [shape: bf16[36,128], index: 1, kind: input, shape index: {}]   ;;  %s9547_s2 = inlined_call_operand.vmem [shape: f32[1,128], index: 2, kind: input, shape index: {}]   ;;  %s9548_s3 = inlined_call_operand.vmem [shape: f32[2,256,128], index: 3, kind: output, shape index: {0}]   ;;  %s9549_s4 = inlined_call_operand.hbm [shape: f32[2,16,16], index: 4, kind: output, shape index: {1}]  }
   0x1   :  { %12 = vsyncpa [#allocation3 + $0x1], 0  ;;  %s5548_s15 = smov 0   ;;  %s5550_s16 = smov 0  }
   0x2   :  { %s5552_s17 = smov 0   ;;  %s5554_s18 = smov 0  }
   0x3 LB: > { %s5569_s19 = sadd.s32 4294967295, %s5509_s18   ;;  %s4381_s20 = sadd.s32 4294967294, %s5509_s18   ;;  %s5509_s18 = sphi %s5554_s18, %s10494_s18   ;;  %s5505_s17 = sphi %s5552_s17, %s10493_s17   ;;  %s5501_s16 = sphi %s5550_s16, %s10492_s16   ;;  %s5497_s15 = sphi %s5548_s15, %s10491_s15  }
   0x4   : > { %s5573_s21 = sadd.s32 1, %s5509_s18   ;;  %s119_s22 = sadd.s32 1, %s5505_s17 }
   0x5   : > { %s116_s23 = ssub.s32 %s5509_s18, %s5573_s21  ;;  %p129_p0 = scmp.ne.s32.totalorder %s5505_s17, %s5501_s16 }
   0x6   : > { %p117_p1 = scmp.eq.s32.totalorder %s116_s23, 0  ;;  %p130_p2 = scmp.eq.s32.totalorder %s5569_s19, 1 }
   0x7   : > { %p135_p3 = scmp.ne.s32.totalorder %s5501_s16, %s5497_s15  ;;  %p136_p4 = scmp.eq.s32.totalorder %s4381_s20, 1 }
   0x8   : > { %s5584_s24 = scalar_select %p117_p1, %s5505_s17, %s119_s22  }
   0x9   : > { %p5586_p5 = por %p130_p2, %p129_p0  ;;  %p5590_p6 = por %p136_p4, %p135_p3 }
   0xa   : > { %p4384_p7 = scmp.ge.s32.totalorder %s5509_s18, 1  ;;  %p168_p8 = scmp.lt.s32.totalorder %s5509_s18, 3 }
   0xc   : > { %p169_p9 = pnand %p4384_p7, %p168_p8 }
   0xe   : > { %172 = sbr.rel (%p169_p9) target bundleno = 909 (0x38d), region = 32 }
  0x13   : > { %p199_p10 = scmp.lt.s32.totalorder %s5569_s19, 1  ;;  %v5511_v0 = vmov 0   ;;  %v9644_v8 = vmov 0.0   ;;  %vm798_vm10 = vcmask 1046528   ;;  %vm879_vm11 = vcmask 1045504   ;;  %s5513_s6 = smov 12  }
  0x14   : > { %4597 = vset.pattern.permute.xlu1 %v5511_v0  ;;  %4586 = vset.pattern.permute.xlu0 %v5511_v0  ;;  %s5514_s7 = smov 4   ;;  %s5515_s8 = smov 8  }
  0x15   : > { %s5598_s27 = scalar_select %p199_p10, %s5569_s19, 1 }
  0x16   : > { %s5516_s9 = smov 16   ;;  %s5517_s10 = smov 20  }
  0x17   : > { %s4535_s28 = smul.u32 432, %s5598_s27  ;;  %s5518_s11 = smov 24  }
  0x18   : > { %s5519_s12 = smov 28   ;;  %s5520_s13 = smov 32  }
  0x19   : > { %s5604_s5 = scalar_lea.vmem %s9545_s0, %s4535_s28  ;;  %s196_s30 = sand.u32 1, %s5501_s16  }
  0x1a   : > { %v5607_v1 = vld [vmem:[%s5604_s5 + $0x20] sm:$0xff]  ;;  %v5610_v2 = vld [vmem:[%s5604_s5 + $0x28] sm:$0x3]  ;;  %v5613_v3 = vld [vmem:[%s5604_s5 + $0x38] sm:$0xff]  ;;  %s5521_s14 = smov [#allocation2]  }
  0x1b   : > { %v5616_v4 = vld [vmem:[%s5604_s5 + $0x40] sm:$0x3]  ;;  %v5619_v5 = vld [vmem:[%s5604_s5 + $0x50] sm:$0xff]  ;;  %v5622_v6 = vld [vmem:[%s5604_s5 + $0x58] sm:$0x3]  ;;  %vm268_vm0 = vcmp.ne.f32.partialorder %v5607_v1, 0.0 }
  0x1c   : > { %vm269_vm1 = vcmp.ne.f32.partialorder %v5610_v2, 0.0  ;;  %vm271_vm2 = vcmp.ne.f32.partialorder %v5613_v3, 0.0  ;;  %vm272_vm3 = vcmp.ne.f32.partialorder %v5616_v4, 0.0  ;;  %vm274_vm4 = vcmp.ne.f32.partialorder %v5619_v5, 0.0  ;;  %v5630_v7 = vld [vmem:[%s5604_s5] sm:$0xff]  ;;  %v5640_v11 = vld [vmem:[%s5604_s5 + $0x8] sm:$0xff] }
  0x1d   : > { %vm275_vm5 = vcmp.ne.f32.partialorder %v5622_v6, 0.0  ;;  %v5634_v9 = vsel %vm268_vm0, 1.0, %v9644_v8  ;;  %v5637_v10 = vsel %vm269_vm1, 1.0, %v9644_v8  ;;  %v5643_v12 = vld [vmem:[%s5604_s5 + $0x18] sm:$0xff]  ;;  %v5646_v13 = vld [vmem:[%s5604_s5 + $0x30] sm:$0xff]  ;;  %v5649_v14 = vsel %vm271_vm2, 1.0, %v9644_v8 }
  0x1e   : > { %9871 = vst [vmem:[#allocation5_spill] sm:$0xff] %v5634_v9  ;;  %9872 = vst [vmem:[#allocation6_spill] sm:$0xff] %v5649_v14  ;;  %v5652_v15 = vsel %vm272_vm3, 1.0, %v9644_v8  ;;  %v4598_v16 = vpack.i.bf16 %v5637_v10, %v5634_v9  ;;  %v5657_v17 = vsel %vm274_vm4, 1.0, %v9644_v8  ;;  %v5660_v18 = vsel %vm275_vm5, 1.0, %v9644_v8  ;;  %v5719_v47 = vld [vmem:[%s5604_s5 + $0x48] sm:$0xff] }
  0x1f   : > { %9873 = vst [vmem:[#allocation7_spill] sm:$0xff] %v5652_v15  ;;  %9874 = vst [vmem:[#allocation8_spill] sm:$0xff] %v5657_v17  ;;  %v2273_v19 = vadd.f32 %v5652_v15, %v5637_v10  ;;  %v2272_v20 = vadd.f32 %v5649_v14, %v5634_v9  ;;  %vm264_vm6 = vcmp.ne.f32.partialorder %v5630_v7, 0.0  ;;  %vm265_vm7 = vcmp.ne.f32.partialorder %v5640_v11, 0.0  ;;  %v5678_v24 = vld [vmem:[%s5604_s5 + $0x10] sm:$0x3] }
  0x20   : > { %9875 = vst [vmem:[#allocation9_spill] sm:$0xff] %v5660_v18  ;;  %4599 = vperm.xlu1 %4597, %v4598_v16   ;;  %vm267_vm8 = vcmp.ne.f32.partialorder %v5643_v12, 0.0  ;;  %vm270_vm9 = vcmp.ne.f32.partialorder %v5646_v13, 0.0  ;;  %v5675_v23 = vsel %vm264_vm6, 1.0, %v9644_v8  ;;  %v5681_v25 = vsel %vm265_vm7, 1.0, %v9644_v8  ;;  %v5731_v54 = vld [vmem:[%s5604_s5 + $0x78] sm:$0xff] }
  0x21   : > { %v2321_v21 = vadd.f32 %v5660_v18, %v2273_v19  ;;  %v5672_v22 = vadd.f32 %v5657_v17, %v2272_v20  ;;  %v5684_v26 = vsel %vm267_vm8, 1.0, %v9644_v8  ;;  %v5687_v27 = vsel %vm270_vm9, 1.0, %v9644_v8  ;;  %v5722_v50 = vld [vmem:[%s5604_s5 + $0x70] sm:$0x3]  ;;  %v5750_v16 = vld [vmem:[%s5604_s5 + $0x60] sm:$0xff]  ;;  %v5872_v33 = vld [vmem:[%s5604_s5 + $0xf8] sm:$0xff] }
  0x22   : > { %9876 = vst [vmem:[#allocation10_spill] sm:$0xff] %v5684_v26  ;;  %9877 = vst [vmem:[#allocation11_spill] sm:$0xff] %v5687_v27  ;;  %v2269_v32 = vadd.f32 %v5634_v9, %v5681_v25  ;;  %v4587_v34 = vpack.i.bf16 %v5681_v25, %v5675_v23  ;;  %vm266_vm12 = vcmp.ne.f32.partialorder %v5678_v24, 0.0  ;;  %v2268_v37 = vadd.f32 %v5684_v26, %v5675_v23  ;;  %v5869_v53 = vld [vmem:[%s5604_s5 + $0xf0] sm:$0xff]  ;;  %s5453_s20 = sshll.u32 %s5521_s14, 4  ;;  %s5454_s20 = int_to_ptr.vmem [resolvable:$false] %s5453_s20 }
  0x23   : > { %v2420_v28 = vrot.slane %v2321_v21, 1  ;;  %v2564_v29 = vrot.slane %v2321_v21, 2  ;;  %v9551_v30 = vrot.slane %v5672_v22, 1  ;;  %v9550_v31 = vrot.slane %v5672_v22, 2  ;;  %s5455_s22 = scalar_lea.vmem %s5454_s20, 512 }
  0x24   : > { %v2317_v39 = vadd.f32 %v5649_v14, %v2269_v32  ;;  %4588 = vperm.xlu0 %4586, %v4587_v34   ;;  %v4603_v40 = vpack.i.bf16 %v5649_v14, %v5687_v27  ;;  %v2316_v41 = vadd.f32 %v5687_v27, %v2268_v37  ;;  %v5712_v42 = vsel %vm266_vm12, 1.0, %v9644_v8  ;;  %v5773_v37 = vld [vmem:[%s5604_s5 + $0x98] sm:$0xff] }
  0x25   : > { %v2421_v35 = vsel %vm798_vm10, %v9551_v30, %v2420_v28  ;;  %v2565_v36 = vsel %vm879_vm11, %v9550_v31, %v2564_v29  ;;  %v4613_v46 = vpack.i.bf16 %v5660_v18, %v5657_v17  ;;  %v4592_v51 = vpack.i.bf16 %v5684_v26, %v5712_v42  ;;  %v5758_v28 = vld [vmem:[%s5604_s5 + $0x68] sm:$0xff] }
  0x26   : > { %v2527_v38 = vadd.f32 %v2421_v35, %v5672_v22  ;;  %v2413_v44 = vrot.slane %v2317_v39, 1  ;;  %v2557_v45 = vrot.slane %v2317_v39, 2  ;;  %4604 = vperm.xlu1 %4597, %v4603_v40   ;;  %v2412_v48 = vrot.slane %v2316_v41, 1  ;;  %v5783_v40 = vld [vmem:[%s5604_s5 + $0x80] sm:$0xff]  ;;  %v5858_v31 = vld [vmem:[%s5604_s5 + $0xc8] sm:$0xff] }
  0x27   : > { %v2556_v49 = vrot.slane %v2316_v41, 2  ;;  %v2270_v52 = vadd.f32 %v5637_v10, %v5712_v42  ;;  %vm273_vm13 = vcmp.ne.f32.partialorder %v5719_v47, 0.0  ;;  %vm278_vm14 = vcmp.ne.f32.partialorder %v5722_v50, 0.0 }
  0x28   : > { %v5714_v43 = vadd.f32 %v2565_v36, %v2527_v38  ;;  %v2414_v55 = vsel %vm798_vm10, %v2412_v48, %v2413_v44  ;;  %4593 = vperm.xlu0 %4586, %v4592_v51   ;;  %v5738_v59 = vsel %vm273_vm13, 1.0, %v9644_v8  ;;  %vm279_vm15 = vcmp.ne.f32.partialorder %v5731_v54, 0.0  ;;  %v5770_v36 = vld [vmem:[%s5604_s5 + $0x90] sm:$0xff] }
  0x29   : > { %v2558_v56 = vsel %vm879_vm11, %v2556_v49, %v2557_v45  ;;  %v2524_v57 = vadd.f32 %v2414_v55, %v2316_v41  ;;  %v2318_v58 = vadd.f32 %v5652_v15, %v2270_v52  ;;  %9879 = vst [vmem:[#allocation13_spill] sm:$0xff] %v5738_v59  ;;  %v4608_v60 = vpack.i.bf16 %v5738_v59, %v5652_v15  ;;  %v5798_v48 = vld [vmem:[%s5604_s5 + $0xb0] sm:$0xff]  ;;  %v5801_v49 = vld [vmem:[%s5604_s5 + $0xb8] sm:$0x3] }
  0x2a   : > { %9878 = vst [vmem:[#allocation12_spill] sm:$0xff] %v5714_v43  ;;  %4614 = vperm.xlu1 %4597, %v4613_v46   ;;  %v5747_v0 = vsel %vm278_vm14, 1.0, %v9644_v8  ;;  %v5755_v21 = vsel %vm279_vm15, 1.0, %v9644_v8  ;;  %vm276_vm0 = vcmp.ne.f32.partialorder %v5750_v16, 0.0  ;;  %vm277_vm1 = vcmp.ne.f32.partialorder %v5758_v28, 0.0 }
  0x2b   : > { %v5744_v61 = vadd.f32 %v2558_v56, %v2524_v57  ;;  %v2415_v62 = vrot.slane %v2318_v58, 1  ;;  %v2559_v63 = vrot.slane %v2318_v58, 2  ;;  %9881 = vst [vmem:[#allocation15_spill] sm:$0xff] %v5747_v0  ;;  %9882 = vst [vmem:[#allocation16_spill] sm:$0xff] %v5755_v21  ;;  %v4623_v32 = vpack.i.bf16 %v5755_v21, %v5747_v0 }
  0x2c   : > { %4609 = vperm.xlu0 %4586, %v4608_v60   ;;  %v5767_v35 = vsel %vm276_vm0, 1.0, %v9644_v8  ;;  %v5776_v38 = vsel %vm277_vm1, 1.0, %v9644_v8  ;;  %vm282_vm2 = vcmp.ne.f32.partialorder %v5770_v36, 0.0  ;;  %vm283_vm3 = vcmp.ne.f32.partialorder %v5773_v37, 0.0  ;;  %v5823_v60 = vld [vmem:[%s5604_s5 + $0xa0] sm:$0x3] }
  0x2d   : > { %9880 = vst [vmem:[#allocation14_spill] sm:$0xff] %v5744_v61  ;;  %v2416_v19 = vsel %vm798_vm10, %v2413_v44, %v2415_v62  ;;  %v2560_v20 = vsel %vm879_vm11, %v2557_v45, %v2559_v63  ;;  %9884 = vst [vmem:[#allocation18_spill] sm:$0xff] %v5767_v35  ;;  %v5786_v41 = vsel %vm282_vm2, 1.0, %v9644_v8  ;;  %v5789_v44 = vsel %vm283_vm3, 1.0, %v9644_v8  ;;  %v5792_v45 = vld [vmem:[%s5604_s5 + $0x88] sm:$0x3] }
  0x2e   : > { %v2525_v29 = vadd.f32 %v2416_v19, %v2317_v39  ;;  %4624 = vperm.xlu1 %4597, %v4623_v32   ;;  %9885 = vst [vmem:[#allocation19_spill] sm:$0xff] %v5776_v38  ;;  %v4618_v39 = vpack.i.bf16 %v5776_v38, %v5767_v35  ;;  %9886 = vst [vmem:[#allocation20_spill] sm:$0xff] %v5786_v41  ;;  %v4633_v46 = vpack.i.bf16 %v5789_v44, %v5786_v41  ;;  %v5826_v62 = vld [vmem:[%s5604_s5 + $0xa8] sm:$0xff]  ;;  %v5829_v63 = vld [vmem:[%s5604_s5 + $0xd0] sm:$0x3] }
  0x2f   : > { %9887 = vst [vmem:[#allocation21_spill] sm:$0xff] %v5789_v44  ;;  %vm280_vm4 = vcmp.ne.f32.partialorder %v5783_v40, 0.0  ;;  %vm281_vm5 = vcmp.ne.f32.partialorder %v5792_v45, 0.0  ;;  %vm286_vm6 = vcmp.ne.f32.partialorder %v5798_v48, 0.0  ;;  %vm287_vm7 = vcmp.ne.f32.partialorder %v5801_v49, 0.0  ;;  %v5834_v19 = vld [vmem:[%s5604_s5 + $0xd8] sm:$0xff] }
  0x30   : > { %v5763_v34 = vadd.f32 %v2560_v20, %v2525_v29  ;;  %4619 = vperm.xlu0 %4586, %v4618_v39   ;;  %v5805_v51 = vsel %vm280_vm4, 1.0, %v9644_v8  ;;  %v5808_v52 = vsel %vm281_vm5, 1.0, %v9644_v8  ;;  %v5815_v56 = vsel %vm286_vm6, 1.0, %v9644_v8  ;;  %v5847_v39 = vld [vmem:[%s5604_s5 + $0xc0] sm:$0xff] }
  0x31   : > { %9888 = vst [vmem:[#allocation22_spill] sm:$0xff] %v5805_v51  ;;  %9889 = vst [vmem:[#allocation23_spill] sm:$0xff] %v5808_v52  ;;  %v4628_v55 = vpack.i.bf16 %v5808_v52, %v5805_v51  ;;  %v5818_v57 = vsel %vm287_vm7, 1.0, %v9644_v8  ;;  %vm284_vm8 = vcmp.ne.f32.partialorder %v5823_v60, 0.0  ;;  %vm285_vm9 = vcmp.ne.f32.partialorder %v5826_v62, 0.0  ;;  %v5877_v61 = vld [vmem:[%s5604_s5 + $0xe0] sm:$0xff] }
  0x32   : > { %9883 = vst [vmem:[#allocation17_spill] sm:$0xff] %v5763_v34  ;;  %4634 = vperm.xlu1 %4597, %v4633_v46   ;;  %9890 = vst [vmem:[#allocation24_spill] sm:$0xff] %v5815_v56  ;;  %v4643_v58 = vpack.i.bf16 %v5818_v57, %v5815_v56  ;;  %v5837_v20 = vsel %vm284_vm8, 1.0, %v9644_v8  ;;  %v5840_v29 = vsel %vm285_vm9, 1.0, %v9644_v8  ;;  %vm290_vm12 = vcmp.ne.f32.partialorder %v5829_v63, 0.0  ;;  %v5936_v52 = vld [vmem:[%s5604_s5 + $0x138] sm:$0xff] }
  0x33   : > { %9891 = vst [vmem:[#allocation25_spill] sm:$0xff] %v5818_v57  ;;  %9892 = vst [vmem:[#allocation26_spill] sm:$0xff] %v5837_v20  ;;  %v4638_v32 = vpack.i.bf16 %v5840_v29, %v5837_v20  ;;  %vm291_vm13 = vcmp.ne.f32.partialorder %v5834_v19, 0.0  ;;  %v5850_v46 = vsel %vm290_vm12, 1.0, %v9644_v8  ;;  %vm288_vm14 = vcmp.ne.f32.partialorder %v5847_v39, 0.0  ;;  %v5952_v51 = vld [vmem:[%s5604_s5 + $0x128] sm:$0xff] }
  0x34   : > { %4629 = vperm.xlu0 %4586, %v4628_v55   ;;  %9893 = vst [vmem:[#allocation27_spill] sm:$0xff] %v5840_v29  ;;  %9894 = vst [vmem:[#allocation28_spill] sm:$0xff] %v5850_v46  ;;  %v5853_v55 = vsel %vm291_vm13, 1.0, %v9644_v8  ;;  %vm289_vm15 = vcmp.ne.f32.partialorder %v5858_v31, 0.0  ;;  %v5863_v30 = vsel %vm288_vm14, 1.0, %v9644_v8  ;;  %vm294_vm0 = vcmp.ne.f32.partialorder %v5869_v53, 0.0 }
  0x35   : > { %9895 = vst [vmem:[#allocation29_spill] sm:$0xff] %v5853_v55  ;;  %9896 = vst [vmem:[#allocation30_spill] sm:$0xff] %v5863_v30  ;;  %vm295_vm1 = vcmp.ne.f32.partialorder %v5872_v33, 0.0  ;;  %vm292_vm2 = vcmp.ne.f32.partialorder %v5877_v61, 0.0  ;;  %v5904_v57 = vld [vmem:[%s5604_s5 + $0x118] sm:$0x3] }
  0x36   : > { %4644 = vperm.xlu1 %4597, %v4643_v58   ;;  %v4653_v58 = vpack.i.bf16 %v5853_v55, %v5850_v46  ;;  %9898 = vst [vmem:[#allocation32_spill] sm:$0xff] %v5877_v61  ;;  %v5885_v34 = vsel %vm295_vm1, 1.0, %v9644_v8  ;;  %v5888_v55 = vld [vmem:[%s5604_s5 + $0xe8] sm:$0x3]  ;;  %9905 = vst [vmem:[#allocation39_spill] sm:$0xff] %v5904_v57  ;;  %vm299_vm5 = vcmp.ne.f32.partialorder %v5904_v57, 0.0 }
  0x37   : > { %9900 = vst [vmem:[#allocation34_spill] sm:$0xff] %v5885_v34  ;;  %9901 = vst [vmem:[#allocation35_spill] sm:$0xff] %v5888_v55  ;;  %vm293_vm3 = vcmp.ne.f32.partialorder %v5888_v55, 0.0  ;;  %v5920_v20 = vsel %vm299_vm5, 1.0, %v9644_v8  ;;  %v5933_v56 = vld [vmem:[%s5604_s5 + $0x130] sm:$0x3] }
  0x38   : > { %4639 = vperm.xlu0 %4586, %v4638_v32   ;;  %v5866_v32 = vsel %vm289_vm15, 1.0, %v9644_v8  ;;  %9909 = vst [vmem:[#allocation43_spill] sm:$0xff] %v5920_v20  ;;  %9912 = vst [vmem:[#allocation46_spill] sm:$0xff] %v5933_v56  ;;  %vm302_vm8 = vcmp.ne.f32.partialorder %v5933_v56, 0.0  ;;  %vm303_vm9 = vcmp.ne.f32.partialorder %v5936_v52, 0.0  ;;  %vm301_vm13 = vcmp.ne.f32.partialorder %v5952_v51, 0.0 }
  0x39   : > { %9897 = vst [vmem:[#allocation31_spill] sm:$0xff] %v5866_v32  ;;  %v4648_v43 = vpack.i.bf16 %v5866_v32, %v5863_v30  ;;  %v5898_v32 = vld [vmem:[%s5604_s5 + $0x110] sm:$0xff]  ;;  %v5901_v30 = vsel %vm293_vm3, 1.0, %v9644_v8  ;;  %9913 = vst [vmem:[#allocation47_spill] sm:$0xff] %v5936_v52  ;;  %v5949_v41 = vsel %vm303_vm9, 1.0, %v9644_v8  ;;  %v5968_v52 = vsel %vm301_vm13, 1.0, %v9644_v8 }
  0x3a   : > { %4654 = vperm.xlu1 %4597, %v4653_v58   ;;  %v5882_v58 = vsel %vm294_vm0, 1.0, %v9644_v8  ;;  %9903 = vst [vmem:[#allocation37_spill] sm:$0xff] %v5898_v32  ;;  %9904 = vst [vmem:[#allocation38_spill] sm:$0xff] %v5901_v30  ;;  %vm298_vm4 = vcmp.ne.f32.partialorder %v5898_v32, 0.0 }
  0x3b   : > { %9899 = vst [vmem:[#allocation33_spill] sm:$0xff] %v5882_v58  ;;  %v4663_v46 = vpack.i.bf16 %v5885_v34, %v5882_v58  ;;  %v5910_v34 = vld [vmem:[%s5604_s5 + $0x100] sm:$0x3]  ;;  %v5914_v58 = vld [vmem:[%s5604_s5 + $0x108] sm:$0xff]  ;;  %9916 = vst [vmem:[#allocation50_spill] sm:$0xff] %v5949_v41 }
  0x3c   : > { %4649 = vperm.xlu0 %4586, %v4648_v43   ;;  %v5895_v43 = vsel %vm292_vm2, 1.0, %v9644_v8  ;;  %9906 = vst [vmem:[#allocation40_spill] sm:$0xff] %v5910_v34  ;;  %9907 = vst [vmem:[#allocation41_spill] sm:$0xff] %v5914_v58  ;;  %vm296_vm6 = vcmp.ne.f32.partialorder %v5910_v34, 0.0  ;;  %vm297_vm7 = vcmp.ne.f32.partialorder %v5914_v58, 0.0 }
  0x3d   : > { %9902 = vst [vmem:[#allocation36_spill] sm:$0xff] %v5895_v43  ;;  %v4658_v29 = vpack.i.bf16 %v5901_v30, %v5895_v43  ;;  %v5930_v43 = vsel %vm297_vm7, 1.0, %v9644_v8  ;;  %9917 = vst [vmem:[#allocation51_spill] sm:$0xff] %v5952_v51  ;;  %v6048_v51 = vld [vmem:[%s5604_s5 + $0x188] sm:$0xff] }
  0x3e   : > { %4664 = vperm.xlu1 %4597, %v4663_v46   ;;  %v5917_v46 = vsel %vm298_vm4, 1.0, %v9644_v8  ;;  %9911 = vst [vmem:[#allocation45_spill] sm:$0xff] %v5930_v43  ;;  %9921 = vst [vmem:[#allocation55_spill] sm:$0xff] %v5968_v52  ;;  %vm313_vm9 = vcmp.ne.f32.partialorder %v6048_v51, 0.0 }
  0x3f   : > { %9908 = vst [vmem:[#allocation42_spill] sm:$0xff] %v5917_v46  ;;  %v4673_v30 = vpack.i.bf16 %v5920_v20, %v5917_v46  ;;  %v5943_v20 = vld [vmem:[%s5604_s5 + $0x120] sm:$0xff]  ;;  %v5946_v46 = vsel %vm302_vm8, 1.0, %v9644_v8  ;;  %9940 = vst [vmem:[#allocation74_spill] sm:$0xff] %v6048_v51  ;;  %v6059_v56 = vsel %vm313_vm9, 1.0, %v9644_v8 }
  0x40   : > { %4659 = vperm.xlu0 %4586, %v4658_v29   ;;  %v5927_v29 = vsel %vm296_vm6, 1.0, %v9644_v8  ;;  %9914 = vst [vmem:[#allocation48_spill] sm:$0xff] %v5943_v20  ;;  %9915 = vst [vmem:[#allocation49_spill] sm:$0xff] %v5946_v46  ;;  %vm300_vm12 = vcmp.ne.f32.partialorder %v5943_v20, 0.0 }
  0x41   : > { %9910 = vst [vmem:[#allocation44_spill] sm:$0xff] %v5927_v29  ;;  %v4668_v44 = vpack.i.bf16 %v5930_v43, %v5927_v29  ;;  %v5962_v43 = vld [vmem:[%s5604_s5 + $0x150] sm:$0xff]  ;;  %v5965_v29 = vld [vmem:[%s5604_s5 + $0x158] sm:$0xff]  ;;  %9942 = vst [vmem:[#allocation76_spill] sm:$0xff] %v6059_v56 }
  0x42   : > { %4674 = vperm.xlu1 %4597, %v4673_v30   ;;  %v4683_v30 = vpack.i.bf16 %v5949_v41, %v5946_v46  ;;  %9919 = vst [vmem:[#allocation53_spill] sm:$0xff] %v5962_v43  ;;  %9920 = vst [vmem:[#allocation54_spill] sm:$0xff] %v5965_v29  ;;  %vm306_vm14 = vcmp.ne.f32.partialorder %v5962_v43, 0.0  ;;  %vm307_vm15 = vcmp.ne.f32.partialorder %v5965_v29, 0.0  ;;  %v5975_v41 = vld [vmem:[%s5604_s5 + $0x140] sm:$0xff] }
  0x43   : > { %9922 = vst [vmem:[#allocation56_spill] sm:$0xff] %v5975_v41  ;;  %v5978_v46 = vsel %vm306_vm14, 1.0, %v9644_v8  ;;  %v5981_v38 = vsel %vm307_vm15, 1.0, %v9644_v8  ;;  %vm304_vm0 = vcmp.ne.f32.partialorder %v5975_v41, 0.0  ;;  %v6013_v43 = vld [vmem:[%s5604_s5 + $0x160] sm:$0x3] }
  0x44   : > { %4669 = vperm.xlu0 %4586, %v4668_v44   ;;  %v5959_v44 = vsel %vm300_vm12, 1.0, %v9644_v8  ;;  %9923 = vst [vmem:[#allocation57_spill] sm:$0xff] %v5978_v46  ;;  %9924 = vst [vmem:[#allocation58_spill] sm:$0xff] %v5981_v38  ;;  %v4693_v35 = vpack.i.bf16 %v5981_v38, %v5978_v46  ;;  %vm308_vm4 = vcmp.ne.f32.partialorder %v6013_v43, 0.0  ;;  %vm1754_vm14 = vcmask 31744  }
  0x45   : > { %9918 = vst [vmem:[#allocation52_spill] sm:$0xff] %v5959_v44  ;;  %v4678_v21 = vpack.i.bf16 %v5968_v52, %v5959_v44  ;;  %v5990_v52 = vld [vmem:[%s5604_s5 + $0x170] sm:$0xff]  ;;  %v5993_v44 = vld [vmem:[%s5604_s5 + $0x178] sm:$0x3]  ;;  %9932 = vst [vmem:[#allocation66_spill] sm:$0xff] %v6013_v43 }
  0x46   : > { %4684 = vperm.xlu1 %4597, %v4683_v30   ;;  %v5984_v30 = vld [vmem:[%s5604_s5 + $0x148] sm:$0x3]  ;;  %9926 = vst [vmem:[#allocation60_spill] sm:$0xff] %v5990_v52  ;;  %9927 = vst [vmem:[#allocation61_spill] sm:$0xff] %v5993_v44  ;;  %vm310_vm2 = vcmp.ne.f32.partialorder %v5990_v52, 0.0  ;;  %vm311_vm3 = vcmp.ne.f32.partialorder %v5993_v44, 0.0 }
  0x47   : > { %9925 = vst [vmem:[#allocation59_spill] sm:$0xff] %v5984_v30  ;;  %vm305_vm1 = vcmp.ne.f32.partialorder %v5984_v30, 0.0  ;;  %v6007_v46 = vsel %vm310_vm2, 1.0, %v9644_v8  ;;  %v6018_v52 = vld [vmem:[%s5604_s5 + $0x168] sm:$0xff]  ;;  %v261_v44 = vld [vmem:[%s5604_s5 + $0x198] sm:$0xff]  ;;  %v6036_v43 = vld [vmem:[%s5604_s5 + $0x180] sm:$0xff] }
  0x48   : > { %4679 = vperm.xlu0 %4586, %v4678_v21   ;;  %v5997_v21 = vsel %vm304_vm0, 1.0, %v9644_v8  ;;  %v6000_v29 = vsel %vm305_vm1, 1.0, %v9644_v8  ;;  %9930 = vst [vmem:[#allocation64_spill] sm:$0xff] %v6007_v46  ;;  %9933 = vst [vmem:[#allocation67_spill] sm:$0xff] %v6018_v52  ;;  %vm309_vm5 = vcmp.ne.f32.partialorder %v6018_v52, 0.0  ;;  %vm315_vm7 = vcmp.ne.f32.partialorder %v261_v44, 0.0 }
  0x49   : > { %9928 = vst [vmem:[#allocation62_spill] sm:$0xff] %v5997_v21  ;;  %9929 = vst [vmem:[#allocation63_spill] sm:$0xff] %v6000_v29  ;;  %v4688_v38 = vpack.i.bf16 %v6000_v29, %v5997_v21  ;;  %v6022_v29 = vld [vmem:[%s5604_s5 + $0x190] sm:$0x3]  ;;  %v6026_v21 = vsel %vm308_vm4, 1.0, %v9644_v8  ;;  %v6042_v30 = vsel %vm315_vm7, 1.0, %v9644_v8  ;;  %v2314_v51 = vadd.f32 %v6059_v56, %v6007_v46 }
  0x4a   : > { %4694 = vperm.xlu1 %4597, %v4693_v35   ;;  %v6010_v35 = vsel %vm311_vm3, 1.0, %v9644_v8  ;;  %9934 = vst [vmem:[#allocation68_spill] sm:$0xff] %v6022_v29  ;;  %9935 = vst [vmem:[#allocation69_spill] sm:$0xff] %v6026_v21  ;;  %vm314_vm6 = vcmp.ne.f32.partialorder %v6022_v29, 0.0  ;;  %vm312_vm8 = vcmp.ne.f32.partialorder %v6036_v43, 0.0 }
  0x4b   : > { %9931 = vst [vmem:[#allocation65_spill] sm:$0xff] %v6010_v35  ;;  %v4703_v41 = vpack.i.bf16 %v6010_v35, %v6007_v46  ;;  %9937 = vst [vmem:[#allocation71_spill] sm:$0xff] %v6036_v43  ;;  %v6039_v52 = vsel %vm314_vm6, 1.0, %v9644_v8  ;;  %v263_v29 = vld [vmem:[%s5604_s5 + $0x1a8] sm:$0x3] }
  0x4c   : > { %4689 = vperm.xlu0 %4586, %v4688_v38   ;;  %v6030_v38 = vsel %vm309_vm5, 1.0, %v9644_v8  ;;  %9938 = vst [vmem:[#allocation72_spill] sm:$0xff] %v6039_v52  ;;  %9939 = vst [vmem:[#allocation73_spill] sm:$0xff] %v6042_v30  ;;  %v4713_v20 = vpack.i.bf16 %v6042_v30, %v6039_v52  ;;  %vm317_vm13 = vcmp.ne.f32.partialorder %v263_v29, 0.0  ;;  %v2315_v58 = vadd.f32 %v6039_v52, %v6010_v35 }
  0x4d   : > { %9936 = vst [vmem:[#allocation70_spill] sm:$0xff] %v6030_v38 }
  0x4e   : > { %4704 = vperm.xlu1 %4597, %v4703_v41   ;;  %v4698_v41 = vpack.i.bf16 %v6030_v38, %v6026_v21  ;;  %v6051_v21 = vsel %vm312_vm8, 1.0, %v9644_v8 }
  0x4f   : > { %9941 = vst [vmem:[#allocation75_spill] sm:$0xff] %v6051_v21  ;;  %v2313_v44 = vadd.f32 %v6051_v21, %v6030_v38  ;;  %v4708_v43 = vpack.i.bf16 %v6059_v56, %v6051_v21 }
  0x50   : > { %4699 = vperm.xlu0 %4586, %v4698_v41   ;;  %v262_v41 = vld [vmem:[%s5604_s5 + $0x1a0] sm:$0xff] }
  0x51   : > { %vm316_vm12 = vcmp.ne.f32.partialorder %v262_v41, 0.0  ;;  %v2361_v17 = vadd.f32 %v6042_v30, %v2313_v44  ;;  %v2747_v41 = vmax.f32 %v6010_v35, %v6039_v52 }
  0x52   : > { %4714 = vperm.xlu1 %4597, %v4713_v20   ;;  %v6065_v34 = vsel %vm316_vm12, 1.0, %v9644_v8  ;;  %v4442_v20 = vsel %vm317_vm13, 1.0, %v9644_v8 }
  0x53   : > { %9943 = vst [vmem:[#allocation77_spill] sm:$0xff] %v6065_v34  ;;  %v4718_v38 = vpack.i.bf16 %v4442_v20, %v6065_v34  ;;  %v2487_v29 = vrot.slane %v2361_v17, 1  ;;  %v2362_v44 = vadd.f32 %v6065_v34, %v2314_v51  ;;  %v2363_v30 = vadd.f32 %v4442_v20, %v2315_v58 }
  0x54   : > { %4709 = vperm.xlu0 %4586, %v4708_v43   ;;  %v2631_v21 = vrot.slane %v2361_v17, 2  ;;  %v6076_v32 = vmax.f32 %v2747_v41, %v4442_v20 }
  0x55   : > { %v2488_v43 = vrot.slane %v2362_v44, 1  ;;  %v2490_v8 = vrot.slane %v2363_v30, 1  ;;  %v2632_v57 = vrot.slane %v2362_v44, 2  ;;  %v2634_v0 = vrot.slane %v2363_v30, 2 }
  0x56   : > { %9944 = vst [vmem:[#allocation78_spill] sm:$0xff] %v6076_v32 }
  0x57   : > { %v2489_v56 = vsel %vm798_vm10, %v2487_v29, %v2488_v43  ;;  %v2491_v46 = vsel %vm798_vm10, %v2488_v43, %v2490_v8  ;;  %v2633_v52 = vsel %vm879_vm11, %v2631_v21, %v2632_v57  ;;  %v2635_v35 = vsel %vm879_vm11, %v2632_v57, %v2634_v0 }
  0x58   : > { %4719 = vperm.xlu0 %4586, %v4718_v38   ;;  %v2554_v61 = vadd.f32 %v2489_v56, %v2361_v17  ;;  %v2555_v55 = vadd.f32 %v2491_v46, %v2362_v44  ;;  %v2271_v29 = vadd.f32 %v5687_v27, %v5684_v26  ;;  %v2700_v8 = vmax.f32 %v5675_v23, %v5684_v26 }
  0x59   : > { %v2705_v0 = vmax.f32 %v5637_v10, %v5652_v15  ;;  %v9949_v46 = vmax.f32 %v5681_v25, %v5634_v9 }
  0x5a   : > { %v6082_v51 = vadd.f32 %v2633_v52, %v2554_v61  ;;  %v6084_v58 = vadd.f32 %v2635_v35, %v2555_v55 }
  0x5b   : > { %v6106_v21 = vmax.f32 %v9949_v46, %v5649_v14  ;;  %v6126_v43 = vmax.f32 %v2705_v0, %v5660_v18 }
  0x5c   : > { %9945 = vst [vmem:[#allocation79_spill] sm:$0xff] %v6082_v51  ;;  %9946 = vst [vmem:[#allocation80_spill] sm:$0xff] %v6084_v58 }
  0x5d   : > { %9950 = vst [vmem:[#allocation83_spill] sm:$0xff] %v6106_v21  ;;  %9954 = vst [vmem:[#allocation87_spill] sm:$0xff] %v6126_v43 }
  0x9b   : > { %v4600_v20 = vpop.permute.xlu1 %4599 }
  0x9c   : > { %v4602_v17 = vunpack.i.h.bf16 %v4600_v20  ;;  %v4601_v52 = vunpack.i.l.bf16 %v4600_v20 }
  0x9e   : > { %v6120_v35 = vmul.f32 %v4602_v17, %v5610_v2 }
  0x9f   : > { %v6086_v38 = vpop.permute.xlu0 %4588 }
  0xa0   : > { %v807_v2 = vrot.slane %v6120_v35, 1 }
  0xa1   : > { %v4605_v41 = vpop.permute.xlu1 %4604 }
  0xa2   : > { %v4607_v32 = vunpack.i.h.bf16 %v4605_v41  ;;  %v4606_v30 = vunpack.i.l.bf16 %v4605_v41  ;;  %v6131_v41 = vmul.f32 %v4601_v52, %v5607_v1 }
  0xa3   : > { %v6100_v57 = vpop.permute.xlu0 %4593 }
  0xa4   : > { %v6093_v56 = vmul.f32 %v4607_v32, %v5613_v3  ;;  %v6096_v61 = vmul.f32 %v4606_v30, %v5646_v13  ;;  %v4596_v23 = vunpack.i.h.bf16 %v6100_v57  ;;  %v6110_v3 = vmax.f32 %v2700_v8, %v5687_v27  ;;  %9955 = vst [vmem:[#allocation88_spill] sm:$0xff] %v6131_v41 }
  0xa5   : > { %v4615_v55 = vpop.permute.xlu1 %4614  ;;  %v6113_v13 = vadd.f32 %v5738_v59, %v2271_v29  ;;  %v9956_v29 = vmax.f32 %v5712_v42, %v5637_v10 }
  0xa6   : > { %9947 = vst [vmem:[#allocation81_spill] sm:$0xff] %v6093_v56  ;;  %9948 = vst [vmem:[#allocation82_spill] sm:$0xff] %v6096_v61  ;;  %v6117_v32 = vpack.i.bf16 %v6093_v56, %v6096_v61  ;;  %v6123_v44 = vmul.f32 %v4596_v23, %v5643_v12  ;;  %v4616_v25 = vunpack.i.l.bf16 %v4615_v55  ;;  %v4617_v17 = vunpack.i.h.bf16 %v4615_v55 }
  0xa7   : > { %9951 = vst [vmem:[#allocation84_spill] sm:$0xff] %v6110_v3  ;;  %v4610_v30 = vpop.permute.xlu0 %4609  ;;  %v6141_v8 = vmax.f32 %v9956_v29, %v5652_v15  ;;  %v2417_v1 = vrot.slane %v6113_v13, 1  ;;  %v805_v55 = vrot.slane %v6131_v41, 1  ;;  %v809_v29 = vrot.slane %v6096_v61, 1 }
  0xa8   : > { %9952 = vst [vmem:[#allocation85_spill] sm:$0xff] %v6117_v32  ;;  %9953 = vst [vmem:[#allocation86_spill] sm:$0xff] %v6123_v44  ;;  %4729 = vrot.lane.b32.xlu0 %v6117_v32, %s5513_s6  ;;  %v4612_v52 = vunpack.i.h.bf16 %v4610_v30  ;;  %v4723_v46 = vpack.i.bf16 %v6131_v41, %v6123_v44  ;;  %v6150_v12 = vmul.f32 %v4616_v25, %v5619_v5  ;;  %v4611_v20 = vunpack.i.l.bf16 %v4610_v30 }
  0xa9   : > { %9957 = vst [vmem:[#allocation89_spill] sm:$0xff] %v6141_v8  ;;  %v4625_v10 = vpop.permute.xlu1 %4624  ;;  %v810_v0 = vrot.slane %v6093_v56, 1  ;;  %v6162_v3 = vadd.f32 %v5738_v59, %v5687_v27  ;;  %v6165_v5 = vmul.f32 %v4617_v17, %v5622_v6  ;;  %v808_v9 = vsel %vm798_vm10, %v805_v55, %v807_v2 }
  0xaa   : > { %9958 = vst [vmem:[#allocation90_spill] sm:$0xff] %v6150_v12  ;;  %v6153_v42 = vmul.f32 %v4612_v52, %v5719_v47  ;;  %4724 = vrot.lane.b32.xlu1 %v4723_v46, %s5513_s6  ;;  %v4626_v25 = vunpack.i.l.bf16 %v4625_v10  ;;  %v9961_v47 = vrot.slane %v5672_v22, 1  ;;  %v6175_v46 = vadd.f32 %v5660_v18, %v5652_v15 }
  0xab   : > { %9960 = vst [vmem:[#allocation92_spill] sm:$0xff] %v6162_v3  ;;  %v6180_v43 = vmul.f32 %v4611_v20, %v5616_v4  ;;  %v4620_v6 = vpop.permute.xlu0 %4619  ;;  %v811_v15 = vsel %vm798_vm10, %v809_v29, %v810_v0  ;;  %v817_v23 = vrot.slane %v6165_v5, 1  ;;  %v4627_v26 = vunpack.i.h.bf16 %v4625_v10 }
  0xac   : > { %9959 = vst [vmem:[#allocation91_spill] sm:$0xff] %v6153_v42  ;;  %v6170_v30 = vsel %vm798_vm10, %v2417_v1, %v9961_v47  ;;  %v6184_v17 = vpack.i.bf16 %v6150_v12, %v6153_v42  ;;  %v4622_v47 = vunpack.i.h.bf16 %v4620_v6  ;;  %v4621_v52 = vunpack.i.l.bf16 %v4620_v6 }
  0xad   : > { %v6191_v21 = vmul.f32 %v4626_v25, %v5722_v50  ;;  %v898_v1 = vrot.slane %v6165_v5, 2  ;;  %v812_v29 = vrot.slane %v6180_v43, 1  ;;  %v4635_v50 = vpop.permute.xlu1 %4634  ;;  %v804_v25 = vrot.slane %v6123_v44, 1 }
  0xae   : > { %9962 = vst [vmem:[#allocation93_spill] sm:$0xff] %v6184_v17  ;;  %4734 = vrot.lane.b32.xlu1 %v6184_v17, %s5513_s6  ;;  %v6199_v6 = vmul.f32 %v4622_v47, %v5758_v28  ;;  %v6202_v2 = vmul.f32 %v4621_v52, %v5750_v16  ;;  %v815_v27 = vrot.slane %v6150_v12, 1  ;;  %v885_v4 = vrot.slane %v6123_v44, 2 }
  0xaf   : > { %v4637_v51 = vunpack.i.h.bf16 %v4635_v50  ;;  %v4636_v20 = vunpack.i.l.bf16 %v4635_v50  ;;  %v814_v28 = vrot.slane %v6153_v42, 1  ;;  %v822_v16 = vrot.slane %v6191_v21, 1 }
  0xb0   : > { %9963 = vst [vmem:[#allocation94_spill] sm:$0xff] %v6199_v6  ;;  %9964 = vst [vmem:[#allocation95_spill] sm:$0xff] %v6202_v2  ;;  %v6210_v10 = vpack.i.bf16 %v6199_v6, %v6202_v2  ;;  %v819_v5 = vrot.slane %v6202_v2, 1  ;;  %v820_v52 = vrot.slane %v6199_v6, 1  ;;  %v896_v47 = vrot.slane %v6150_v12, 2 }
  0xb1   : > { %v6218_v58 = vmul.f32 %v4627_v26, %v5731_v54  ;;  %v6221_v17 = vmul.f32 %v4637_v51, %v5773_v37  ;;  %v6224_v50 = vmul.f32 %v4636_v20, %v5770_v36  ;;  %v895_v32 = vrot.slane %v6153_v42, 2  ;;  %v4630_v51 = vpop.permute.xlu0 %4629 }
  0xb2   : > { %9965 = vst [vmem:[#allocation96_spill] sm:$0xff] %v6210_v10  ;;  %4739 = vrot.lane.b32.xlu0 %v6210_v10, %s5513_s6  ;;  %v893_v44 = vrot.slane %v6180_v43, 2  ;;  %v806_v34 = vsel %vm798_vm10, %v804_v25, %v805_v55  ;;  %v818_v12 = vsel %vm798_vm10, %v815_v27, %v817_v23  ;;  %v9969_v26 = vrot.slane %v6131_v41, 2  ;;  %v4645_v25 = vpop.permute.xlu1 %4644 }
  0xb3   : > { %9966 = vst [vmem:[#allocation97_spill] sm:$0xff] %v6218_v58  ;;  %9967 = vst [vmem:[#allocation98_spill] sm:$0xff] %v6221_v17  ;;  %v903_v37 = vrot.slane %v6191_v21, 2  ;;  %v6238_v36 = vpack.i.bf16 %v6221_v17, %v6224_v50  ;;  %v816_v20 = vsel %vm798_vm10, %v814_v28, %v815_v27  ;;  %v813_v10 = vsel %vm798_vm10, %v810_v0, %v812_v29 }
  0xb4   : > { %9968 = vst [vmem:[#allocation99_spill] sm:$0xff] %v6224_v50  ;;  %v887_v54 = vsel %vm879_vm11, %v885_v4, %v9969_v26  ;;  %v4632_v43 = vunpack.i.h.bf16 %v4630_v51  ;;  %v4631_v42 = vunpack.i.l.bf16 %v4630_v51  ;;  %v821_v55 = vsel %vm798_vm10, %v819_v5, %v820_v52 }
  0xb5   : > { %9970 = vst [vmem:[#allocation100_spill] sm:$0xff] %v6238_v36  ;;  %v823_v23 = vsel %vm798_vm10, %v820_v52, %v822_v16  ;;  %v824_v21 = vrot.slane %v6218_v58, 1  ;;  %v897_v4 = vsel %vm879_vm11, %v895_v32, %v896_v47  ;;  %v900_v26 = vrot.slane %v6202_v2, 2 }
  0xb6   : > { %4749 = vrot.lane.b32.xlu0 %v6238_v36, %s5513_s6  ;;  %v901_v27 = vrot.slane %v6199_v6, 2  ;;  %v713_v0 = vmul.f32 %v4632_v43, %v5792_v45  ;;  %v6252_v29 = vmul.f32 %v4631_v42, %v5783_v40  ;;  %v4647_v28 = vunpack.i.h.bf16 %v4645_v25 }
  0xb7   : > { %v4646_v5 = vunpack.i.l.bf16 %v4645_v25  ;;  %v899_v16 = vsel %vm879_vm11, %v896_v47, %v898_v1  ;;  %v6255_v52 = vpack.i.bf16 %v813_v10, %v811_v15  ;;  %v6257_v51 = vpack.i.bf16 %v808_v9, %v806_v34 }
  0xb8   : > { %9971 = vst [vmem:[#allocation101_spill] sm:$0xff] %v6252_v29  ;;  %v6259_v36 = vpack.i.bf16 %v823_v23, %v821_v55  ;;  %v827_v32 = vrot.slane %v713_v0, 1  ;;  %v908_v3 = vrot.slane %v713_v0, 2  ;;  %v719_v2 = vmul.f32 %v4647_v28, %v5801_v49  ;;  %v4640_v23 = vpop.permute.xlu0 %4639 }
  0xb9   : > { %9972 = vst [vmem:[#allocation102_spill] sm:$0xff] %v6255_v52  ;;  %v905_v6 = vrot.slane %v6218_v58, 2  ;;  %v6265_v40 = vpack.i.bf16 %v6252_v29, %v6218_v58  ;;  %v825_v45 = vrot.slane %v6252_v29, 1  ;;  %v906_v42 = vrot.slane %v6252_v29, 2  ;;  %v10041_v58 = vld [vmem:[#allocation60_spill] sm:$0xff] }
  0xba   : > { %9973 = vst [vmem:[#allocation103_spill] sm:$0xff] %v6259_v36  ;;  %v6269_v15 = vpack.i.bf16 %v818_v12, %v816_v20  ;;  %v6272_v9 = vmul.f32 %v4646_v5, %v5798_v48  ;;  %v9977_v34 = vrot.slane %v6093_v56, 2  ;;  %v902_v49 = vsel %vm879_vm11, %v900_v26, %v901_v27 }
  0xbb   : > { %9974 = vst [vmem:[#allocation104_spill] sm:$0xff] %v6265_v40  ;;  %v904_v10 = vsel %vm879_vm11, %v901_v27, %v903_v37  ;;  %4744 = vrot.lane.b32.xlu1 %v6265_v40, %s5513_s6  ;;  %v826_v47 = vsel %vm798_vm10, %v824_v21, %v825_v45  ;;  %v828_v43 = vsel %vm798_vm10, %v825_v45, %v827_v32  ;;  %v837_v20 = vrot.slane %v719_v2, 1 }
  0xbc   : > { %9975 = vst [vmem:[#allocation105_spill] sm:$0xff] %v6269_v15  ;;  %9976 = vst [vmem:[#allocation106_spill] sm:$0xff] %v6272_v9  ;;  %v894_v1 = vsel %vm879_vm11, %v9977_v34, %v893_v44  ;;  %v907_v12 = vsel %vm879_vm11, %v905_v6, %v906_v42  ;;  %v909_v48 = vsel %vm879_vm11, %v906_v42, %v908_v3  ;;  %v918_v55 = vrot.slane %v719_v2, 2 }
  0xbd   : > { %v9978_v44 = vrot.slane %v6120_v35, 2  ;;  %v9979_v25 = vrot.slane %v6131_v41, 2  ;;  %v9980_v26 = vmov %v9977_v34  ;;  %v9981_v27 = vrot.slane %v6096_v61, 2 }
  0xbe   : > { %v4642_v0 = vunpack.i.h.bf16 %v4640_v23  ;;  %v4641_v28 = vunpack.i.l.bf16 %v4640_v23  ;;  %v6295_v6 = vpack.i.bf16 %v828_v43, %v826_v47  ;;  %v6301_v5 = vpack.i.bf16 %v904_v10, %v902_v49  ;;  %v4655_v43 = vpop.permute.xlu1 %4654 }
  0xbf   : > { %v889_v37 = vsel %vm879_vm11, %v9979_v25, %v9978_v44  ;;  %v892_v21 = vsel %vm879_vm11, %v9981_v27, %v9980_v26  ;;  %v6303_v35 = vpack.i.bf16 %v899_v16, %v897_v4  ;;  %v6305_v32 = vpack.i.bf16 %v909_v48, %v907_v12 }
  0xc0   : > { %9982 = vst [vmem:[#allocation107_spill] sm:$0xff] %v6295_v6  ;;  %v6297_v3 = vpack.i.bf16 %v894_v1, %v892_v21  ;;  %v6299_v2 = vpack.i.bf16 %v889_v37, %v887_v54  ;;  %9985 = vst [vmem:[#allocation110_spill] sm:$0xff] %v6301_v5  ;;  %v6308_v45 = vmul.f32 %v4642_v0, %v5826_v62  ;;  %v835_v34 = vrot.slane %v6272_v9, 1 }
  0xc1   : > { %9986 = vst [vmem:[#allocation111_spill] sm:$0xff] %v6303_v35  ;;  %9987 = vst [vmem:[#allocation112_spill] sm:$0xff] %v6305_v32  ;;  %v716_v42 = vmul.f32 %v4641_v28, %v5823_v60  ;;  %v916_v47 = vrot.slane %v6272_v9, 2  ;;  %v829_v1 = vrot.slane %v6224_v50, 1  ;;  %v830_v54 = vrot.slane %v6221_v17, 1 }
  0xc2   : > { %9983 = vst [vmem:[#allocation108_spill] sm:$0xff] %v6297_v3  ;;  %9984 = vst [vmem:[#allocation109_spill] sm:$0xff] %v6299_v2  ;;  %v910_v49 = vrot.slane %v6224_v50, 2  ;;  %v4656_v10 = vunpack.i.l.bf16 %v4655_v43  ;;  %v911_v12 = vrot.slane %v6221_v17, 2  ;;  %v4590_v62 = vunpack.i.l.bf16 %v6086_v38 }
  0xc3   : > { %9988 = vst [vmem:[#allocation113_spill] sm:$0xff] %v6308_v45  ;;  %v832_v4 = vrot.slane %v716_v42, 1  ;;  %v913_v16 = vrot.slane %v716_v42, 2  ;;  %v6320_v60 = vpack.i.bf16 %v6272_v9, %v6308_v45  ;;  %v834_v48 = vrot.slane %v6308_v45, 1 }
  0xc4   : > { %v915_v23 = vrot.slane %v6308_v45, 2  ;;  %v9990_v44 = vunpack.i.h.bf16 %v6086_v38  ;;  %v722_v37 = vmul.f32 %v4656_v10, %v5829_v63  ;;  %v838_v26 = vsel %vm798_vm10, %v835_v34, %v837_v20 }
  0xc5   : > { %9989 = vst [vmem:[#allocation114_spill] sm:$0xff] %v6320_v60  ;;  %v919_v27 = vsel %vm879_vm11, %v916_v47, %v918_v55  ;;  %4754 = vrot.lane.b32.xlu1 %v6320_v60, %s5513_s6  ;;  %v836_v21 = vsel %vm798_vm10, %v834_v48, %v835_v34  ;;  %v833_v0 = vsel %vm798_vm10, %v830_v54, %v832_v4  ;;  %v4657_v38 = vunpack.i.h.bf16 %v4655_v43  ;;  %v4665_v48 = vpop.permute.xlu1 %4664 }
  0xc6   : > { %v6327_v25 = vmul.f32 %v9990_v44, %v5640_v11  ;;  %v917_v28 = vsel %vm879_vm11, %v915_v23, %v916_v47  ;;  %v914_v42 = vsel %vm879_vm11, %v911_v12, %v913_v16  ;;  %v4595_v11 = vunpack.i.l.bf16 %v6100_v57  ;;  %v4650_v44 = vpop.permute.xlu0 %4649 }
  0xc7   : > { %v831_v63 = vsel %vm798_vm10, %v829_v1, %v830_v54  ;;  %v912_v20 = vsel %vm879_vm11, %v910_v49, %v911_v12  ;;  %v842_v55 = vrot.slane %v722_v37, 1  ;;  %v923_v10 = vrot.slane %v722_v37, 2 }
  0xc8   : > { %9991 = vst [vmem:[#allocation115_spill] sm:$0xff] %v6327_v25  ;;  %v4652_v50 = vunpack.i.h.bf16 %v4650_v44  ;;  %v4651_v60 = vunpack.i.l.bf16 %v4650_v44  ;;  %v6341_v17 = vpack.i.bf16 %v833_v0, %v831_v63  ;;  %v6343_v34 = vpack.i.bf16 %v838_v26, %v836_v21 }
  0xc9   : > { %v6345_v4 = vpack.i.bf16 %v914_v42, %v912_v20  ;;  %v6347_v47 = vpack.i.bf16 %v919_v27, %v917_v28  ;;  %v6363_v12 = vmul.f32 %v4590_v62, %v5630_v7  ;;  %v4666_v23 = vunpack.i.l.bf16 %v4665_v48 }
  0xca   : > { %9992 = vst [vmem:[#allocation116_spill] sm:$0xff] %v6341_v17  ;;  %9993 = vst [vmem:[#allocation117_spill] sm:$0xff] %v6343_v34  ;;  %v6350_v57 = vmul.f32 %v4652_v50, %v5858_v31  ;;  %v6353_v43 = vmul.f32 %v4651_v60, %v5847_v39  ;;  %v4667_v50 = vunpack.i.h.bf16 %v4665_v48  ;;  %v6371_v37 = vmul.f32 %v4595_v11, %v5678_v24  ;;  %v4660_v28 = vpop.permute.xlu0 %4659 }
  0xcb   : > { %9994 = vst [vmem:[#allocation118_spill] sm:$0xff] %v6345_v4  ;;  %9995 = vst [vmem:[#allocation119_spill] sm:$0xff] %v6347_v47  ;;  %v6378_v27 = vmul.f32 %v4657_v38, %v5834_v19  ;;  %v6384_v0 = vmul.f32 %v4666_v23, %v5869_v53  ;;  %v4662_v24 = vunpack.i.h.bf16 %v4660_v28  ;;  %v4661_v11 = vunpack.i.l.bf16 %v4660_v28 }
  0xcc   : > { %9996 = vst [vmem:[#allocation120_spill] sm:$0xff] %v6350_v57  ;;  %9997 = vst [vmem:[#allocation121_spill] sm:$0xff] %v6353_v43  ;;  %v6357_v1 = vpack.i.bf16 %v6350_v57, %v6353_v43  ;;  %v839_v54 = vrot.slane %v6353_v43, 1  ;;  %v840_v49 = vrot.slane %v6350_v57, 1  ;;  %v920_v16 = vrot.slane %v6353_v43, 2 }
  0xcd   : > { %9999 = vst [vmem:[#allocation123_spill] sm:$0xff] %v6363_v12  ;;  %v921_v31 = vrot.slane %v6350_v57, 2  ;;  %10001 = vst [vmem:[#allocation125_spill] sm:$0xff] %v6378_v27  ;;  %v6381_v21 = vmul.f32 %v4667_v50, %v5872_v33  ;;  %v6390_v44 = vadd.f32 %v6170_v30, %v6113_v13  ;;  %v10005_v63 = vrot.slane %v5672_v22, 2 }
  0xce   : > { %9998 = vst [vmem:[#allocation122_spill] sm:$0xff] %v6357_v1  ;;  %4759 = vrot.lane.b32.xlu0 %v6357_v1, %s5513_s6  ;;  %v841_v39 = vsel %vm798_vm10, %v839_v54, %v840_v49  ;;  %v843_v60 = vsel %vm798_vm10, %v840_v49, %v842_v55  ;;  %10003 = vst [vmem:[#allocation127_spill] sm:$0xff] %v6384_v0  ;;  %v10006_v19 = vrot.slane %v6113_v13, 2  ;;  %v799_v53 = vrot.slane %v6363_v12, 1  ;;  %v10008_v55 = vld [vmem:[#allocation35_spill] sm:$0xff]  ;;  %v10009_v54 = vld [vmem:[#allocation32_spill] sm:$0xff] }
  0xcf   : > { %v922_v26 = vsel %vm879_vm11, %v920_v16, %v921_v31  ;;  %v924_v7 = vsel %vm879_vm11, %v921_v31, %v923_v10  ;;  %v6375_v62 = vpack.i.bf16 %v843_v60, %v841_v39  ;;  %10002 = vst [vmem:[#allocation126_spill] sm:$0xff] %v6381_v21  ;;  %v6401_v33 = vpack.i.bf16 %v6381_v21, %v6384_v0  ;;  %v10011_v13 = vld [vmem:[#allocation15_spill] sm:$0xff] }
  0xd0   : > { %v6386_v42 = vpack.i.bf16 %v924_v7, %v922_v26  ;;  %v6397_v38 = vsel %vm879_vm11, %v10006_v19, %v10005_v63  ;;  %v802_v20 = vrot.slane %v6371_v37, 1  ;;  %v725_v10 = vmul.f32 %v4662_v24, %v10008_v55  ;;  %v4675_v26 = vpop.permute.xlu1 %4674 }
  0xd1   : > { %10000 = vst [vmem:[#allocation124_spill] sm:$0xff] %v6375_v62  ;;  %10007 = vst [vmem:[#allocation129_spill] sm:$0xff] %v6401_v33  ;;  %v6407_v30 = vmul.f32 %v4661_v11, %v10009_v54  ;;  %v800_v22 = vrot.slane %v6327_v25, 1  ;;  %v6412_v49 = vadd.f32 %v10011_v13, %v5660_v18  ;;  %v844_v16 = vrot.slane %v6378_v27, 1 }
  0xd2   : > { %10004 = vst [vmem:[#allocation128_spill] sm:$0xff] %v6386_v42  ;;  %4769 = vrot.lane.b32.xlu0 %v6401_v33, %s5513_s6  ;;  %v847_v48 = vrot.slane %v725_v10, 1  ;;  %v928_v31 = vrot.slane %v725_v10, 2  ;;  %v925_v39 = vrot.slane %v6378_v27, 2  ;;  %v4677_v63 = vunpack.i.h.bf16 %v4675_v26  ;;  %v4670_v10 = vpop.permute.xlu0 %4669 }
  0xd3   : > { %10010 = vst [vmem:[#allocation35_spill] sm:$0xff] %v6407_v30  ;;  %v6419_v50 = vpack.i.bf16 %v6407_v30, %v6378_v27  ;;  %v845_v23 = vrot.slane %v6407_v30, 1  ;;  %v926_v60 = vrot.slane %v6407_v30, 2  ;;  %v801_v7 = vsel %vm798_vm10, %v799_v53, %v800_v22  ;;  %v10014_v53 = vld [vmem:[#allocation39_spill] sm:$0xff]  ;;  %v10039_v30 = vld [vmem:[#allocation56_spill] sm:$0xff] }
  0xd4   : > { %v803_v28 = vsel %vm798_vm10, %v800_v22, %v802_v20  ;;  %v4676_v19 = vunpack.i.l.bf16 %v4675_v26  ;;  %v731_v33 = vmul.f32 %v4677_v63, %v10014_v53  ;;  %v10015_v20 = vld [vmem:[#allocation37_spill] sm:$0xff]  ;;  %v850_v26 = vrot.slane %v6381_v21, 1  ;;  %v10038_v27 = vld [vmem:[#allocation59_spill] sm:$0xff] }
  0xd5   : > { %10012 = vst [vmem:[#allocation32_spill] sm:$0xff] %v6419_v50  ;;  %4764 = vrot.lane.b32.xlu1 %v6419_v50, %s5513_s6  ;;  %v846_v24 = vsel %vm798_vm10, %v844_v16, %v845_v23  ;;  %v848_v11 = vsel %vm798_vm10, %v845_v23, %v847_v48  ;;  %v927_v55 = vsel %vm879_vm11, %v925_v39, %v926_v60  ;;  %v4672_v16 = vunpack.i.h.bf16 %v4670_v10  ;;  %v10018_v39 = vld [vmem:[#allocation41_spill] sm:$0xff] }
  0xd6   : > { %4784 = vrot.lane.b32.xlu0 %v6257_v51, %s5514_s7  ;;  %v929_v54 = vsel %vm879_vm11, %v926_v60, %v928_v31  ;;  %v6434_v18 = vpack.i.bf16 %v848_v11, %v846_v24  ;;  %v6438_v22 = vmul.f32 %v4676_v19, %v10015_v20  ;;  %v4671_v48 = vunpack.i.l.bf16 %v4670_v10  ;;  %v10020_v31 = vld [vmem:[#allocation40_spill] sm:$0xff] }
  0xd7   : > { %v849_v23 = vrot.slane %v6384_v0, 1  ;;  %v6442_v50 = vpack.i.bf16 %v929_v54, %v927_v55  ;;  %v857_v1 = vrot.slane %v731_v33, 1  ;;  %v6445_v43 = vmul.f32 %v4672_v16, %v10018_v39 }
  0xd8   : > { %10013 = vst [vmem:[#allocation130_spill] sm:$0xff] %v6434_v18  ;;  %10016 = vst [vmem:[#allocation39_spill] sm:$0xff] %v6438_v22  ;;  %v728_v60 = vmul.f32 %v4671_v48, %v10020_v31  ;;  %v930_v24 = vrot.slane %v6384_v0, 2  ;;  %v938_v11 = vrot.slane %v731_v33, 2  ;;  %v855_v63 = vrot.slane %v6438_v22, 1  ;;  %v4685_v0 = vpop.permute.xlu1 %4684 }
  0xd9   : > { %10017 = vst [vmem:[#allocation37_spill] sm:$0xff] %v6442_v50  ;;  %10019 = vst [vmem:[#allocation41_spill] sm:$0xff] %v6445_v43  ;;  %v936_v19 = vrot.slane %v6438_v22, 2  ;;  %v931_v10 = vrot.slane %v6381_v21, 2  ;;  %v6456_v53 = vpack.i.bf16 %v6438_v22, %v6445_v43  ;;  %v854_v20 = vrot.slane %v6445_v43, 1 }
  0xda   : > { %4794 = vrot.lane.b32.xlu0 %v6269_v15, %s5514_s7  ;;  %v852_v55 = vrot.slane %v728_v60, 1  ;;  %v933_v54 = vrot.slane %v728_v60, 2  ;;  %v6461_v16 = vadd.f32 %v10011_v13, %v6175_v46  ;;  %v4778_v48 = vpack.i.bf16 %v803_v28, %v801_v7 }
  0xdb   : > { %10021 = vst [vmem:[#allocation40_spill] sm:$0xff] %v6456_v53  ;;  %v858_v33 = vsel %vm798_vm10, %v855_v63, %v857_v1  ;;  %v935_v39 = vrot.slane %v6445_v43, 2  ;;  %4774 = vrot.lane.b32.xlu1 %v6456_v53, %s5513_s6  ;;  %v856_v60 = vsel %vm798_vm10, %v854_v20, %v855_v63  ;;  %v4686_v7 = vunpack.i.l.bf16 %v4685_v0  ;;  %v10026_v20 = vld [vmem:[#allocation46_spill] sm:$0xff] }
  0xdc   : > { %v853_v21 = vsel %vm798_vm10, %v850_v26, %v852_v55  ;;  %v934_v46 = vsel %vm879_vm11, %v931_v10, %v933_v54  ;;  %v851_v1 = vsel %vm798_vm10, %v849_v23, %v850_v26  ;;  %v939_v28 = vsel %vm879_vm11, %v936_v19, %v938_v11  ;;  %v10025_v55 = vld [vmem:[#allocation8_spill] sm:$0xff]  ;;  %v4680_v23 = vpop.permute.xlu0 %4679 }
  0xdd   : > { %v937_v31 = vsel %vm879_vm11, %v935_v39, %v936_v19  ;;  %v932_v8 = vsel %vm879_vm11, %v930_v24, %v931_v10  ;;  %v6477_v57 = vpack.i.bf16 %v853_v21, %v851_v1  ;;  %v6479_v53 = vpack.i.bf16 %v858_v33, %v856_v60  ;;  %v10029_v24 = vld [vmem:[#allocation51_spill] sm:$0xff]  ;;  %v10030_v33 = vld [vmem:[#allocation48_spill] sm:$0xff]  ;;  %v10031_v60 = vld [vmem:[#allocation18_spill] sm:$0xff] }
  0xde   : > { %4804 = vrot.lane.b32.xlu0 %v6295_v6, %s5514_s7  ;;  %v6483_v63 = vadd.f32 %v6397_v38, %v6390_v44  ;;  %v2275_v54 = vadd.f32 %v10025_v55, %v5649_v14  ;;  %v734_v40 = vmul.f32 %v4686_v7, %v10026_v20  ;;  %v6488_v26 = vpack.i.bf16 %v934_v46, %v932_v8  ;;  %v10032_v7 = vld [vmem:[#allocation92_spill] sm:$0xff]  ;;  %v4695_v20 = vpop.permute.xlu1 %4694 }
  0xdf   : > { %10022 = vst [vmem:[#allocation131_spill] sm:$0xff] %v6477_v57  ;;  %10023 = vst [vmem:[#allocation132_spill] sm:$0xff] %v6479_v53  ;;  %v4682_v11 = vunpack.i.h.bf16 %v4680_v23  ;;  %v4681_v19 = vunpack.i.l.bf16 %v4680_v23  ;;  %4779 = vrot.lane.b32.xlu1 %v4778_v48, %s5514_s7  ;;  %v6493_v21 = vpack.i.bf16 %v939_v28, %v937_v31  ;;  %v2277_v46 = vadd.f32 %v10031_v60, %v5738_v59  ;;  %v10033_v31 = vld [vmem:[#allocation19_spill] sm:$0xff]  ;;  %v10034_v8 = vld [vmem:[#allocation16_spill] sm:$0xff] }
  0xe0   : > { %10024 = vst [vmem:[#allocation133_spill] sm:$0xff] %v6483_v63  ;;  %10027 = vst [vmem:[#allocation46_spill] sm:$0xff] %v6488_v26  ;;  %v862_v38 = vrot.slane %v734_v40, 1  ;;  %v943_v48 = vrot.slane %v734_v40, 2  ;;  %v6507_v1 = vadd.f32 %v10031_v60, %v10032_v7  ;;  %v6510_v28 = vadd.f32 %v10033_v31, %v2275_v54 }
  0xe1   : > { %10028 = vst [vmem:[#allocation134_spill] sm:$0xff] %v6493_v21  ;;  %v6497_v10 = vmul.f32 %v4682_v11, %v10029_v24  ;;  %v6500_v39 = vmul.f32 %v4681_v19, %v10030_v33  ;;  %v6520_v40 = vadd.f32 %v10033_v31, %v10025_v55  ;;  %v4687_v24 = vunpack.i.h.bf16 %v4685_v0 }
  0xe2   : > { %4814 = vrot.lane.b32.xlu0 %v6343_v34, %s5514_s7  ;;  %v6528_v44 = vadd.f32 %v10034_v8, %v10031_v60  ;;  %v6535_v55 = vadd.f32 %v10034_v8, %v2277_v46  ;;  %v2422_v22 = vrot.slane %v6507_v1, 1  ;;  %v2423_v0 = vrot.slane %v6510_v28, 1 }
  0xe3   : > { %4789 = vrot.lane.b32.xlu1 %v6255_v52, %s5514_s7  ;;  %v859_v23 = vrot.slane %v6500_v39, 1  ;;  %v860_v11 = vrot.slane %v6497_v10, 1  ;;  %v940_v19 = vrot.slane %v6500_v39, 2  ;;  %v941_v54 = vrot.slane %v6497_v10, 2 }
  0xe4   : > { %v4697_v9 = vunpack.i.h.bf16 %v4695_v20 }
  0xe5   : > { %v861_v33 = vsel %vm798_vm10, %v859_v23, %v860_v11  ;;  %v863_v7 = vsel %vm798_vm10, %v860_v11, %v862_v38  ;;  %v942_v59 = vsel %vm879_vm11, %v940_v19, %v941_v54  ;;  %v944_v14 = vsel %vm879_vm11, %v941_v54, %v943_v48  ;;  %v4690_v38 = vpop.permute.xlu0 %4689  ;;  %v10036_v54 = vld [vmem:[#allocation47_spill] sm:$0xff] }
  0xe6   : > { %4824 = vrot.lane.b32.xlu0 %v6434_v18, %s5514_s7  ;;  %v6532_v43 = vpack.i.bf16 %v863_v7, %v861_v33  ;;  %v4692_v11 = vunpack.i.h.bf16 %v4690_v38  ;;  %v4691_v19 = vunpack.i.l.bf16 %v4690_v38  ;;  %v6546_v46 = vmul.f32 %v4687_v24, %v10036_v54  ;;  %v4705_v7 = vpop.permute.xlu1 %4704  ;;  %v10040_v54 = vld [vmem:[#allocation61_spill] sm:$0xff] }
  0xe7   : > { %4799 = vrot.lane.b32.xlu1 %v6259_v36, %s5514_s7  ;;  %v4696_v33 = vunpack.i.l.bf16 %v4695_v20  ;;  %v6548_v60 = vpack.i.bf16 %v944_v14, %v942_v59  ;;  %v4707_v56 = vunpack.i.h.bf16 %v4705_v7  ;;  %v4706_v63 = vunpack.i.l.bf16 %v4705_v7  ;;  %v10042_v7 = vld [vmem:[#allocation53_spill] sm:$0xff] }
  0xe8   : > { %10035 = vst [vmem:[#allocation51_spill] sm:$0xff] %v6532_v43  ;;  %v737_v23 = vmul.f32 %v4692_v11, %v10038_v27  ;;  %v6552_v61 = vmul.f32 %v4691_v19, %v10039_v30  ;;  %v864_v59 = vrot.slane %v6546_v46, 1  ;;  %v945_v30 = vrot.slane %v6546_v46, 2 }
  0xe9   : > { %10037 = vst [vmem:[#allocation48_spill] sm:$0xff] %v6548_v60  ;;  %v743_v48 = vmul.f32 %v4707_v56, %v10040_v54  ;;  %v6559_v14 = vmul.f32 %v4706_v63, %v10041_v58  ;;  %v883_v19 = vrot.slane %v6371_v37, 2  ;;  %v6568_v45 = vmul.f32 %v4696_v33, %v10042_v7  ;;  %v10044_v54 = vld [vmem:[#allocation54_spill] sm:$0xff]  ;;  %v4700_v41 = vpop.permute.xlu0 %4699 }
  0xea   : > { %4834 = vrot.lane.b32.xlu0 %v6479_v53, %s5514_s7  ;;  %v867_v38 = vrot.slane %v737_v23, 1  ;;  %v948_v24 = vrot.slane %v737_v23, 2  ;;  %v865_v27 = vrot.slane %v6552_v61, 1  ;;  %v946_v11 = vrot.slane %v6552_v61, 2 }
  0xeb   : > { %4809 = vrot.lane.b32.xlu1 %v6341_v17, %s5514_s7  ;;  %10043 = vst [vmem:[#allocation92_spill] sm:$0xff] %v6568_v45  ;;  %v6577_v29 = vmul.f32 %v4697_v9, %v10044_v54  ;;  %v877_v20 = vrot.slane %v743_v48, 1  ;;  %v875_v33 = vrot.slane %v6559_v14, 1  ;;  %v4702_v7 = vunpack.i.h.bf16 %v4700_v41  ;;  %v10050_v9 = vld [vmem:[#allocation66_spill] sm:$0xff] }
  0xec   : > { %v866_v58 = vsel %vm798_vm10, %v864_v59, %v865_v27  ;;  %v868_v56 = vsel %vm798_vm10, %v865_v27, %v867_v38  ;;  %v947_v63 = vsel %vm879_vm11, %v945_v30, %v946_v11  ;;  %v949_v23 = vsel %vm879_vm11, %v946_v11, %v948_v24  ;;  %v10048_v24 = vld [vmem:[#allocation67_spill] sm:$0xff] }
  0xed   : > { %10045 = vst [vmem:[#allocation47_spill] sm:$0xff] %v6577_v29  ;;  %v6579_v37 = vpack.i.bf16 %v868_v56, %v866_v58  ;;  %v4701_v53 = vunpack.i.l.bf16 %v4700_v41  ;;  %v6582_v18 = vpack.i.bf16 %v949_v23, %v947_v63  ;;  %v869_v38 = vrot.slane %v6568_v45, 1 }
  0xee   : > { %v958_v59 = vrot.slane %v743_v48, 2  ;;  %v6588_v27 = vmul.f32 %v4702_v7, %v10048_v24  ;;  %v956_v11 = vrot.slane %v6559_v14, 2  ;;  %v878_v41 = vsel %vm798_vm10, %v875_v33, %v877_v20 }
  0xef   : > { %4819 = vrot.lane.b32.xlu1 %v6375_v62, %s5514_s7  ;;  %10046 = vst [vmem:[#allocation59_spill] sm:$0xff] %v6579_v37  ;;  %10047 = vst [vmem:[#allocation56_spill] sm:$0xff] %v6582_v18  ;;  %4844 = vrot.lane.b32.xlu0 %v6579_v37, %s5514_s7  ;;  %v740_v30 = vmul.f32 %v4701_v53, %v10050_v9  ;;  %v870_v58 = vrot.slane %v6577_v29, 1  ;;  %v950_v56 = vrot.slane %v6568_v45, 2  ;;  %v951_v63 = vrot.slane %v6577_v29, 2  ;;  %v6604_v37 = vpop.permute.xlu1 %4714 }
  0xf0   : > { %10049 = vst [vmem:[#allocation61_spill] sm:$0xff] %v6588_v27  ;;  %v874_v54 = vrot.slane %v6588_v27, 1  ;;  %v955_v7 = vrot.slane %v6588_v27, 2  ;;  %v2424_v53 = vsel %vm798_vm10, %v2422_v22, %v2423_v0  ;;  %v10051_v24 = vrot.slane %v6461_v16, 1  ;;  %10052 = vst [vmem:[#allocation60_spill] sm:$0xff] %v6604_v37 }
  0xf1   : > { %v872_v23 = vrot.slane %v740_v30, 1  ;;  %v953_v48 = vrot.slane %v740_v30, 2  ;;  %v880_v20 = vrot.slane %v6363_v12, 2  ;;  %v4716_v62 = vunpack.i.l.bf16 %v6604_v37 }
  0xf2   : > { %v2426_v9 = vsel %vm798_vm10, %v2423_v0, %v10051_v24  ;;  %v876_v30 = vsel %vm798_vm10, %v874_v54, %v875_v33  ;;  %v959_v22 = vsel %vm879_vm11, %v956_v11, %v958_v59  ;;  %v871_v0 = vsel %vm798_vm10, %v869_v38, %v870_v58 }
  0xf3   : > { %4829 = vrot.lane.b32.xlu1 %v6477_v57, %s5514_s7  ;;  %v881_v57 = vrot.slane %v6327_v25, 2  ;;  %v873_v34 = vsel %vm798_vm10, %v870_v58, %v872_v23  ;;  %v6614_v17 = vpack.i.bf16 %v878_v41, %v876_v30  ;;  %v957_v24 = vsel %vm879_vm11, %v955_v7, %v956_v11  ;;  %v10059_v58 = vld [vmem:[#allocation68_spill] sm:$0xff] }
  0xf4   : > { %v954_v12 = vsel %vm879_vm11, %v951_v63, %v953_v48  ;;  %v10054_v25 = vrot.slane %v6510_v28, 2  ;;  %v10055_v37 = vrot.slane %v6507_v1, 2  ;;  %v6624_v54 = vpack.i.bf16 %v873_v34, %v871_v0  ;;  %v4710_v34 = vpop.permute.xlu0 %4709  ;;  %v10066_v0 = vld [vmem:[#allocation74_spill] sm:$0xff] }
  0xf5   : > { %10053 = vst [vmem:[#allocation53_spill] sm:$0xff] %v6614_v17  ;;  %v884_v23 = vsel %vm879_vm11, %v881_v57, %v883_v19  ;;  %v952_v59 = vsel %vm879_vm11, %v950_v56, %v951_v63  ;;  %4854 = vrot.lane.b32.xlu0 %v6614_v17, %s5514_s7  ;;  %v6632_v11 = vpack.i.bf16 %v959_v22, %v957_v24  ;;  %v10060_v19 = vld [vmem:[#allocation22_spill] sm:$0xff]  ;;  %v4712_v56 = vunpack.i.h.bf16 %v4710_v34  ;;  %v10067_v24 = vld [vmem:[#allocation71_spill] sm:$0xff] }
  0xf6   : > { %v2568_v33 = vsel %vm879_vm11, %v10055_v37, %v10054_v25  ;;  %10056 = vst [vmem:[#allocation54_spill] sm:$0xff] %v6624_v54  ;;  %v6630_v38 = vpack.i.bf16 %v954_v12, %v952_v59  ;;  %v2528_v41 = vadd.f32 %v2424_v53, %v6507_v1  ;;  %v746_v48 = vmul.f32 %v4716_v62, %v10059_v58  ;;  %v10063_v53 = vld [vmem:[#allocation20_spill] sm:$0xff] }
  0xf7   : > { %4839 = vrot.lane.b32.xlu1 %v6532_v43, %s5514_s7  ;;  %10058 = vst [vmem:[#allocation66_spill] sm:$0xff] %v6632_v11  ;;  %v882_v25 = vsel %vm879_vm11, %v880_v20, %v881_v57  ;;  %v2281_v37 = vadd.f32 %v10060_v19, %v10033_v31  ;;  %v4711_v63 = vunpack.i.l.bf16 %v4710_v34  ;;  %v2529_v12 = vadd.f32 %v2426_v9, %v6510_v28  ;;  %v10065_v9 = vld [vmem:[#allocation21_spill] sm:$0xff] }
  0xf8   : > { %10057 = vst [vmem:[#allocation67_spill] sm:$0xff] %v6630_v38  ;;  %v4858_v7 = vpack.i.bf16 %v884_v23, %v882_v25  ;;  %v10061_v30 = vrot.slane %v6461_v16, 2  ;;  %v10062_v1 = vrot.slane %v6510_v28, 2  ;;  %v2283_v22 = vadd.f32 %v10063_v53, %v10034_v8 }
  0xf9   : > { %v6651_v57 = vadd.f32 %v10063_v53, %v6528_v44  ;;  %4864 = vrot.lane.b32.xlu0 %v6299_v2, %s5515_s8  ;;  %v6655_v20 = vadd.f32 %v2568_v33, %v2528_v41  ;;  %v2284_v16 = vadd.f32 %v10065_v9, %v10060_v19  ;;  %v745_v28 = vmul.f32 %v4712_v56, %v10066_v0  ;;  %v10068_v44 = vld [vmem:[#allocation23_spill] sm:$0xff]  ;;  %v10071_v0 = vld [vmem:[#allocation24_spill] sm:$0xff] }
  0xfa   : > { %v2570_v62 = vsel %vm879_vm11, %v10062_v1, %v10061_v30  ;;  %v744_v23 = vmul.f32 %v4711_v63, %v10067_v24  ;;  %v2326_v59 = vadd.f32 %v10060_v19, %v6520_v40  ;;  %v2327_v58 = vadd.f32 %v10068_v44, %v6412_v49 }
  0xfb   : > { %4849 = vrot.lane.b32.xlu1 %v6624_v54, %s5514_s7  ;;  %10064 = vst [vmem:[#allocation68_spill] sm:$0xff] %v6655_v20  ;;  %v966_v25 = vrot.slane %v746_v48, 1  ;;  %v6667_v34 = vadd.f32 %v10065_v9, %v2281_v37  ;;  %v971_v33 = vrot.slane %v746_v48, 2  ;;  %v964_v56 = vrot.slane %v745_v28, 1  ;;  %s4469_s7 = sshll.u32 %s5569_s19, 8  ;;  %s9397_s19 = scalar_lea.sflag [#allocation3], %s196_s30 }
  0xfc   : > { %v963_v41 = vrot.slane %v744_v23, 1  ;;  %v968_v30 = vrot.slane %v744_v23, 2  ;;  %v969_v63 = vrot.slane %v745_v28, 2  ;;  %v6671_v1 = vpack.i.bf16 %v745_v28, %v744_v23 }
  0xfd   : > { %4874 = vrot.lane.b32.xlu0 %v6303_v35, %s5515_s8  ;;  %v2432_v40 = vrot.slane %v6651_v57, 1  ;;  %v2282_v49 = vadd.f32 %v10068_v44, %v10011_v13  ;;  %v6679_v37 = vadd.f32 %v10071_v0, %v2284_v16  ;;  %v2428_v48 = vrot.slane %v2326_v59, 1  ;;  %v10072_v13 = vld [vmem:[#allocation26_spill] sm:$0xff]  ;;  %v10078_v35 = vld [vmem:[#allocation25_spill] sm:$0xff] }
  0xfe   : > { %10069 = vst [vmem:[#allocation74_spill] sm:$0xff] %v6671_v1  ;;  %v965_v24 = vsel %vm798_vm10, %v963_v41, %v964_v56  ;;  %v967_v19 = vsel %vm798_vm10, %v964_v56, %v966_v25  ;;  %v2430_v28 = vrot.slane %v2327_v58, 1  ;;  %v2433_v23 = vrot.slane %v6667_v34, 1 }
  0xff   : > { %4859 = vrot.lane.b32.xlu1 %v4858_v7, %s5515_s8  ;;  %v6673_v7 = vadd.f32 %v2570_v62, %v2529_v12  ;;  %v970_v12 = vsel %vm879_vm11, %v968_v30, %v969_v63  ;;  %v972_v62 = vsel %vm879_vm11, %v969_v63, %v971_v33  ;;  %v2572_v8 = vrot.slane %v2326_v59, 2  ;;  %v10074_v30 = vld [vmem:[#allocation27_spill] sm:$0xff] }
 0x100   : > { %v2285_v16 = vadd.f32 %v10072_v13, %v10068_v44  ;;  %v6692_v31 = vpack.i.bf16 %v967_v19, %v965_v24  ;;  %v2576_v41 = vrot.slane %v6651_v57, 2  ;;  %v2287_v25 = vadd.f32 %v10071_v0, %v10065_v9 }
 0x101   : > { %10070 = vst [vmem:[#allocation71_spill] sm:$0xff] %v6673_v7  ;;  %4884 = vrot.lane.b32.xlu0 %v6305_v32, %s5515_s8  ;;  %v2330_v56 = vadd.f32 %v10072_v13, %v2282_v49  ;;  %v2331_v33 = vadd.f32 %v10074_v30, %v2283_v22  ;;  %v10075_v63 = vrot.slane %v6535_v55, 1  ;;  %v2286_v19 = vadd.f32 %v10074_v30, %v10063_v53  ;;  %v10080_v53 = vld [vmem:[#allocation31_spill] sm:$0xff] }
 0x102   : > { %10073 = vst [vmem:[#allocation135_spill] sm:$0xff] %v6692_v31  ;;  %v6706_v24 = vpack.i.bf16 %v972_v62, %v970_v12  ;;  %v2431_v20 = vsel %vm798_vm10, %v2428_v48, %v2430_v28  ;;  %v2574_v7 = vrot.slane %v2327_v58, 2  ;;  %v2577_v9 = vrot.slane %v6667_v34, 2  ;;  %v10079_v62 = vld [vmem:[#allocation30_spill] sm:$0xff] }
 0x103   : > { %4869 = vrot.lane.b32.xlu1 %v6297_v3, %s5515_s8  ;;  %v2429_v44 = vsel %vm798_vm10, %v10075_v63, %v2428_v48  ;;  %v2434_v49 = vsel %vm798_vm10, %v2432_v40, %v2433_v23  ;;  %v10077_v22 = vrot.slane %v6535_v55, 2  ;;  %v2333_v63 = vadd.f32 %v10078_v35, %v2285_v16 }
 0x104   : > { %10076 = vst [vmem:[#allocation136_spill] sm:$0xff] %v6706_v24  ;;  %v2530_v12 = vadd.f32 %v2429_v44, %v6535_v55  ;;  %v2288_v58 = vadd.f32 %v10078_v35, %v10072_v13  ;;  %v2435_v48 = vrot.slane %v2330_v56, 1  ;;  %v2437_v28 = vrot.slane %v2331_v33, 1 }
 0x105   : > { %v2573_v32 = vsel %vm879_vm11, %v10077_v22, %v2572_v8  ;;  %4894 = vrot.lane.b32.xlu0 %v6347_v47, %s5515_s8  ;;  %v2531_v40 = vadd.f32 %v2431_v20, %v2326_v59  ;;  %v2334_v22 = vadd.f32 %v10079_v62, %v2286_v19  ;;  %v2335_v24 = vadd.f32 %v10080_v53, %v2287_v25  ;;  %v10082_v25 = vld [vmem:[#allocation28_spill] sm:$0xff] }
 0x106   : > { %v2575_v16 = vsel %vm879_vm11, %v2572_v8, %v2574_v7  ;;  %v2582_v3 = vrot.slane %v6679_v37, 2  ;;  %v2579_v47 = vrot.slane %v2330_v56, 2  ;;  %v2532_v55 = vadd.f32 %v2434_v49, %v6651_v57 }
 0x107   : > { %4879 = vrot.lane.b32.xlu1 %v6301_v5, %s5515_s8  ;;  %v2438_v5 = vrot.slane %v6679_v37, 1  ;;  %v2578_v44 = vsel %vm879_vm11, %v2576_v41, %v2577_v9  ;;  %v2440_v13 = vrot.slane %v2333_v63, 1  ;;  %v2581_v2 = vrot.slane %v2331_v33, 2 }
 0x108   : > { %v2436_v20 = vsel %vm798_vm10, %v2433_v23, %v2435_v48  ;;  %v2336_v8 = vadd.f32 %v10082_v25, %v2288_v58  ;;  %v6738_v7 = vadd.f32 %v2575_v16, %v2531_v40  ;;  %v2442_v57 = vrot.slane %v2334_v22, 1 }
 0x109   : > { %4904 = vrot.lane.b32.xlu0 %v6442_v50, %s5515_s8  ;;  %v2439_v59 = vsel %vm798_vm10, %v2437_v28, %v2438_v5  ;;  %v2443_v41 = vrot.slane %v2335_v24, 1  ;;  %v2580_v56 = vsel %vm879_vm11, %v2577_v9, %v2579_v47  ;;  %v2584_v19 = vrot.slane %v2333_v63, 2  ;;  %v10086_v63 = vld [vmem:[#allocation36_spill] sm:$0xff] }
 0x10a   : > { %10083 = vst [vmem:[#allocation138_spill] sm:$0xff] %v6738_v7  ;;  %v2441_v49 = vsel %vm798_vm10, %v2438_v5, %v2440_v13  ;;  %v2533_v23 = vadd.f32 %v2436_v20, %v6667_v34  ;;  %v2583_v58 = vsel %vm879_vm11, %v2581_v2, %v2582_v3  ;;  %v2445_v48 = vrot.slane %v2336_v8, 1  ;;  %v10084_v13 = vld [vmem:[#allocation29_spill] sm:$0xff]  ;;  %v10104_v7 = vld [vmem:[#allocation55_spill] sm:$0xff] }
 0x10b   : > { %4889 = vrot.lane.b32.xlu1 %v6345_v4, %s5515_s8  ;;  %v6731_v4 = vadd.f32 %v2573_v32, %v2530_v12  ;;  %v2291_v32 = vadd.f32 %v10082_v25, %v10078_v35  ;;  %v2534_v12 = vadd.f32 %v2439_v59, %v2331_v33  ;;  %v2289_v28 = vadd.f32 %v10079_v62, %v10074_v30 }
 0x10c   : > { %v2586_v40 = vrot.slane %v2334_v22, 2  ;;  %v2587_v47 = vrot.slane %v2335_v24, 2  ;;  %v2290_v5 = vadd.f32 %v10080_v53, %v10071_v0  ;;  %v2292_v9 = vadd.f32 %v10084_v13, %v10079_v62 }
 0x10d   : > { %10081 = vst [vmem:[#allocation137_spill] sm:$0xff] %v6731_v4  ;;  %4914 = vrot.lane.b32.xlu0 %v6493_v21, %s5515_s8  ;;  %v2444_v2 = vsel %vm798_vm10, %v2442_v57, %v2443_v41  ;;  %v6757_v34 = vadd.f32 %v2578_v44, %v2532_v55  ;;  %v2535_v33 = vadd.f32 %v2441_v49, %v6679_v37  ;;  %v2589_v30 = vrot.slane %v2336_v8, 2  ;;  %v10089_v57 = vld [vmem:[#allocation33_spill] sm:$0xff]  ;;  %v10103_v4 = vld [vmem:[#allocation52_spill] sm:$0xff] }
 0x10e   : > { %v2293_v16 = vadd.f32 %v10086_v63, %v10080_v53  ;;  %v2585_v20 = vsel %vm879_vm11, %v2582_v3, %v2584_v19  ;;  %v6763_v59 = vadd.f32 %v2580_v56, %v2533_v23  ;;  %v6765_v35 = vadd.f32 %v2583_v58, %v2534_v12  ;;  %v10090_v19 = vld [vmem:[#allocation38_spill] sm:$0xff]  ;;  %v10099_v53 = vld [vmem:[#allocation45_spill] sm:$0xff] }
 0x10f   : > { %4899 = vrot.lane.b32.xlu1 %v6386_v42, %s5515_s8  ;;  %10085 = vst [vmem:[#allocation139_spill] sm:$0xff] %v6757_v34  ;;  %v2337_v62 = vadd.f32 %v10084_v13, %v2289_v28  ;;  %v2446_v55 = vsel %vm798_vm10, %v2443_v41, %v2445_v48  ;;  %v2536_v44 = vadd.f32 %v2444_v2, %v2334_v22  ;;  %v10092_v12 = vld [vmem:[#allocation34_spill] sm:$0xff]  ;;  %v10093_v28 = vld [vmem:[#allocation44_spill] sm:$0xff] }
 0x110   : > { %10087 = vst [vmem:[#allocation140_spill] sm:$0xff] %v6763_v59  ;;  %10088 = vst [vmem:[#allocation141_spill] sm:$0xff] %v6765_v35  ;;  %v2588_v37 = vsel %vm879_vm11, %v2586_v40, %v2587_v47  ;;  %v6775_v3 = vadd.f32 %v10089_v57, %v2292_v9  ;;  %v2338_v56 = vadd.f32 %v10086_v63, %v2290_v5 }
 0x111   : > { %4924 = vrot.lane.b32.xlu0 %v6582_v18, %s5515_s8  ;;  %v2339_v8 = vadd.f32 %v10090_v19, %v2291_v32  ;;  %v6779_v49 = vadd.f32 %v2585_v20, %v2535_v33  ;;  %v2294_v23 = vadd.f32 %v10090_v19, %v10082_v25  ;;  %v6784_v41 = vadd.f32 %v10092_v12, %v2293_v16 }
 0x112   : > { %v2537_v22 = vadd.f32 %v2446_v55, %v2335_v24  ;;  %v2295_v58 = vadd.f32 %v10089_v57, %v10084_v13  ;;  %v2296_v48 = vadd.f32 %v10092_v12, %v10086_v63  ;;  %v2297_v40 = vadd.f32 %v10093_v28, %v10090_v19  ;;  %v10100_v13 = vld [vmem:[#allocation43_spill] sm:$0xff] }
 0x113   : > { %4909 = vrot.lane.b32.xlu1 %v6488_v26, %s5515_s8  ;;  %10091 = vst [vmem:[#allocation142_spill] sm:$0xff] %v6779_v49  ;;  %v2447_v32 = vrot.slane %v2337_v62, 1  ;;  %v2590_v5 = vsel %vm879_vm11, %v2587_v47, %v2589_v30  ;;  %v2591_v9 = vrot.slane %v2337_v62, 2  ;;  %v6795_v2 = vadd.f32 %v2588_v37, %v2536_v44  ;;  %v10098_v44 = vld [vmem:[#allocation42_spill] sm:$0xff] }
 0x114   : > { %v2452_v24 = vrot.slane %v6775_v3, 1  ;;  %v2448_v33 = vrot.slane %v2338_v56, 1  ;;  %v2450_v16 = vrot.slane %v2339_v8, 1  ;;  %v6802_v20 = vpack.i.bf16 %v6497_v10, %v6500_v39 }
 0x115   : > { %4934 = vrot.lane.b32.xlu0 %v6632_v11, %s5515_s8  ;;  %10094 = vst [vmem:[#allocation143_spill] sm:$0xff] %v6795_v2  ;;  %v2453_v55 = vrot.slane %v6784_v41, 1  ;;  %v2592_v25 = vrot.slane %v2338_v56, 2  ;;  %v2342_v19 = vadd.f32 %v10093_v28, %v2294_v23  ;;  %v6808_v30 = vpack.i.bf16 %v6552_v61, %v6546_v46 }
 0x116   : > { %10095 = vst [vmem:[#allocation144_spill] sm:$0xff] %v6802_v20  ;;  %v6810_v47 = vadd.f32 %v2590_v5, %v2537_v22  ;;  %v2344_v37 = vadd.f32 %v10098_v44, %v2296_v48  ;;  %v2343_v63 = vadd.f32 %v10099_v53, %v2295_v58  ;;  %v2345_v0 = vadd.f32 %v10100_v13, %v2297_v40 }
 0x117   : > { %4919 = vrot.lane.b32.xlu1 %v6548_v60, %s5515_s8  ;;  %10096 = vst [vmem:[#allocation145_spill] sm:$0xff] %v6808_v30  ;;  %v2596_v2 = vrot.slane %v6775_v3, 2  ;;  %v2594_v35 = vrot.slane %v2339_v8, 2  ;;  %v2299_v23 = vadd.f32 %v10098_v44, %v10092_v12  ;;  %v2298_v49 = vadd.f32 %v10099_v53, %v10089_v57 }
 0x118   : > { %10097 = vst [vmem:[#allocation146_spill] sm:$0xff] %v6810_v47  ;;  %v2449_v22 = vsel %vm798_vm10, %v2447_v32, %v2448_v33  ;;  %v2451_v58 = vsel %vm798_vm10, %v2448_v33, %v2450_v16  ;;  %v2597_v48 = vrot.slane %v6784_v41, 2  ;;  %v6829_v40 = vpack.i.bf16 %v6577_v29, %v6568_v45 }
 0x119   : > { %4939 = vrot.lane.b32.xlu0 %v6802_v20, %s5513_s6  ;;  %v2454_v8 = vsel %vm798_vm10, %v2452_v24, %v2453_v55  ;;  %v2593_v5 = vsel %vm879_vm11, %v2591_v9, %v2592_v25  ;;  %v2455_v12 = vrot.slane %v2342_v19, 1  ;;  %v6835_v57 = vpack.i.bf16 %v6559_v14, %v6588_v27 }
 0x11a   : > { %10101 = vst [vmem:[#allocation147_spill] sm:$0xff] %v6829_v40  ;;  %v2458_v47 = vrot.slane %v2344_v37, 1  ;;  %v2300_v32 = vadd.f32 %v10100_v13, %v10093_v28  ;;  %v2457_v33 = vrot.slane %v2343_v63, 1  ;;  %v2460_v16 = vrot.slane %v2345_v0, 1 }
 0x11b   : > { %4929 = vrot.lane.b32.xlu1 %v6630_v38, %s5515_s8  ;;  %10102 = vst [vmem:[#allocation148_spill] sm:$0xff] %v6835_v57  ;;  %v2538_v34 = vadd.f32 %v2449_v22, %v2337_v62  ;;  %v2539_v59 = vadd.f32 %v2451_v58, %v2338_v56  ;;  %v2346_v24 = vadd.f32 %v10103_v4, %v2298_v49  ;;  %v2599_v28 = vrot.slane %v2342_v19, 2  ;;  %v10105_v49 = vld [vmem:[#allocation49_spill] sm:$0xff] }
 0x11c   : > { %v6843_v9 = vadd.f32 %v10104_v7, %v2299_v23  ;;  %v2595_v45 = vsel %vm879_vm11, %v2592_v25, %v2594_v35  ;;  %v2602_v20 = vrot.slane %v2344_v37, 2  ;;  %v2456_v29 = vsel %vm798_vm10, %v2453_v55, %v2455_v12 }
 0x11d   : > { %4949 = vrot.lane.b32.xlu0 %v6829_v40, %s5513_s6  ;;  %v2601_v27 = vrot.slane %v2343_v63, 2  ;;  %v2604_v40 = vrot.slane %v2345_v0, 2  ;;  %v2459_v62 = vsel %vm798_vm10, %v2457_v33, %v2458_v47  ;;  %v2461_v56 = vsel %vm798_vm10, %v2458_v47, %v2460_v16  ;;  %v6871_v33 = vpop.permute.xlu0 %4719 }
 0x11e   : > { %v2348_v23 = vadd.f32 %v10105_v49, %v2300_v32  ;;  %v2301_v22 = vadd.f32 %v10103_v4, %v10099_v53  ;;  %v2598_v35 = vsel %vm879_vm11, %v2596_v2, %v2597_v48  ;;  %v2302_v25 = vadd.f32 %v10104_v7, %v10098_v44 }
 0x11f   : > { %4944 = vrot.lane.b32.xlu1 %v6808_v30, %s5513_s6  ;;  %v2540_v30 = vadd.f32 %v2454_v8, %v6775_v3  ;;  %v2462_v3 = vrot.slane %v2346_v24, 1  ;;  %v2463_v0 = vrot.slane %v6843_v9, 1  ;;  %v6863_v19 = vadd.f32 %v2593_v5, %v2538_v34 }
 0x120   : > { %v2541_v12 = vadd.f32 %v2456_v29, %v6784_v41  ;;  %v2600_v55 = vsel %vm879_vm11, %v2597_v48, %v2599_v28  ;;  %v2303_v47 = vadd.f32 %v10105_v49, %v10100_v13  ;;  %v2542_v2 = vadd.f32 %v2459_v62, %v2343_v63  ;;  %v10112_v62 = vld [vmem:[#allocation63_spill] sm:$0xff] }
 0x121   : > { %4959 = vrot.lane.b32.xlu0 %v6671_v1, %s5513_s6  ;;  %10106 = vst [vmem:[#allocation149_spill] sm:$0xff] %v6863_v19  ;;  %v2543_v58 = vadd.f32 %v2461_v56, %v2344_v37  ;;  %v2603_v8 = vsel %vm879_vm11, %v2601_v27, %v2602_v20  ;;  %v2605_v32 = vsel %vm879_vm11, %v2602_v20, %v2604_v40  ;;  %v2465_v16 = vrot.slane %v2348_v23, 1  ;;  %v10108_v27 = vld [vmem:[#allocation62_spill] sm:$0xff] }
 0x122   : > { %v2606_v29 = vrot.slane %v2346_v24, 2  ;;  %v2464_v63 = vsel %vm798_vm10, %v2462_v3, %v2463_v0  ;;  %v2607_v41 = vrot.slane %v6843_v9, 2  ;;  %v2305_v28 = vadd.f32 %v10108_v27, %v10104_v7 }
 0x123   : > { %4954 = vrot.lane.b32.xlu1 %v6835_v57, %s5513_s6  ;;  %v2350_v20 = vadd.f32 %v10108_v27, %v2302_v25  ;;  %v6887_v37 = vadd.f32 %v2595_v45, %v2539_v59  ;;  %v6889_v48 = vadd.f32 %v2598_v35, %v2540_v30  ;;  %v6891_v40 = vadd.f32 %v2600_v55, %v2541_v12  ;;  %v6900_v25 = vpop.permute.xlu0 %4729  ;;  %v10115_v30 = vld [vmem:[#allocation57_spill] sm:$0xff]  ;;  %v10116_v55 = vld [vmem:[#allocation58_spill] sm:$0xff] }
 0x124   : > { %v2351_v56 = vadd.f32 %v10112_v62, %v2303_v47  ;;  %v6896_v3 = vadd.f32 %v2605_v32, %v2543_v58  ;;  %v2306_v7 = vadd.f32 %v10112_v62, %v10105_v49  ;;  %v2466_v13 = vsel %vm798_vm10, %v2463_v0, %v2465_v16 }
 0x125   : > { %4969 = vrot.lane.b32.xlu0 %v6255_v52, %s5516_s9  ;;  %10109 = vst [vmem:[#allocation150_spill] sm:$0xff] %v6887_v37  ;;  %10110 = vst [vmem:[#allocation151_spill] sm:$0xff] %v6889_v48  ;;  %v2544_v59 = vadd.f32 %v2464_v63, %v2346_v24  ;;  %v2608_v12 = vsel %vm879_vm11, %v2606_v29, %v2607_v41  ;;  %v6911_v47 = vadd.f32 %v10116_v55, %v2305_v28  ;;  %v10118_v29 = vld [vmem:[#allocation70_spill] sm:$0xff]  ;;  %v10119_v28 = vld [vmem:[#allocation64_spill] sm:$0xff] }
 0x126   : > { %10111 = vst [vmem:[#allocation152_spill] sm:$0xff] %v6891_v40  ;;  %10114 = vst [vmem:[#allocation154_spill] sm:$0xff] %v6896_v3  ;;  %v2470_v58 = vrot.slane %v2351_v56, 1  ;;  %v2545_v16 = vadd.f32 %v2466_v13, %v6843_v9  ;;  %v2310_v63 = vadd.f32 %v10118_v29, %v10115_v30  ;;  %v10122_v13 = vld [vmem:[#allocation116_spill] sm:$0xff]  ;;  %v6940_v3 = vpop.permute.xlu1 %4724  ;;  %v10125_v40 = vld [vmem:[#allocation75_spill] sm:$0xff] }
 0x127   : > { %4964 = vrot.lane.b32.xlu1 %v6257_v51, %s5516_s9  ;;  %v10107_v51 = vld [vmem:[#allocation50_spill] sm:$0xff]  ;;  %v6926_v49 = vpop.permute.xlu0 %4739  ;;  %v6929_v53 = vadd.f32 %v2608_v12, %v2544_v59  ;;  %v2473_v9 = vrot.slane %v6911_v47, 1  ;;  %v2614_v59 = vrot.slane %v2351_v56, 2  ;;  %v10126_v37 = vld [vmem:[#allocation76_spill] sm:$0xff] }
 0x128   : > { %v2304_v34 = vadd.f32 %v10107_v51, %v10103_v4  ;;  %v6876_v5 = vadd.f32 %v10107_v51, %v2301_v22  ;;  %v6894_v22 = vadd.f32 %v2603_v8, %v2542_v2  ;;  %v2609_v4 = vrot.slane %v2348_v23, 2  ;;  %v10117_v8 = vld [vmem:[#allocation69_spill] sm:$0xff]  ;;  %v10128_v56 = vld [vmem:[#allocation124_spill] sm:$0xff] }
 0x129   : > { %4979 = vrot.lane.b32.xlu0 %v6259_v36, %s5516_s9  ;;  %v2308_v23 = vadd.f32 %v10116_v55, %v10108_v27  ;;  %v2468_v2 = vrot.slane %v2350_v20, 1  ;;  %v2307_v24 = vadd.f32 %v10115_v30, %v10107_v51  ;;  %v2309_v32 = vadd.f32 %v10117_v8, %v10112_v62  ;;  %10120 = vst [vmem:[#allocation155_spill] sm:$0xff] %v6929_v53  ;;  %v10127_v36 = vld [vmem:[#allocation72_spill] sm:$0xff] }
 0x12a   : > { %10113 = vst [vmem:[#allocation153_spill] sm:$0xff] %v6894_v22  ;;  %v2467_v45 = vrot.slane %v6876_v5, 1  ;;  %v2352_v35 = vadd.f32 %v10115_v30, %v2304_v34  ;;  %v2611_v0 = vrot.slane %v6876_v5, 2  ;;  %v2354_v34 = vadd.f32 %v10117_v8, %v2306_v7  ;;  %v10121_v22 = vld [vmem:[#allocation65_spill] sm:$0xff] }
 0x12b   : > { %4974 = vrot.lane.b32.xlu1 %v6269_v15, %s5516_s9  ;;  %v2311_v27 = vadd.f32 %v10119_v28, %v10116_v55  ;;  %v2610_v44 = vsel %vm879_vm11, %v2607_v41, %v2609_v4  ;;  %v2312_v62 = vadd.f32 %v10121_v22, %v10117_v8  ;;  %v2612_v30 = vrot.slane %v2350_v20, 2  ;;  %v10123_v4 = vld [vmem:[#allocation117_spill] sm:$0xff] }
 0x12c   : > { %v2472_v51 = vrot.slane %v2352_v35, 1  ;;  %v2469_v7 = vsel %vm798_vm10, %v2467_v45, %v2468_v2  ;;  %v6938_v55 = vadd.f32 %v10119_v28, %v2308_v23  ;;  %v2471_v41 = vsel %vm798_vm10, %v2468_v2, %v2470_v58 }
 0x12d   : > { %4989 = vrot.lane.b32.xlu0 %v10122_v13, %s5516_s9  ;;  %v2355_v12 = vadd.f32 %v10118_v29, %v2307_v24  ;;  %v2357_v53 = vadd.f32 %v10121_v22, %v2309_v32  ;;  %v6947_v48 = vadd.f32 %v2610_v44, %v2545_v16  ;;  %v2475_v45 = vrot.slane %v2354_v34, 1  ;;  %v6963_v16 = vpop.permute.xlu0 %4749 }
 0x12e   : > { %v2358_v19 = vadd.f32 %v10125_v40, %v2310_v63  ;;  %v6951_v23 = vadd.f32 %v10126_v37, %v2311_v27  ;;  %v2616_v13 = vrot.slane %v2352_v35, 2  ;;  %v2360_v2 = vadd.f32 %v10127_v36, %v2312_v62  ;;  %v10129_v27 = vld [vmem:[#allocation130_spill] sm:$0xff] }
 0x12f   : > { %4984 = vrot.lane.b32.xlu1 %v6295_v6, %s5516_s9  ;;  %10124 = vst [vmem:[#allocation156_spill] sm:$0xff] %v6947_v48  ;;  %v2546_v6 = vadd.f32 %v2469_v7, %v6876_v5  ;;  %v2474_v24 = vsel %vm798_vm10, %v2472_v51, %v2473_v9  ;;  %v2547_v44 = vadd.f32 %v2471_v41, %v2350_v20  ;;  %v2478_v32 = vrot.slane %v6938_v55, 1 }
 0x130   : > { %v2613_v58 = vsel %vm879_vm11, %v2611_v0, %v2612_v30  ;;  %v2615_v5 = vsel %vm879_vm11, %v2612_v30, %v2614_v59  ;;  %v2477_v63 = vrot.slane %v2355_v12, 1  ;;  %v2480_v7 = vrot.slane %v2357_v53, 1  ;;  %v6969_v0 = vpop.permute.xlu1 %4734  ;;  %v10131_v30 = vld [vmem:[#allocation131_spill] sm:$0xff] }
 0x131   : > { %4999 = vrot.lane.b32.xlu0 %v10128_v56, %s5516_s9  ;;  %v2619_v62 = vrot.slane %v2354_v34, 2  ;;  %v2622_v48 = vrot.slane %v6938_v55, 2  ;;  %v2476_v56 = vsel %vm798_vm10, %v2473_v9, %v2475_v45  ;;  %v2482_v51 = vrot.slane %v2358_v19, 1  ;;  %v10133_v45 = vld [vmem:[#allocation132_spill] sm:$0xff] }
 0x132   : > { %v2483_v20 = vrot.slane %v6951_v23, 1  ;;  %v2548_v41 = vadd.f32 %v2474_v24, %v2352_v35  ;;  %v2485_v52 = vrot.slane %v2360_v2, 1  ;;  %v6976_v59 = vadd.f32 %v2615_v5, %v2547_v44 }
 0x133   : > { %4994 = vrot.lane.b32.xlu1 %v10123_v4, %s5516_s9  ;;  %v2617_v4 = vrot.slane %v6911_v47, 2  ;;  %v2621_v34 = vrot.slane %v2355_v12, 2  ;;  %v2624_v1 = vrot.slane %v2357_v53, 2  ;;  %v2745_v9 = vmax.f32 %v10118_v29, %v10125_v40 }
 0x134   : > { %10132 = vst [vmem:[#allocation157_spill] sm:$0xff] %v6976_v59  ;;  %v2479_v35 = vsel %vm798_vm10, %v2477_v63, %v2478_v32  ;;  %v2626_v44 = vrot.slane %v2358_v19, 2  ;;  %v2627_v53 = vrot.slane %v6951_v23, 2  ;;  %v2746_v5 = vmax.f32 %v10119_v28, %v10126_v37  ;;  %v6992_v40 = vpop.permute.xlu1 %4744  ;;  %v10165_v59 = vld [vmem:[#allocation90_spill] sm:$0xff] }
 0x135   : > { %v2618_v15 = vsel %vm879_vm11, %v2616_v13, %v2617_v4  ;;  %5009 = vrot.lane.b32.xlu0 %v10131_v30, %s5516_s9  ;;  %v2549_v13 = vadd.f32 %v2476_v56, %v6911_v47  ;;  %v2620_v24 = vsel %vm879_vm11, %v2617_v4, %v2619_v62  ;;  %v2629_v29 = vrot.slane %v2360_v2, 2  ;;  %v10200_v30 = vld [vmem:[#allocation122_spill] sm:$0xff] }
 0x136   : > { %v4722_v63 = vunpack.i.h.bf16 %v6871_v33  ;;  %v2550_v47 = vadd.f32 %v2479_v35, %v2355_v12  ;;  %v2744_v56 = vmax.f32 %v10117_v8, %v10121_v22  ;;  %v2623_v2 = vsel %vm879_vm11, %v2621_v34, %v2622_v48  ;;  %v10139_v22 = vld [vmem:[#allocation77_spill] sm:$0xff] }
 0x137   : > { %5004 = vrot.lane.b32.xlu1 %v10129_v27, %s5516_s9  ;;  %v6972_v27 = vadd.f32 %v2613_v58, %v2546_v6  ;;  %v2481_v6 = vsel %vm798_vm10, %v2478_v32, %v2480_v7  ;;  %v2484_v58 = vsel %vm798_vm10, %v2482_v51, %v2483_v20  ;;  %v4721_v32 = vunpack.i.l.bf16 %v6871_v33  ;;  %v10134_v7 = vld [vmem:[#allocation73_spill] sm:$0xff] }
 0x138   : > { %v2551_v4 = vadd.f32 %v2481_v6, %v6938_v55  ;;  %v7003_v62 = vmax.f32 %v2745_v9, %v10134_v7  ;;  %v2625_v33 = vsel %vm879_vm11, %v2622_v48, %v2624_v1  ;;  %v2552_v51 = vadd.f32 %v2484_v58, %v2358_v19  ;;  %v5446_v1 = vld [vmem:[%s5604_s5 + $0x1a8] sm:$0x3]  ;;  %v5447_v48 = vld [vmem:[%s5604_s5 + $0x1a0] sm:$0xff] }
 0x139   : > { %10130 = vst [vmem:[#allocation72_spill] sm:$0xff] %v6972_v27  ;;  %v2486_v27 = vsel %vm798_vm10, %v2483_v20, %v2485_v52  ;;  %5019 = vrot.lane.b32.xlu0 %v6532_v43, %s5516_s9  ;;  %v10136_v52 = vld [vmem:[#allocation59_spill] sm:$0xff]  ;;  %v10137_v20 = vld [vmem:[#allocation60_spill] sm:$0xff]  ;;  %v7010_v35 = vadd.f32 %v2618_v15, %v2548_v41  ;;  %v2628_v6 = vsel %vm879_vm11, %v2626_v44, %v2627_v53  ;;  %v7036_v41 = vpop.permute.xlu1 %4754 }
 0x13a   : > { %10135 = vst [vmem:[#allocation73_spill] sm:$0xff] %v7003_v62  ;;  %v4717_v12 = vunpack.i.h.bf16 %v10137_v20  ;;  %v2553_v55 = vadd.f32 %v2486_v27, %v6951_v23  ;;  %v7015_v37 = vmax.f32 %v2746_v5, %v10139_v22  ;;  %v7019_v7 = vadd.f32 %v2620_v24, %v2549_v13  ;;  %v5448_v24 = vld [vmem:[%s5604_s5 + $0x198] sm:$0xff]  ;;  %v10148_v20 = vld [vmem:[#allocation109_spill] sm:$0xff]  ;;  %v10160_v62 = vld [vmem:[#allocation14_spill] sm:$0xff]  ;;  %s4385_s5 = sshll.u32 %s196_s30, 4 }
 0x13b   : > { %5014 = vrot.lane.b32.xlu1 %v10133_v45, %s5516_s9  ;;  %10138 = vst [vmem:[#allocation60_spill] sm:$0xff] %v7010_v35  ;;  %v2630_v34 = vsel %vm879_vm11, %v2627_v53, %v2629_v29  ;;  %v749_v19 = vmul.f32 %v5446_v1, %v4722_v63  ;;  %v7024_v58 = vmul.f32 %v5447_v48, %v4721_v32  ;;  %v10149_v1 = vld [vmem:[#allocation108_spill] sm:$0xff]  ;;  %v10155_v29 = vld [vmem:[#allocation17_spill] sm:$0xff]  ;;  %v10158_v32 = vld [vmem:[#allocation110_spill] sm:$0xff]  ;;  %vm3132_vm2 = vcmp.eq.f32.partialorder %v10160_v62, 1.0  ;;  %s198_s6 = scalar_lea.vmem [#allocation2], %s4385_s5 }
 0x13c   : > { %10140 = vst [vmem:[#allocation77_spill] sm:$0xff] %v7015_v37  ;;  %10141 = vst [vmem:[#allocation158_spill] sm:$0xff] %v7019_v7  ;;  %v7028_v15 = vadd.f32 %v2623_v2, %v2550_v47  ;;  %v7030_v23 = vadd.f32 %v2625_v33, %v2551_v4  ;;  %v7033_v22 = vmax.f32 %v2744_v56, %v10127_v36  ;;  %vm3133_vm15 = vcmp.eq.f32.partialorder %v10155_v29, 1.0  ;;  %v10163_v35 = vld [vmem:[#allocation88_spill] sm:$0xff] }
 0x13d   : > { %5029 = vrot.lane.b32.xlu0 %v6624_v54, %s5516_s9  ;;  %v7041_v13 = vadd.f32 %v2628_v6, %v2552_v51  ;;  %v7044_v44 = vmul.f32 %v5448_v24, %v4717_v12  ;;  %v7046_v53 = vadd.f32 %v2630_v34, %v2553_v55  ;;  %v979_v4 = vrot.slane %v749_v19, 1  ;;  %v10154_v51 = vld [vmem:[#allocation111_spill] sm:$0xff] }
 0x13e   : > { %10142 = vst [vmem:[#allocation159_spill] sm:$0xff] %v7028_v15  ;;  %10143 = vst [vmem:[#allocation160_spill] sm:$0xff] %v7030_v23  ;;  %v984_v56 = vrot.slane %v749_v19, 2  ;;  %v977_v2 = vrot.slane %v7024_v58, 1  ;;  %v982_v33 = vrot.slane %v7024_v58, 2  ;;  %vm3197_vm0 = vcmp.eq.f32.partialorder %v10155_v29, 2.0 }
 0x13f   : > { %5024 = vrot.lane.b32.xlu1 %v10136_v52, %s5516_s9  ;;  %10144 = vst [vmem:[#allocation161_spill] sm:$0xff] %v7033_v22  ;;  %10145 = vst [vmem:[#allocation162_spill] sm:$0xff] %v7041_v13  ;;  %v976_v55 = vrot.slane %v7044_v44, 1  ;;  %v981_v6 = vrot.slane %v7044_v44, 2  ;;  %vm3261_vm1 = vcmp.eq.f32.partialorder %v10155_v29, 3.0  ;;  %vm3325_vm3 = vcmp.eq.f32.partialorder %v10155_v29, 4.0 }
 0x140   : > { %v6982_v57 = vpop.permute.xlu0 %4759  ;;  %10146 = vst [vmem:[#allocation163_spill] sm:$0xff] %v7046_v53  ;;  %v7070_v48 = vsel %vm798_vm10, %v977_v2, %v979_v4  ;;  %v10162_v4 = vld [vmem:[#allocation119_spill] sm:$0xff]  ;;  %vm3196_vm4 = vcmp.eq.f32.partialorder %v10160_v62, 2.0  ;;  %v10164_v15 = vld [vmem:[#allocation86_spill] sm:$0xff]  ;;  %vm3389_vm5 = vcmp.eq.f32.partialorder %v10155_v29, 5.0  ;;  %vm3260_vm6 = vcmp.eq.f32.partialorder %v10160_v62, 3.0 }
 0x141   : > { %5039 = vrot.lane.b32.xlu0 %v6692_v31, %s5516_s9  ;;  %v7067_v19 = vsel %vm798_vm10, %v976_v55, %v977_v2  ;;  %10151 = vst [vmem:[#allocation164_spill] sm:$0xff] %v7070_v48  ;;  %v7073_v24 = vsel %vm879_vm11, %v981_v6, %v982_v33  ;;  %v10157_v55 = vmov 0.0   ;;  %vm3453_vm8 = vcmp.eq.f32.partialorder %v10155_v29, 6.0  ;;  %v10186_v31 = vld [vmem:[#allocation96_spill] sm:$0xff]  ;;  %v10187_v54 = vld [vmem:[#allocation39_spill] sm:$0xff] }
 0x142   : > { %10150 = vst [vmem:[#allocation109_spill] sm:$0xff] %v7067_v19  ;;  %10152 = vst [vmem:[#allocation165_spill] sm:$0xff] %v7073_v24  ;;  %v3165_v6 = vsel %vm3133_vm15, 1.0, %v10157_v55  ;;  %vm3517_vm9 = vcmp.eq.f32.partialorder %v10155_v29, 7.0  ;;  %vm3581_vm12 = vcmp.eq.f32.partialorder %v10155_v29, 8.0  ;;  %vm3324_vm15 = vcmp.eq.f32.partialorder %v10160_v62, 4.0 }
 0x143   : > { %5034 = vrot.lane.b32.xlu1 %v6614_v17, %s5516_s9  ;;  %s4294_s9 = sshll.u32 %s198_s6, 4  ;;  %s9391_s9 = int_to_ptr.vmem [resolvable:$true] %s4294_s9 }
 0x144   : > { %v7017_v9 = vpop.permute.xlu0 %4769  ;;  %p5456_p0 = scmp.lt.s32.totalorder %s9391_s9, %s5454_s20 }
 0x145   : > { %5049 = vrot.lane.b32.xlu0 %v10149_v1, %s5517_s10 }
 0x147   : > { %5044 = vrot.lane.b32.xlu1 %v10148_v20, %s5517_s10  ;;  %v7060_v12 = vpop.permute.xlu1 %4764  ;;  %v7076_v20 = vsel %vm879_vm11, %v982_v33, %v984_v56  ;;  %v10159_v56 = vld [vmem:[#allocation112_spill] sm:$0xff]  ;;  %v3229_v33 = vsel %vm3197_vm0, 0.5, %v3165_v6  ;;  %v10161_v6 = vld [vmem:[#allocation118_spill] sm:$0xff] }
 0x148   : > { %v7051_v47 = vpop.permute.xlu0 %4784  ;;  %10153 = vst [vmem:[#allocation166_spill] sm:$0xff] %v7076_v20  ;;  %v3293_v53 = vsel %vm3261_vm1, 0.33333334, %v3229_v33  ;;  %vm3645_vm1 = vcmp.eq.f32.partialorder %v10155_v29, 9.0  ;;  %v10182_v29 = vld [vmem:[#allocation71_spill] sm:$0xff] }
 0x149   : > { %5059 = vrot.lane.b32.xlu0 %v10158_v32, %s5517_s10  ;;  %v4787_v2 = vunpack.i.h.bf16 %v7051_v47  ;;  %v4786_v27 = vunpack.i.l.bf16 %v7051_v47  ;;  %v3164_v47 = vsel %vm3132_vm2, 1.0, %v10157_v55  ;;  %v3357_v22 = vsel %vm3325_vm3, 0.25, %v3293_v53 }
 0x14a   : > { %v3421_v53 = vsel %vm3389_vm5, 0.2, %v3357_v22  ;;  %vm3388_vm2 = vcmp.eq.f32.partialorder %v10160_v62, 5.0  ;;  %vm3452_vm3 = vcmp.eq.f32.partialorder %v10160_v62, 6.0 }
 0x14b   : > { %5054 = vrot.lane.b32.xlu1 %v10154_v51, %s5517_s10  ;;  %v7132_v33 = vsel %vm1754_vm14, %v10163_v35, %v4787_v2  ;;  %v7138_v37 = vsel %vm1754_vm14, %v10164_v15, %v4786_v27  ;;  %v3228_v2 = vsel %vm3196_vm4, 0.5, %v3164_v47  ;;  %v10167_v15 = vld [vmem:[#allocation12_spill] sm:$0xff] }
 0x14c   : > { %v4795_v34 = vpop.permute.xlu0 %4794  ;;  %vm3135_vm7 = vcmp.eq.f32.partialorder %v10167_v15, 1.0  ;;  %vm3199_vm13 = vcmp.eq.f32.partialorder %v10167_v15, 2.0  ;;  %v3292_v20 = vsel %vm3260_vm6, 0.33333334, %v3228_v2  ;;  %vm3263_vm0 = vcmp.eq.f32.partialorder %v10167_v15, 3.0  ;;  %v10168_v2 = vld [vmem:[#allocation101_spill] sm:$0xff] }
 0x14d   : > { %v7083_v63 = vpop.permute.xlu1 %4774  ;;  %5069 = vrot.lane.b32.xlu0 %v10161_v6, %s5517_s10  ;;  %v4797_v5 = vunpack.i.h.bf16 %v4795_v34  ;;  %v4796_v13 = vunpack.i.l.bf16 %v4795_v34  ;;  %v10166_v34 = vld [vmem:[#allocation91_spill] sm:$0xff]  ;;  %vm3327_vm4 = vcmp.eq.f32.partialorder %v10167_v15, 4.0  ;;  %vm3391_vm6 = vcmp.eq.f32.partialorder %v10167_v15, 5.0 }
 0x14e   : > { %10156 = vst [vmem:[#allocation17_spill] sm:$0xff] %v7083_v63 }
 0x14f   : > { %5064 = vrot.lane.b32.xlu1 %v10159_v56, %s5517_s10  ;;  %v7142_v24 = vsel %vm1754_vm14, %v10165_v59, %v4797_v5  ;;  %v7149_v35 = vsel %vm1754_vm14, %v10166_v34, %v4796_v13  ;;  %v3167_v5 = vsel %vm3135_vm7, 1.0, %v10157_v55  ;;  %v10174_v56 = vld [vmem:[#allocation133_spill] sm:$0xff] }
 0x150   : > { %v7097_v36 = vpop.permute.xlu0 %4804  ;;  %v3231_v22 = vsel %vm3199_vm13, 0.5, %v3167_v5  ;;  %vm3134_vm5 = vcmp.eq.f32.partialorder %v10174_v56, 1.0  ;;  %vm3198_vm7 = vcmp.eq.f32.partialorder %v10174_v56, 2.0  ;;  %vm3580_vm13 = vcmp.eq.f32.partialorder %v10160_v62, 8.0 }
 0x151   : > { %v7111_v28 = vpop.permute.xlu1 %4779  ;;  %5079 = vrot.lane.b32.xlu0 %v6386_v42, %s5517_s10  ;;  %v4807_v59 = vunpack.i.h.bf16 %v7097_v36  ;;  %v4806_v27 = vunpack.i.l.bf16 %v7097_v36  ;;  %v10170_v42 = vld [vmem:[#allocation115_spill] sm:$0xff] }
 0x152   : > { %v4782_v47 = vunpack.i.h.bf16 %v7111_v28  ;;  %v4781_v34 = vunpack.i.l.bf16 %v7111_v28  ;;  %v3485_v28 = vsel %vm3453_vm8, 0.16666667, %v3421_v53  ;;  %v10171_v53 = vld [vmem:[#allocation123_spill] sm:$0xff]  ;;  %vm3262_vm8 = vcmp.eq.f32.partialorder %v10174_v56, 3.0 }
 0x153   : > { %5074 = vrot.lane.b32.xlu1 %v10162_v4, %s5517_s10 }
 0x154   : > { %v4815_v8 = vpop.permute.xlu0 %4814  ;;  %v7190_v4 = vsel %vm1754_vm14, %v10170_v42, %v4782_v47  ;;  %v3549_v47 = vsel %vm3517_vm9, 0.14285715, %v3485_v28  ;;  %vm3516_vm9 = vcmp.eq.f32.partialorder %v10160_v62, 7.0 }
 0x155   : > { %v7134_v7 = vpop.permute.xlu1 %4789  ;;  %5089 = vrot.lane.b32.xlu0 %v6488_v26, %s5517_s10  ;;  %v4816_v36 = vunpack.i.l.bf16 %v4815_v8  ;;  %v7179_v26 = vsel %vm1754_vm14, %v10168_v2, %v4807_v59  ;;  %v3295_v59 = vsel %vm3263_vm0, 0.33333334, %v3231_v22  ;;  %v10172_v2 = vld [vmem:[#allocation106_spill] sm:$0xff]  ;;  %vm3455_vm0 = vcmp.eq.f32.partialorder %v10167_v15, 6.0 }
 0x156   : > { %v4792_v22 = vunpack.i.h.bf16 %v7134_v7 }
 0x157   : > { %5084 = vrot.lane.b32.xlu1 %v6442_v50, %s5517_s10  ;;  %v4817_v50 = vunpack.i.h.bf16 %v4815_v8  ;;  %v10169_v8 = vld [vmem:[#allocation97_spill] sm:$0xff] }
 0x158   : > { %v4825_v23 = vpop.permute.xlu0 %4824  ;;  %v7183_v6 = vsel %vm1754_vm14, %v10169_v8, %v4806_v27  ;;  %v7198_v27 = vsel %vm1754_vm14, %v10171_v53, %v4781_v34  ;;  %v10173_v8 = vld [vmem:[#allocation113_spill] sm:$0xff] }
 0x159   : > { %v7160_v13 = vpop.permute.xlu1 %4799  ;;  %5099 = vrot.lane.b32.xlu0 %v6548_v60, %s5517_s10  ;;  %v7206_v42 = vsel %vm1754_vm14, %v10173_v8, %v4816_v36  ;;  %v4791_v60 = vunpack.i.l.bf16 %v7134_v7  ;;  %v3166_v36 = vsel %vm3134_vm5, 1.0, %v10157_v55  ;;  %v4827_v8 = vunpack.i.h.bf16 %v4825_v23 }
 0x15a   : > { %v4826_v28 = vunpack.i.l.bf16 %v4825_v23  ;;  %v3230_v7 = vsel %vm3198_vm7, 0.5, %v3166_v36  ;;  %vm3265_vm5 = vcmp.eq.f32.partialorder %v10182_v29, 3.0  ;;  %vm3454_vm7 = vcmp.eq.f32.partialorder %v10174_v56, 6.0 }
 0x15b   : > { %5094 = vrot.lane.b32.xlu1 %v6493_v21, %s5517_s10  ;;  %v3356_v21 = vsel %vm3324_vm15, 0.25, %v3292_v20  ;;  %v7202_v20 = vsel %vm1754_vm14, %v10172_v2, %v4817_v50  ;;  %v3359_v2 = vsel %vm3327_vm4, 0.25, %v3295_v59  ;;  %vm3644_vm15 = vcmp.eq.f32.partialorder %v10160_v62, 9.0  ;;  %v10175_v59 = vld [vmem:[#allocation81_spill] sm:$0xff] }
 0x15c   : > { %v7214_v34 = vpop.permute.xlu0 %4834  ;;  %v3420_v53 = vsel %vm3388_vm2, 0.2, %v3356_v21  ;;  %v3613_v21 = vsel %vm3581_vm12, 0.125, %v3549_v47  ;;  %v7234_v23 = vsel %vm1754_vm14, %v10175_v59, %v4792_v22  ;;  %v4802_v47 = vunpack.i.h.bf16 %v7160_v13  ;;  %v10177_v59 = vld [vmem:[#allocation35_spill] sm:$0xff] }
 0x15d   : > { %v7185_v5 = vpop.permute.xlu1 %4809  ;;  %5109 = vrot.lane.b32.xlu0 %v6630_v38, %s5517_s10  ;;  %v3484_v36 = vsel %vm3452_vm3, 0.16666667, %v3420_v53  ;;  %v3423_v38 = vsel %vm3391_vm6, 0.2, %v3359_v2  ;;  %v3294_v51 = vsel %vm3262_vm8, 0.33333334, %v3230_v7  ;;  %v4801_v22 = vunpack.i.l.bf16 %v7160_v13 }
 0x15e   : > { %vm3326_vm12 = vcmp.eq.f32.partialorder %v10174_v56, 4.0  ;;  %v7250_v1 = vsel %vm1754_vm14, %v10177_v59, %v4827_v8  ;;  %v10178_v53 = vld [vmem:[#allocation125_spill] sm:$0xff]  ;;  %v7262_v7 = vsel %vm3645_vm1, 0.11111111, %v3613_v21  ;;  %v4837_v19 = vunpack.i.h.bf16 %v7214_v34  ;;  %v10183_v21 = vld [vmem:[#allocation94_spill] sm:$0xff] }
 0x15f   : > { %5104 = vrot.lane.b32.xlu1 %v6582_v18, %s5517_s10  ;;  %v7254_v2 = vsel %vm1754_vm14, %v10178_v53, %v4826_v28  ;;  %10180 = vst [vmem:[#allocation14_spill] sm:$0xff] %v7262_v7  ;;  %v10181_v13 = vld [vmem:[#allocation85_spill] sm:$0xff]  ;;  %v3548_v8 = vsel %vm3516_vm9, 0.14285715, %v3484_v36  ;;  %v3487_v28 = vsel %vm3455_vm0, 0.16666667, %v3423_v38  ;;  %v4836_v59 = vunpack.i.l.bf16 %v7214_v34 }
 0x160   : > { %vm3519_vm2 = vcmp.eq.f32.partialorder %v10167_v15, 7.0  ;;  %v3358_v53 = vsel %vm3326_vm12, 0.25, %v3294_v51  ;;  %vm3390_vm1 = vcmp.eq.f32.partialorder %v10174_v56, 5.0  ;;  %vm3137_vm3 = vcmp.eq.f32.partialorder %v10182_v29, 1.0  ;;  %v10184_v38 = vld [vmem:[#allocation93_spill] sm:$0xff] }
 0x161   : > { %v7217_v50 = vpop.permute.xlu1 %4819  ;;  %v7277_v7 = vsel %vm1754_vm14, %v10183_v21, %v4802_v47  ;;  %v3169_v36 = vsel %vm3137_vm3, 1.0, %v10157_v55  ;;  %vm3201_vm4 = vcmp.eq.f32.partialorder %v10182_v29, 2.0  ;;  %v3612_v51 = vsel %vm3580_vm13, 0.125, %v3548_v8  ;;  %v10185_v47 = vld [vmem:[#allocation95_spill] sm:$0xff] }
 0x162   : > { %v3551_v34 = vsel %vm3519_vm2, 0.14285715, %v3487_v28  ;;  %vm3583_vm6 = vcmp.eq.f32.partialorder %v10167_v15, 8.0  ;;  %v7291_v21 = vsel %vm1754_vm14, %v10185_v47, %v4801_v22  ;;  %v4812_v48 = vunpack.i.h.bf16 %v7185_v5  ;;  %v10188_v22 = vld [vmem:[#allocation41_spill] sm:$0xff] }
 0x163   : > { %5114 = vrot.lane.b32.xlu1 %v6632_v11, %s5517_s10  ;;  %v10176_v11 = vld [vmem:[#allocation82_spill] sm:$0xff]  ;;  %v3422_v17 = vsel %vm3390_vm1, 0.2, %v3358_v53  ;;  %v7300_v8 = vsel %vm1754_vm14, %v10187_v54, %v4837_v19  ;;  %vm3329_vm8 = vcmp.eq.f32.partialorder %v10182_v29, 4.0  ;;  %v7307_v47 = vsel %vm1754_vm14, %v10188_v22, %v4836_v59 }
 0x164   : > { %v7241_v18 = vsel %vm1754_vm14, %v10176_v11, %v4791_v60  ;;  %v10179_v60 = vld [vmem:[#allocation136_spill] sm:$0xff]  ;;  %v7258_v11 = vpop.permute.xlu0 %4844  ;;  %vm3647_vm9 = vcmp.eq.f32.partialorder %v10167_v15, 9.0  ;;  %v4822_v54 = vunpack.i.h.bf16 %v7217_v50  ;;  %v4821_v19 = vunpack.i.l.bf16 %v7217_v50  ;;  %v10191_v59 = vld [vmem:[#allocation98_spill] sm:$0xff] }
 0x165   : > { %v7244_v32 = vpop.permute.xlu1 %4829  ;;  %5119 = vrot.lane.b32.xlu0 %v10179_v60, %s5517_s10  ;;  %v3233_v60 = vsel %vm3201_vm4, 0.5, %v3169_v36  ;;  %v3486_v53 = vsel %vm3454_vm7, 0.16666667, %v3422_v17  ;;  %vm3518_vm13 = vcmp.eq.f32.partialorder %v10174_v56, 7.0  ;;  %v7323_v22 = vsel %vm1754_vm14, %v10191_v59, %v4812_v48  ;;  %v10195_v48 = vld [vmem:[#allocation68_spill] sm:$0xff] }
 0x166   : > { %v3297_v36 = vsel %vm3265_vm5, 0.33333334, %v3233_v60  ;;  %v10190_v60 = vld [vmem:[#allocation104_spill] sm:$0xff]  ;;  %v4847_v62 = vunpack.i.h.bf16 %v7258_v11  ;;  %v4846_v17 = vunpack.i.l.bf16 %v7258_v11  ;;  %vm1787_vm0 = vcmask 64512   ;;  %v10197_v11 = vld [vmem:[#allocation121_spill] sm:$0xff] }
 0x167   : > { %5124 = vrot.lane.b32.xlu1 %v10181_v13, %s5518_s11  ;;  %v3361_v15 = vsel %vm3329_vm8, 0.25, %v3297_v36  ;;  %vm3136_vm12 = vcmp.eq.f32.partialorder %v10195_v48, 1.0  ;;  %v4832_v59 = vunpack.i.h.bf16 %v7244_v32  ;;  %v3550_v43 = vsel %vm3518_vm13, 0.14285715, %v3486_v53 }
 0x168   : > { %v7302_v28 = vpop.permute.xlu0 %4854  ;;  %vm3582_vm2 = vcmp.eq.f32.partialorder %v10174_v56, 8.0  ;;  %v7350_v45 = vsel %vm1754_vm14, %v10197_v11, %v4821_v19  ;;  %vm3457_vm1 = vcmp.eq.f32.partialorder %v10182_v29, 6.0  ;;  %vm9852_vm3 = vcmask 97280  }
 0x169   : > { %v7279_v13 = vpop.permute.xlu1 %4839  ;;  %5129 = vrot.lane.b32.xlu0 %v10184_v38, %s5518_s11  ;;  %v4811_v38 = vunpack.i.l.bf16 %v7185_v5  ;;  %v3615_v5 = vsel %vm3583_vm6, 0.125, %v3551_v34  ;;  %v10193_v34 = vld [vmem:[#allocation99_spill] sm:$0xff]  ;;  %vm3200_vm4 = vcmp.eq.f32.partialorder %v10195_v48, 2.0  ;;  %v7366_v19 = vsel %vm1754_vm14, %v6546_v46, %v4846_v17 }
 0x16a   : > { %v4842_v53 = vunpack.i.h.bf16 %v7279_v13  ;;  %10201 = vst [vmem:[#allocation91_spill] sm:$0xff] %v7366_v19  ;;  %v3614_v11 = vsel %vm3582_vm2, 0.125, %v3550_v43  ;;  %vm3646_vm5 = vcmp.eq.f32.partialorder %v10174_v56, 9.0  ;;  %vm3521_vm6 = vcmp.eq.f32.partialorder %v10182_v29, 7.0  ;;  %v10204_v43 = vld [vmem:[#allocation32_spill] sm:$0xff] }
 0x16b   : > { %5134 = vrot.lane.b32.xlu1 %v10186_v31, %s5518_s11  ;;  %v7313_v31 = vsel %vm3644_vm15, 0.11111111, %v3612_v51  ;;  %v10192_v51 = vld [vmem:[#allocation100_spill] sm:$0xff]  ;;  %vm3393_vm15 = vcmp.eq.f32.partialorder %v10182_v29, 5.0  ;;  %v7331_v50 = vsel %vm1754_vm14, %v10193_v34, %v4811_v38  ;;  %v4857_v46 = vunpack.i.h.bf16 %v7302_v28 }
 0x16c   : > { %10189 = vst [vmem:[#allocation88_spill] sm:$0xff] %v7313_v31  ;;  %v7336_v31 = vsel %vm3647_vm9, 0.11111111, %v3615_v5  ;;  %v10196_v38 = vld [vmem:[#allocation120_spill] sm:$0xff]  ;;  %v10198_v5 = vld [vmem:[#allocation114_spill] sm:$0xff]  ;;  %vm3264_vm7 = vcmp.eq.f32.partialorder %v10195_v48, 3.0  ;;  %v7386_v17 = vsel %vm1754_vm14, %v6497_v10, %v4842_v53 }
 0x16d   : > { %v7309_v52 = vpop.permute.xlu1 %4849  ;;  %5139 = vrot.lane.b32.xlu0 %v10190_v60, %s5518_s11  ;;  %v7334_v60 = vpop.permute.xlu0 %4864  ;;  %10194 = vst [vmem:[#allocation86_spill] sm:$0xff] %v7336_v31  ;;  %v7346_v34 = vsel %vm1754_vm14, %v10196_v38, %v4822_v54  ;;  %v3425_v31 = vsel %vm3393_vm15, 0.2, %v3361_v15  ;;  %v3168_v54 = vsel %vm3136_vm12, 1.0, %v10157_v55  ;;  %v4841_v15 = vunpack.i.l.bf16 %v7279_v13  ;;  %10205 = vst [vmem:[#allocation12_spill] sm:$0xff] %v7386_v17 }
 0x16e   : > { %v3489_v63 = vsel %vm3457_vm1, 0.16666667, %v3425_v31  ;;  %v4856_v13 = vunpack.i.l.bf16 %v7302_v28  ;;  %v3232_v56 = vsel %vm3200_vm4, 0.5, %v3168_v54  ;;  %v4852_v31 = vunpack.i.h.bf16 %v7309_v52 }
 0x16f   : > { %5144 = vrot.lane.b32.xlu1 %v10192_v51, %s5518_s11  ;;  %v4831_v51 = vunpack.i.l.bf16 %v7244_v32  ;;  %v7357_v32 = vsel %vm1754_vm14, %v6552_v61, %v4847_v62  ;;  %v10202_v61 = vld [vmem:[#allocation126_spill] sm:$0xff]  ;;  %v7396_v28 = vsel %vm1754_vm14, %v6500_v39, %v4841_v15  ;;  %v4851_v54 = vunpack.i.l.bf16 %v7309_v52  ;;  %v10209_v39 = vld [vmem:[#allocation61_spill] sm:$0xff]  ;;  %v10211_v15 = vld [vmem:[#allocation40_spill] sm:$0xff] }
 0x170   : > { %10199 = vst [vmem:[#allocation90_spill] sm:$0xff] %v7357_v32  ;;  %v7372_v62 = vsel %vm1754_vm14, %v10202_v61, %v4832_v59  ;;  %v4866_v59 = vunpack.i.l.bf16 %v7334_v60  ;;  %v7392_v61 = vsel %vm3646_vm5, 0.11111111, %v3614_v11  ;;  %vm3585_vm8 = vcmp.eq.f32.partialorder %v10182_v29, 8.0 }
 0x171   : > { %v7341_v36 = vpop.permute.xlu1 %4859  ;;  %5149 = vrot.lane.b32.xlu0 %v10198_v5, %s5518_s11  ;;  %v4875_v38 = vpop.permute.xlu0 %4874  ;;  %10207 = vst [vmem:[#allocation101_spill] sm:$0xff] %v7392_v61  ;;  %v4867_v10 = vunpack.i.h.bf16 %v7334_v60  ;;  %v3296_v19 = vsel %vm3264_vm7, 0.33333334, %v3232_v56  ;;  %vm3328_vm9 = vcmp.eq.f32.partialorder %v10195_v48, 4.0  ;;  %v7407_v11 = vsel %vm1754_vm14, %v6559_v14, %v4857_v46  ;;  %v10212_v56 = vld [vmem:[#allocation47_spill] sm:$0xff]  ;;  %v10213_v46 = vld [vmem:[#allocation144_spill] sm:$0xff] }
 0x172   : > { %v4861_v53 = vunpack.i.l.bf16 %v7341_v36  ;;  %10208 = vst [vmem:[#allocation97_spill] sm:$0xff] %v7407_v11  ;;  %v7411_v52 = vsel %vm1754_vm14, %v10209_v39, %v4856_v13  ;;  %vm3649_vm13 = vcmp.eq.f32.partialorder %v10182_v29, 9.0  ;;  %v1790_v60 = vsel %vm1787_vm0, %v7138_v37, %v4866_v59 }
 0x173   : > { %5154 = vrot.lane.b32.xlu1 %v10200_v30, %s5518_s11  ;;  %v10203_v30 = vld [vmem:[#allocation127_spill] sm:$0xff]  ;;  %10210 = vst [vmem:[#allocation115_spill] sm:$0xff] %v7411_v52  ;;  %v4876_v14 = vunpack.i.l.bf16 %v4875_v38  ;;  %v4877_v39 = vunpack.i.h.bf16 %v4875_v38  ;;  %v3360_v11 = vsel %vm3328_vm9, 0.25, %v3296_v19  ;;  %vm3392_vm15 = vcmp.eq.f32.partialorder %v10195_v48, 5.0  ;;  %v10214_v52 = vld [vmem:[#allocation92_spill] sm:$0xff]  ;;  %v10215_v19 = vld [vmem:[#allocation145_spill] sm:$0xff] }
 0x174   : > { %v7376_v5 = vsel %vm1754_vm14, %v10203_v30, %v4831_v51  ;;  %v10206_v51 = vld [vmem:[#allocation129_spill] sm:$0xff]  ;;  %v7430_v37 = vsel %vm1754_vm14, %v10214_v52, %v4851_v54  ;;  %v1788_v59 = vsel %vm1787_vm0, %v7198_v27, %v4861_v53  ;;  %v3424_v53 = vsel %vm3392_vm15, 0.2, %v3360_v11 }
 0x175   : > { %v4870_v32 = vpop.permute.xlu1 %4869  ;;  %5159 = vrot.lane.b32.xlu0 %v10204_v43, %s5518_s11  ;;  %v4885_v30 = vpop.permute.xlu0 %4884  ;;  %v3553_v43 = vsel %vm3521_vm6, 0.14285715, %v3489_v63  ;;  %v4862_v63 = vunpack.i.h.bf16 %v7341_v36  ;;  %v1794_v27 = vsel %vm1787_vm0, %v7149_v35, %v4876_v14  ;;  %v1795_v52 = vsel %vm1787_vm0, %v7142_v24, %v4877_v39  ;;  %v10222_v39 = vld [vmem:[#allocation148_spill] sm:$0xff] }
 0x176   : > { %v3617_v13 = vsel %vm3585_vm8, 0.125, %v3553_v43  ;;  %v4871_v61 = vunpack.i.l.bf16 %v4870_v32  ;;  %v10216_v43 = vunpack.i.l.bf16 %v6900_v25  ;;  %v10219_v35 = vunpack.i.l.bf16 %v6940_v3 }
 0x177   : > { %5164 = vrot.lane.b32.xlu1 %v10206_v51, %s5518_s11  ;;  %v7421_v51 = vsel %vm1754_vm14, %v10212_v56, %v4852_v31  ;;  %v4872_v31 = vunpack.i.h.bf16 %v4870_v32  ;;  %v1789_v38 = vsel %vm1787_vm0, %v7190_v4, %v4862_v63  ;;  %v7447_v54 = vsel %vm3649_vm13, 0.11111111, %v3617_v13  ;;  %v10217_v4 = vld [vmem:[#allocation147_spill] sm:$0xff] }
 0x178   : > { %vm3456_vm14 = vcmp.eq.f32.partialorder %v10195_v48, 6.0  ;;  %v4887_v32 = vunpack.i.h.bf16 %v4885_v30  ;;  %v1792_v63 = vsel %vm1787_vm0, %v7241_v18, %v4871_v61  ;;  %v10220_v24 = vunpack.i.h.bf16 %v6940_v3 }
 0x179   : > { %v7402_v17 = vpop.permute.xlu1 %4879  ;;  %5169 = vrot.lane.b32.xlu0 %v10211_v15, %s5518_s11  ;;  %v4895_v36 = vpop.permute.xlu0 %4894  ;;  %v1791_v15 = vsel %vm1787_vm0, %v7132_v33, %v4867_v10  ;;  %v7443_v33 = vsel %vm9852_vm3, %v1790_v60, %v10216_v43  ;;  %v4886_v10 = vunpack.i.l.bf16 %v4885_v30  ;;  %v10218_v60 = vunpack.i.h.bf16 %v6900_v25  ;;  %v10221_v25 = vld [vmem:[#allocation138_spill] sm:$0xff] }
 0x17a   : > { %v7468_v30 = vsel %vm9852_vm3, %v1788_v59, %v10219_v35  ;;  %v1793_v11 = vsel %vm1787_vm0, %v7234_v23, %v4872_v31  ;;  %v7477_v18 = vsel %vm9852_vm3, %v1789_v38, %v10220_v24  ;;  %vm3520_vm12 = vcmp.eq.f32.partialorder %v10195_v48, 7.0  ;;  %v10224_v38 = vld [vmem:[#allocation74_spill] sm:$0xff] }
 0x17b   : > { %5174 = vrot.lane.b32.xlu1 %v10213_v46, %s5518_s11  ;;  %v7463_v46 = vsel %vm9852_vm3, %v1791_v15, %v10218_v60  ;;  %vm3139_vm2 = vcmp.eq.f32.partialorder %v10221_v25, 1.0  ;;  %v4882_v61 = vunpack.i.h.bf16 %v7402_v17  ;;  %v4881_v13 = vunpack.i.l.bf16 %v7402_v17 }
 0x17c   : > { %v10223_v23 = vunpack.i.l.bf16 %v6926_v49  ;;  %v3488_v3 = vsel %vm3456_vm14, 0.16666667, %v3424_v53  ;;  %v1798_v59 = vsel %vm1787_vm0, %v7183_v6, %v4886_v10  ;;  %v1799_v31 = vsel %vm1787_vm0, %v7179_v26, %v4887_v32 }
 0x17d   : > { %v7434_v56 = vpop.permute.xlu1 %4889  ;;  %5179 = vrot.lane.b32.xlu0 %v10215_v19, %s5518_s11  ;;  %v7458_v29 = vpop.permute.xlu0 %4904  ;;  %v10225_v17 = vunpack.i.h.bf16 %v6926_v49  ;;  %v10226_v43 = vunpack.i.l.bf16 %v6969_v0  ;;  %v4896_v53 = vunpack.i.l.bf16 %v4895_v36  ;;  %v3171_v6 = vsel %vm3139_vm2, 1.0, %v10157_v55 }
 0x17e   : > { %v7488_v15 = vsel %vm9852_vm3, %v1794_v27, %v10223_v23  ;;  %vm3203_vm1 = vcmp.eq.f32.partialorder %v10221_v25, 2.0  ;;  %v4891_v26 = vunpack.i.l.bf16 %v7434_v56  ;;  %v10227_v49 = vunpack.i.h.bf16 %v6969_v0 }
 0x17f   : > { %5184 = vrot.lane.b32.xlu1 %v10217_v4, %s5518_s11  ;;  %v7501_v19 = vsel %vm9852_vm3, %v1795_v52, %v10225_v17  ;;  %v7506_v27 = vsel %vm9852_vm3, %v1792_v63, %v10226_v43  ;;  %v4897_v4 = vunpack.i.h.bf16 %v4895_v36  ;;  %v3552_v52 = vsel %vm3520_vm12, 0.14285715, %v3488_v3 }
 0x180   : > { %v7518_v10 = vsel %vm9852_vm3, %v1793_v11, %v10227_v49  ;;  %vm3584_vm4 = vcmp.eq.f32.partialorder %v10195_v48, 8.0  ;;  %v1796_v36 = vsel %vm1787_vm0, %v7291_v21, %v4881_v13  ;;  %v1797_v63 = vsel %vm1787_vm0, %v7277_v7, %v4882_v61  ;;  %v10230_v21 = vld [vmem:[#allocation102_spill] sm:$0xff] }
 0x181   : > { %v7472_v14 = vpop.permute.xlu1 %4899  ;;  %5189 = vrot.lane.b32.xlu0 %v10222_v39, %s5518_s11  ;;  %v7508_v60 = vpop.permute.xlu0 %4914  ;;  %v10228_v35 = vpack.i.bf16 %v7024_v58, %v7044_v44  ;;  %v10229_v0 = vunpack.i.l.bf16 %v6963_v16  ;;  %vm3648_vm5 = vcmp.eq.f32.partialorder %v10195_v48, 9.0  ;;  %v4892_v24 = vunpack.i.h.bf16 %v7434_v56 }
 0x182   : > { %v10231_v7 = vunpack.i.h.bf16 %v6963_v16  ;;  %v3235_v58 = vsel %vm3203_vm1, 0.5, %v3171_v6  ;;  %vm3267_vm6 = vcmp.eq.f32.partialorder %v10221_v25, 3.0  ;;  %v1802_v44 = vsel %vm1787_vm0, %v7206_v42, %v4896_v53  ;;  %v10235_v53 = vld [vmem:[#allocation103_spill] sm:$0xff] }
 0x183   : > { %5194 = vrot.lane.b32.xlu1 %v10224_v38, %s5518_s11  ;;  %v7534_v11 = vsel %vm9852_vm3, %v1798_v59, %v10229_v0  ;;  %v1803_v13 = vsel %vm1787_vm0, %v7202_v20, %v4897_v4  ;;  %v4906_v56 = vunpack.i.l.bf16 %v7458_v29  ;;  %v3616_v23 = vsel %vm3584_vm4, 0.125, %v3552_v52 }
 0x184   : > { %v7543_v61 = vsel %vm9852_vm3, %v1799_v31, %v10231_v7  ;;  %v4907_v16 = vunpack.i.h.bf16 %v7458_v29  ;;  %v1800_v3 = vsel %vm1787_vm0, %v7331_v50, %v4891_v26  ;;  %v10232_v31 = vunpack.i.l.bf16 %v6992_v40  ;;  %v10234_v29 = vld [vmem:[#allocation105_spill] sm:$0xff] }
 0x185   : > { %v7513_v32 = vpop.permute.xlu1 %4909  ;;  %5199 = vrot.lane.b32.xlu0 %v10228_v35, %s5518_s11  ;;  %v7551_v39 = vpop.permute.xlu0 %4924  ;;  %v10233_v20 = vunpack.i.h.bf16 %v6992_v40  ;;  %v4902_v17 = vunpack.i.h.bf16 %v7472_v14  ;;  %v4901_v43 = vunpack.i.l.bf16 %v7472_v14  ;;  %v3299_v50 = vsel %vm3267_vm6, 0.33333334, %v3235_v58 }
 0x186   : > { %v7563_v42 = vsel %vm9852_vm3, %v1796_v36, %v10232_v31  ;;  %vm3331_vm7 = vcmp.eq.f32.partialorder %v10221_v25, 4.0  ;;  %v1801_v4 = vsel %vm1787_vm0, %v7323_v22, %v4892_v24  ;;  %v10236_v40 = vunpack.i.l.bf16 %v6982_v57 }
 0x187   : > { %5204 = vrot.lane.b32.xlu1 %v10230_v21, %s5519_s12  ;;  %v7568_v38 = vsel %vm9852_vm3, %v1797_v63, %v10233_v20  ;;  %v10237_v26 = vunpack.i.h.bf16 %v6982_v57  ;;  %v7591_v49 = vsel %vm3648_vm5, 0.11111111, %v3616_v23  ;;  %v1806_v22 = vsel %vm1787_vm0, %v7254_v2, %v4906_v56  ;;  %v10239_v57 = vld [vmem:[#allocation137_spill] sm:$0xff]  ;;  %v10241_v56 = vld [vmem:[#allocation116_spill] sm:$0xff] }
 0x188   : > { %v7582_v6 = vsel %vm9852_vm3, %v1802_v44, %v10236_v40  ;;  %v4912_v52 = vunpack.i.h.bf16 %v7513_v32  ;;  %v10238_v63 = vunpack.i.l.bf16 %v7036_v41  ;;  %vm3138_vm8 = vcmp.eq.f32.partialorder %v10239_v57, 1.0  ;;  %v10240_v44 = vld [vmem:[#allocation107_spill] sm:$0xff] }
 0x189   : > { %v7558_v59 = vpop.permute.xlu1 %4919  ;;  %5209 = vrot.lane.b32.xlu0 %v10234_v29, %s5519_s12  ;;  %v7587_v14 = vsel %vm9852_vm3, %v1803_v13, %v10237_v26  ;;  %v7596_v36 = vpop.permute.xlu0 %4934  ;;  %v4911_v0 = vunpack.i.l.bf16 %v7513_v32  ;;  %v3363_v48 = vsel %vm3331_vm7, 0.25, %v3299_v50  ;;  %vm3395_vm9 = vcmp.eq.f32.partialorder %v10221_v25, 5.0 }
 0x18a   : > { %v7601_v35 = vsel %vm9852_vm3, %v1800_v3, %v10238_v63  ;;  %v3170_v2 = vsel %vm3138_vm8, 1.0, %v10157_v55  ;;  %v1807_v21 = vsel %vm1787_vm0, %v7250_v1, %v4907_v16  ;;  %v1804_v7 = vsel %vm1787_vm0, %v7350_v45, %v4901_v43 }
 0x18b   : > { %5214 = vrot.lane.b32.xlu1 %v10235_v53, %s5519_s12  ;;  %v1805_v58 = vsel %vm1787_vm0, %v7346_v34, %v4902_v17  ;;  %vm3202_vm13 = vcmp.eq.f32.partialorder %v10239_v57, 2.0  ;;  %v4917_v32 = vunpack.i.h.bf16 %v7508_v60  ;;  %v4916_v13 = vunpack.i.l.bf16 %v7508_v60  ;;  %v10246_v53 = vld [vmem:[#allocation117_spill] sm:$0xff] }
 0x18c   : > { %v3234_v23 = vsel %vm3202_vm13, 0.5, %v3170_v2  ;;  %vm3266_vm15 = vcmp.eq.f32.partialorder %v10239_v57, 3.0  ;;  %v10242_v45 = vunpack.i.h.bf16 %v7036_v41  ;;  %v10243_v16 = vunpack.i.l.bf16 %v7017_v9 }
 0x18d   : > { %v7605_v24 = vpop.permute.xlu1 %4929  ;;  %5219 = vrot.lane.b32.xlu0 %v10240_v44, %s5519_s12  ;;  %v7623_v1 = vpop.permute.xlu0 %4939  ;;  %v3427_v31 = vsel %vm3395_vm9, 0.2, %v3363_v48  ;;  %vm3459_vm14 = vcmp.eq.f32.partialorder %v10221_v25, 6.0  ;;  %v1808_v60 = vsel %vm1787_vm0, %v7376_v5, %v4911_v0  ;;  %v1809_v20 = vsel %vm1787_vm0, %v7372_v62, %v4912_v52  ;;  %v10250_v48 = vld [vmem:[#allocation17_spill] sm:$0xff] }
 0x18e   : > { %v7628_v34 = vsel %vm9852_vm3, %v1801_v4, %v10242_v45  ;;  %v7633_v3 = vsel %vm9852_vm3, %v1806_v22, %v10243_v16  ;;  %v10244_v41 = vunpack.i.h.bf16 %v7017_v9  ;;  %v10245_v29 = vunpack.i.l.bf16 %v7060_v12  ;;  %v10248_v22 = vld [vmem:[#allocation124_spill] sm:$0xff] }
 0x18f   : > { %5224 = vrot.lane.b32.xlu1 %v10241_v56, %s5519_s12  ;;  %v4926_v4 = vunpack.i.l.bf16 %v7551_v39  ;;  %v10247_v5 = vunpack.i.h.bf16 %v7060_v12  ;;  %v3298_v40 = vsel %vm3266_vm15, 0.33333334, %v3234_v23  ;;  %vm3330_vm12 = vcmp.eq.f32.partialorder %v10239_v57, 4.0  ;;  %v10256_v56 = vld [vmem:[#allocation130_spill] sm:$0xff] }
 0x190   : > { %v7645_v43 = vsel %vm9852_vm3, %v1807_v21, %v10244_v41  ;;  %v7650_v50 = vsel %vm9852_vm3, %v1804_v7, %v10245_v29  ;;  %v1810_v9 = vsel %vm1787_vm0, %v7307_v47, %v4916_v13  ;;  %v1811_v26 = vsel %vm1787_vm0, %v7300_v8, %v4917_v32  ;;  %v10254_v32 = vld [vmem:[#allocation91_spill] sm:$0xff] }
 0x191   : > { %v7640_v17 = vpop.permute.xlu1 %4944  ;;  %5229 = vrot.lane.b32.xlu0 %v10246_v53, %s5519_s12  ;;  %v7658_v62 = vsel %vm9852_vm3, %v1805_v58, %v10247_v5  ;;  %v3491_v52 = vsel %vm3459_vm14, 0.16666667, %v3427_v31  ;;  %vm3523_vm2 = vcmp.eq.f32.partialorder %v10221_v25, 7.0  ;;  %v4927_v12 = vunpack.i.h.bf16 %v7551_v39  ;;  %v7670_v0 = vpop.permute.xlu0 %4949  ;;  %v10253_v39 = vld [vmem:[#allocation140_spill] sm:$0xff]  ;;  %v10257_v31 = vld [vmem:[#allocation131_spill] sm:$0xff] }
 0x192   : > { %v4922_v63 = vunpack.i.h.bf16 %v7558_v59  ;;  %10249 = vst [vmem:[#allocation123_spill] sm:$0xff] %v7670_v0  ;;  %v10251_v2 = vunpack.i.l.bf16 %v10250_v48  ;;  %v10252_v47 = vunpack.i.h.bf16 %v10250_v48  ;;  %v4921_v7 = vunpack.i.l.bf16 %v7558_v59 }
 0x193   : > { %5234 = vrot.lane.b32.xlu1 %v10248_v22, %s5519_s12  ;;  %v3362_v44 = vsel %vm3330_vm12, 0.25, %v3298_v40  ;;  %vm3394_vm1 = vcmp.eq.f32.partialorder %v10239_v57, 5.0  ;;  %vm3141_vm4 = vcmp.eq.f32.partialorder %v10253_v39, 1.0  ;;  %v7689_v13 = vsel %vm1787_vm0, %v10254_v32, %v4926_v4  ;;  %v10258_v4 = vld [vmem:[#allocation90_spill] sm:$0xff] }
 0x194   : > { %v7675_v21 = vsel %vm9852_vm3, %v1808_v60, %v10251_v2  ;;  %v7680_v8 = vsel %vm9852_vm3, %v1809_v20, %v10252_v47  ;;  %10255 = vst [vmem:[#allocation106_spill] sm:$0xff] %v7689_v13  ;;  %v3555_v23 = vsel %vm3523_vm2, 0.14285715, %v3491_v52  ;;  %vm3587_vm5 = vcmp.eq.f32.partialorder %v10221_v25, 8.0  ;;  %v10260_v52 = vld [vmem:[#allocation12_spill] sm:$0xff] }
 0x195   : > { %v7683_v58 = vpop.permute.xlu1 %4954  ;;  %5239 = vrot.lane.b32.xlu0 %v10256_v56, %s5519_s12  ;;  %v3173_v45 = vsel %vm3141_vm4, 1.0, %v10157_v55  ;;  %v4937_v59 = vunpack.i.h.bf16 %v7596_v36  ;;  %v4936_v16 = vunpack.i.l.bf16 %v7596_v36  ;;  %vm3205_vm6 = vcmp.eq.f32.partialorder %v10253_v39, 2.0  ;;  %v7702_v20 = vpop.permute.xlu0 %4959  ;;  %v10261_v2 = vld [vmem:[#allocation132_spill] sm:$0xff] }
 0x196   : > { %vm3269_vm7 = vcmp.eq.f32.partialorder %v10253_v39, 3.0  ;;  %v4931_v60 = vunpack.i.l.bf16 %v7605_v24  ;;  %v3426_v41 = vsel %vm3394_vm1, 0.2, %v3362_v44  ;;  %vm3458_vm8 = vcmp.eq.f32.partialorder %v10239_v57, 6.0  ;;  %v10262_v44 = vld [vmem:[#allocation51_spill] sm:$0xff] }
 0x197   : > { %5244 = vrot.lane.b32.xlu1 %v10257_v31, %s5519_s12  ;;  %v3237_v29 = vsel %vm3205_vm6, 0.5, %v3173_v45  ;;  %v7707_v53 = vsel %vm1787_vm0, %v10258_v4, %v4927_v12  ;;  %v4932_v36 = vunpack.i.h.bf16 %v7605_v24  ;;  %v3619_v40 = vsel %vm3587_vm5, 0.125, %v3555_v23 }
 0x198   : > { %10259 = vst [vmem:[#allocation113_spill] sm:$0xff] %v7707_v53  ;;  %vm3651_vm9 = vcmp.eq.f32.partialorder %v10221_v25, 9.0  ;;  %v1812_v22 = vsel %vm1787_vm0, %v7396_v28, %v4921_v7  ;;  %v1813_v48 = vsel %vm1787_vm0, %v10260_v52, %v4922_v63  ;;  %v3301_v47 = vsel %vm3269_vm7, 0.33333334, %v3237_v29  ;;  %v10263_v28 = vld [vmem:[#allocation115_spill] sm:$0xff]  ;;  %v10264_v63 = vld [vmem:[#allocation97_spill] sm:$0xff] }
 0x199   : > { %v7710_v5 = vpop.permute.xlu1 %4964  ;;  %5249 = vrot.lane.b32.xlu0 %v10261_v2, %s5519_s12  ;;  %vm3333_vm13 = vcmp.eq.f32.partialorder %v10253_v39, 4.0  ;;  %v4942_v12 = vunpack.i.h.bf16 %v7623_v1  ;;  %v4941_v24 = vunpack.i.l.bf16 %v7623_v1  ;;  %v3490_v25 = vsel %vm3458_vm8, 0.16666667, %v3426_v41  ;;  %v7731_v23 = vpop.permute.xlu0 %4969 }
 0x19a   : > { %vm3522_vm15 = vcmp.eq.f32.partialorder %v10239_v57, 7.0  ;;  %v1818_v7 = vsel %vm1787_vm0, %v10263_v28, %v4936_v16  ;;  %v1819_v32 = vsel %vm1787_vm0, %v10264_v63, %v4937_v59  ;;  %v1816_v56 = vsel %vm1787_vm0, %v7430_v37, %v4931_v60  ;;  %v10265_v59 = vld [vmem:[#allocation59_spill] sm:$0xff] }
 0x19b   : > { %5254 = vrot.lane.b32.xlu1 %v10262_v44, %s5519_s12  ;;  %v7733_v45 = vsel %vm3651_vm9, 0.11111111, %v3619_v40  ;;  %v1817_v1 = vsel %vm1787_vm0, %v7421_v51, %v4932_v36  ;;  %v4947_v31 = vunpack.i.h.bf16 %v7640_v17  ;;  %v3365_v29 = vsel %vm3333_vm13, 0.25, %v3301_v47  ;;  %v10266_v60 = vld [vmem:[#allocation139_spill] sm:$0xff]  ;;  %v10267_v40 = vld [vmem:[#allocation54_spill] sm:$0xff] }
 0x19c   : > { %vm3397_vm14 = vcmp.eq.f32.partialorder %v10253_v39, 5.0  ;;  %v4946_v16 = vunpack.i.l.bf16 %v7640_v17  ;;  %v3554_v37 = vsel %vm3522_vm15, 0.14285715, %v3490_v25  ;;  %vm3586_vm12 = vcmp.eq.f32.partialorder %v10239_v57, 8.0  ;;  %v10268_v25 = vld [vmem:[#allocation53_spill] sm:$0xff] }
 0x19d   : > { %v7738_v41 = vpop.permute.xlu1 %4974  ;;  %5259 = vrot.lane.b32.xlu0 %v10265_v59, %s5519_s12  ;;  %vm3140_vm2 = vcmp.eq.f32.partialorder %v10266_v60, 1.0  ;;  %v7747_v4 = vsel %vm9852_vm3, %v1810_v9, %v4941_v24  ;;  %v7750_v51 = vsel %vm9852_vm3, %v1811_v26, %v4942_v12  ;;  %v4956_v36 = vunpack.i.l.bf16 %v7683_v58  ;;  %v7756_v52 = vpop.permute.xlu0 %4979 }
 0x19e   : > { %v3172_v17 = vsel %vm3140_vm2, 1.0, %v10157_v55  ;;  %v3429_v2 = vsel %vm3397_vm14, 0.2, %v3365_v29  ;;  %vm3461_vm0 = vcmp.eq.f32.partialorder %v10253_v39, 6.0  ;;  %vm3204_vm1 = vcmp.eq.f32.partialorder %v10266_v60, 2.0  ;;  %v10269_v29 = vld [vmem:[#allocation135_spill] sm:$0xff] }
 0x19f   : > { %5264 = vrot.lane.b32.xlu1 %v10267_v40, %s5519_s12  ;;  %vm3268_vm4 = vcmp.eq.f32.partialorder %v10266_v60, 3.0  ;;  %v4957_v9 = vunpack.i.h.bf16 %v7683_v58  ;;  %vm9851_vm5 = vcmask 130048   ;;  %v3618_v47 = vsel %vm3586_vm12, 0.125, %v3554_v37 }
 0x1a0   : > { %vm3650_vm6 = vcmp.eq.f32.partialorder %v10239_v57, 9.0  ;;  %v3236_v12 = vsel %vm3204_vm1, 0.5, %v3172_v17  ;;  %v7766_v24 = vsel %vm9852_vm3, %v1812_v22, %v4946_v16  ;;  %v4961_v44 = vunpack.i.l.bf16 %v7702_v20  ;;  %v10271_v57 = vld [vmem:[#allocation109_spill] sm:$0xff]  ;;  %v10276_v16 = vld [vmem:[#allocation110_spill] sm:$0xff] }
 0x1a1   : > { %v7762_v26 = vpop.permute.xlu1 %4984  ;;  %5269 = vrot.lane.b32.xlu0 %v10268_v25, %s5519_s12  ;;  %v3300_v28 = vsel %vm3268_vm4, 0.33333334, %v3236_v12  ;;  %vm3332_vm7 = vcmp.eq.f32.partialorder %v10266_v60, 4.0  ;;  %v7773_v58 = vsel %vm9852_vm3, %v1813_v48, %v4947_v31  ;;  %v4962_v63 = vunpack.i.h.bf16 %v7702_v20  ;;  %v7786_v40 = vpop.permute.xlu0 %4989 }
 0x1a2   : > { %v3493_v22 = vsel %vm3461_vm0, 0.16666667, %v3429_v2  ;;  %vm3525_vm8 = vcmp.eq.f32.partialorder %v10253_v39, 7.0  ;;  %v7784_v37 = vsel %vm9852_vm3, %v1816_v56, %v4956_v36  ;;  %v7790_v20 = vsel %vm3650_vm6, 0.11111111, %v3618_v47  ;;  %v10270_v36 = vld [vmem:[#allocation164_spill] sm:$0xff] }
 0x1a3   : > { %5274 = vrot.lane.b32.xlu1 %v10269_v29, %s5519_s12  ;;  %v7793_v48 = vsel %vm9852_vm3, %v1817_v1, %v4957_v9  ;;  %v4967_v31 = vunpack.i.h.bf16 %v7710_v5  ;;  %v3364_v2 = vsel %vm3332_vm7, 0.25, %v3300_v28  ;;  %vm3396_vm9 = vcmp.eq.f32.partialorder %v10266_v60, 5.0 }
 0x1a4   : > { %v7800_v12 = vsel %vm9852_vm3, %v1818_v7, %v4961_v44  ;;  %v4966_v56 = vunpack.i.l.bf16 %v7710_v5  ;;  %v10272_v47 = vpack.i.bf16 %v10270_v36, %v10271_v57  ;;  %v3557_v25 = vsel %vm3525_vm8, 0.14285715, %v3493_v22  ;;  %v10273_v7 = vld [vmem:[#allocation108_spill] sm:$0xff]  ;;  %v10274_v22 = vld [vmem:[#allocation142_spill] sm:$0xff] }
 0x1a5   : > { %v7796_v17 = vpop.permute.xlu1 %4994  ;;  %vm3589_vm13 = vcmp.eq.f32.partialorder %v10253_v39, 8.0  ;;  %v7809_v1 = vsel %vm9852_vm3, %v1819_v32, %v4962_v63  ;;  %v4972_v9 = vunpack.i.h.bf16 %v7731_v23  ;;  %v4971_v28 = vunpack.i.l.bf16 %v7731_v23  ;;  %v7817_v44 = vpop.permute.xlu0 %4999 }
 0x1a6   : > { %5279 = vrot.lane.b32.xlu0 %v10272_v47, %s5519_s12  ;;  %vm3653_vm15 = vcmp.eq.f32.partialorder %v10253_v39, 9.0  ;;  %v4977_v5 = vunpack.i.h.bf16 %v7738_v41  ;;  %v3428_v29 = vsel %vm3396_vm9, 0.2, %v3364_v2  ;;  %vm3460_vm14 = vcmp.eq.f32.partialorder %v10266_v60, 6.0  ;;  %s9387_s12 = scalar_lea.hbm %s9549_s4, %s4469_s7 }
 0x1a7   : > { %5284 = vrot.lane.b32.xlu1 %v10273_v7, %s5520_s13  ;;  %vm3143_vm12 = vcmp.eq.f32.partialorder %v10274_v22, 1.0  ;;  %v4976_v32 = vunpack.i.l.bf16 %v7738_v41  ;;  %v3621_v23 = vsel %vm3589_vm13, 0.125, %v3557_v25  ;;  %vm3207_vm2 = vcmp.eq.f32.partialorder %v10274_v22, 2.0  ;;  %v10275_v7 = vld [vmem:[#allocation111_spill] sm:$0xff] }
 0x1a8   : > { %v3175_v36 = vsel %vm3143_vm12, 1.0, %v10157_v55  ;;  %v4982_v57 = vunpack.i.h.bf16 %v7756_v52  ;;  %v4981_v47 = vunpack.i.l.bf16 %v7756_v52  ;;  %vm3271_vm0 = vcmp.eq.f32.partialorder %v10274_v22, 3.0 }
 0x1a9   : > { %v7822_v63 = vpop.permute.xlu1 %5004  ;;  %v3239_v2 = vsel %vm3207_vm2, 0.5, %v3175_v36  ;;  %v3492_v41 = vsel %vm3460_vm14, 0.16666667, %v3428_v29  ;;  %vm3524_vm1 = vcmp.eq.f32.partialorder %v10266_v60, 7.0  ;;  %vm3335_vm4 = vcmp.eq.f32.partialorder %v10274_v22, 4.0  ;;  %v7851_v29 = vpop.permute.xlu0 %5009 }
 0x1aa   : > { %5289 = vrot.lane.b32.xlu0 %v10275_v7, %s5520_s13  ;;  %v3303_v25 = vsel %vm3271_vm0, 0.33333334, %v3239_v2  ;;  %v7837_v59 = vsel %vm9851_vm5, %v7443_v33, %v4971_v28  ;;  %v7841_v52 = vsel %vm9851_vm5, %v7463_v46, %v4972_v9  ;;  %v7845_v36 = vsel %vm9851_vm5, %v7468_v30, %v4966_v56 }
 0x1ab   : > { %5294 = vrot.lane.b32.xlu1 %v10276_v16, %s5520_s13  ;;  %v7849_v16 = vsel %vm9851_vm5, %v7477_v18, %v4967_v31  ;;  %v7855_v7 = vsel %vm9851_vm5, %v7506_v27, %v4976_v32  ;;  %v7861_v46 = vsel %vm3653_vm15, 0.11111111, %v3621_v23  ;;  %v3367_v9 = vsel %vm3335_vm4, 0.25, %v3303_v25  ;;  %v10277_v31 = vld [vmem:[#allocation112_spill] sm:$0xff]  ;;  %v10280_v25 = vld [vmem:[#allocation119_spill] sm:$0xff] }
 0x1ac   : > { %vm3399_vm6 = vcmp.eq.f32.partialorder %v10274_v22, 5.0  ;;  %v7866_v30 = vsel %vm9851_vm5, %v7518_v10, %v4977_v5  ;;  %v4987_v18 = vunpack.i.h.bf16 %v7762_v26  ;;  %v3556_v27 = vsel %vm3524_vm1, 0.14285715, %v3492_v41  ;;  %v10278_v5 = vld [vmem:[#allocation118_spill] sm:$0xff] }
 0x1ad   : > { %v7857_v33 = vpop.permute.xlu1 %5014  ;;  %vm3588_vm7 = vcmp.eq.f32.partialorder %v10266_v60, 8.0  ;;  %v7876_v39 = vsel %vm9851_vm5, %v7488_v15, %v4981_v47  ;;  %v7880_v56 = vsel %vm9851_vm5, %v7501_v19, %v4982_v57  ;;  %v4992_v10 = vunpack.i.h.bf16 %v7786_v40  ;;  %v7888_v2 = vpop.permute.xlu0 %5019 }
 0x1ae   : > { %5299 = vrot.lane.b32.xlu0 %v10277_v31, %s5520_s13  ;;  %v4986_v28 = vunpack.i.l.bf16 %v7762_v26  ;;  %v4991_v32 = vunpack.i.l.bf16 %v7786_v40  ;;  %v4997_v23 = vunpack.i.h.bf16 %v7796_v17  ;;  %v3431_v41 = vsel %vm3399_vm6, 0.2, %v3367_v9  ;;  %v10279_v26 = vld [vmem:[#allocation141_spill] sm:$0xff] }
 0x1af   : > { %5304 = vrot.lane.b32.xlu1 %v10278_v5, %s5520_s13  ;;  %vm3463_vm8 = vcmp.eq.f32.partialorder %v10274_v22, 6.0  ;;  %v4996_v15 = vunpack.i.l.bf16 %v7796_v17  ;;  %v3620_v57 = vsel %vm3588_vm7, 0.125, %v3556_v27  ;;  %vm3652_vm9 = vcmp.eq.f32.partialorder %v10266_v60, 9.0  ;;  %v10281_v17 = vld [vmem:[#allocation128_spill] sm:$0xff] }
 0x1b0   : > { %vm3142_vm13 = vcmp.eq.f32.partialorder %v10279_v26, 1.0  ;;  %v5002_v47 = vunpack.i.h.bf16 %v7817_v44  ;;  %v5001_v40 = vunpack.i.l.bf16 %v7817_v44  ;;  %vm3206_vm15 = vcmp.eq.f32.partialorder %v10279_v26, 2.0 }
 0x1b1   : > { %v7892_v19 = vpop.permute.xlu1 %5024  ;;  %v3174_v9 = vsel %vm3142_vm13, 1.0, %v10157_v55  ;;  %v3495_v31 = vsel %vm3463_vm8, 0.16666667, %v3431_v41  ;;  %vm3527_vm14 = vcmp.eq.f32.partialorder %v10274_v22, 7.0  ;;  %vm3270_vm12 = vcmp.eq.f32.partialorder %v10279_v26, 3.0  ;;  %v7908_v53 = vpop.permute.xlu0 %5029 }
 0x1b2   : > { %5309 = vrot.lane.b32.xlu0 %v10280_v25, %s5520_s13  ;;  %v3238_v27 = vsel %vm3206_vm15, 0.5, %v3174_v9  ;;  %v5007_v5 = vunpack.i.h.bf16 %v7822_v63  ;;  %v5006_v44 = vunpack.i.l.bf16 %v7822_v63  ;;  %10282 = vst [vmem:[#allocation133_spill] sm:$0xff] %v7908_v53  ;;  %vm3334_vm2 = vcmp.eq.f32.partialorder %v10279_v26, 4.0 }
 0x1b3   : > { %5314 = vrot.lane.b32.xlu1 %v10281_v17, %s5520_s13  ;;  %v3302_v25 = vsel %vm3270_vm12, 0.33333334, %v3238_v27  ;;  %v7913_v13 = vsel %vm9851_vm5, %v7534_v11, %v4991_v32  ;;  %v7917_v41 = vsel %vm9851_vm5, %v7543_v61, %v4992_v10  ;;  %v7921_v9 = vsel %vm9851_vm5, %v7563_v42, %v4986_v28  ;;  %v10283_v61 = vld [vmem:[#allocation37_spill] sm:$0xff] }
 0x1b4   : > { %v7925_v63 = vsel %vm9851_vm5, %v7568_v38, %v4987_v18  ;;  %v7931_v27 = vsel %vm9851_vm5, %v7601_v35, %v4996_v15  ;;  %v7935_v11 = vsel %vm9851_vm5, %v7628_v34, %v4997_v23  ;;  %v3559_v42 = vsel %vm3527_vm14, 0.14285715, %v3495_v31  ;;  %v10284_v18 = vld [vmem:[#allocation46_spill] sm:$0xff] }
 0x1b5   : > { %v7927_v17 = vpop.permute.xlu1 %5034  ;;  %vm3591_vm0 = vcmp.eq.f32.partialorder %v10274_v22, 8.0  ;;  %v7944_v38 = vsel %vm9851_vm5, %v7582_v6, %v5001_v40  ;;  %v7950_v35 = vsel %vm3652_vm9, 0.11111111, %v3620_v57  ;;  %v3366_v34 = vsel %vm3334_vm2, 0.25, %v3302_v25  ;;  %v7966_v60 = vpop.permute.xlu0 %5039  ;;  %v10285_v40 = vld [vmem:[#allocation134_spill] sm:$0xff] }
 0x1b6   : > { %5319 = vrot.lane.b32.xlu0 %v10283_v61, %s5520_s13  ;;  %vm3398_vm1 = vcmp.eq.f32.partialorder %v10279_v26, 5.0  ;;  %v7955_v10 = vsel %vm9851_vm5, %v7587_v14, %v5002_v47  ;;  %v5012_v28 = vunpack.i.h.bf16 %v7851_v29  ;;  %v7960_v6 = vsel %vm9851_vm5, %v7650_v50, %v5006_v44 }
 0x1b7   : > { %5324 = vrot.lane.b32.xlu1 %v10284_v18, %s5520_s13  ;;  %v7964_v32 = vsel %vm9851_vm5, %v7658_v62, %v5007_v5  ;;  %v5011_v23 = vunpack.i.l.bf16 %v7851_v29  ;;  %v5017_v15 = vunpack.i.h.bf16 %v7857_v33  ;;  %v5016_v57 = vunpack.i.l.bf16 %v7857_v33  ;;  %v10286_v62 = vld [vmem:[#allocation146_spill] sm:$0xff]  ;;  %v10287_v5 = vld [vmem:[#allocation48_spill] sm:$0xff] }
 0x1b8   : > { %v3623_v47 = vsel %vm3591_vm0, 0.125, %v3559_v42  ;;  %vm3655_vm4 = vcmp.eq.f32.partialorder %v10274_v22, 9.0  ;;  %v3430_v50 = vsel %vm3398_vm1, 0.2, %v3366_v34  ;;  %vm3462_vm6 = vcmp.eq.f32.partialorder %v10279_v26, 6.0 }
 0x1b9   : > { %v7971_v14 = vpop.permute.xlu1 %5044  ;;  %vm3145_vm7 = vcmp.eq.f32.partialorder %v10286_v62, 1.0  ;;  %v5022_v31 = vunpack.i.h.bf16 %v7888_v2  ;;  %v5021_v29 = vunpack.i.l.bf16 %v7888_v2  ;;  %vm3209_vm8 = vcmp.eq.f32.partialorder %v10286_v62, 2.0  ;;  %v7986_v61 = vpop.permute.xlu0 %5049 }
 0x1ba   : > { %5329 = vrot.lane.b32.xlu0 %v10285_v40, %s5520_s13  ;;  %v3177_v33 = vsel %vm3145_vm7, 1.0, %v10157_v55  ;;  %v5027_v44 = vunpack.i.h.bf16 %v7892_v19  ;;  %v5026_v25 = vunpack.i.l.bf16 %v7892_v19  ;;  %vm3273_vm9 = vcmp.eq.f32.partialorder %v10286_v62, 3.0 }
 0x1bb   : > { %5334 = vrot.lane.b32.xlu1 %v10287_v5, %s5520_s13  ;;  %v3241_v42 = vsel %vm3209_vm8, 0.5, %v3177_v33  ;;  %v7991_v18 = vsel %vm9851_vm5, %v7633_v3, %v5011_v23  ;;  %v7995_v2 = vsel %vm9851_vm5, %v7645_v43, %v5012_v28  ;;  %vm9850_vm13 = vcmask 162816   ;;  %v10288_v3 = vld [vmem:[#allocation56_spill] sm:$0xff] }
 0x1bc   : > { %v3494_v40 = vsel %vm3462_vm6, 0.16666667, %v3430_v50  ;;  %vm3526_vm15 = vcmp.eq.f32.partialorder %v10279_v26, 7.0  ;;  %v8004_v19 = vsel %vm9851_vm5, %v7675_v21, %v5016_v57  ;;  %v5036_v5 = vunpack.i.l.bf16 %v7927_v17  ;;  %v10289_v57 = vld [vmem:[#allocation67_spill] sm:$0xff] }
 0x1bd   : > { %v7997_v34 = vpop.permute.xlu1 %5054  ;;  %v3305_v23 = vsel %vm3273_vm9, 0.33333334, %v3241_v42  ;;  %vm3337_vm14 = vcmp.eq.f32.partialorder %v10286_v62, 4.0  ;;  %v8012_v43 = vsel %vm9851_vm5, %v7747_v4, %v5021_v29  ;;  %v8016_v28 = vsel %vm9851_vm5, %v7750_v51, %v5022_v31  ;;  %v8036_v51 = vpop.permute.xlu0 %5059 }
 0x1be   : > { %5339 = vrot.lane.b32.xlu0 %v10288_v3, %s5520_s13  ;;  %v8020_v21 = vsel %vm9851_vm5, %v7680_v8, %v5017_v15  ;;  %v8026_v50 = vsel %vm3655_vm4, 0.11111111, %v3623_v47  ;;  %v8030_v33 = vsel %vm9851_vm5, %v7766_v24, %v5026_v25  ;;  %v8034_v4 = vsel %vm9851_vm5, %v7773_v58, %v5027_v44  ;;  %v10291_v25 = vld [vmem:[#allocation66_spill] sm:$0xff]  ;;  %v10295_v15 = vld [vmem:[#allocation165_spill] sm:$0xff] }
 0x1bf   : > { %5344 = vrot.lane.b32.xlu1 %v10289_v57, %s5520_s13  ;;  %v3558_v31 = vsel %vm3526_vm15, 0.14285715, %v3494_v40  ;;  %vm3590_vm12 = vcmp.eq.f32.partialorder %v10279_v26, 8.0  ;;  %v3369_v47 = vsel %vm3337_vm14, 0.25, %v3305_v23  ;;  %vm3401_vm2 = vcmp.eq.f32.partialorder %v10286_v62, 5.0  ;;  %v10292_v40 = vld [vmem:[#allocation136_spill] sm:$0xff] }
 0x1c0   : > { %v5042_v24 = vunpack.i.h.bf16 %v7966_v60  ;;  %v5041_v29 = vunpack.i.l.bf16 %v7966_v60  ;;  %v5037_v58 = vunpack.i.h.bf16 %v7927_v17  ;;  %v8049_v44 = vsel %vm9851_vm5, %v7784_v37, %v5036_v5  ;;  %v10293_v23 = vld [vmem:[#allocation143_spill] sm:$0xff]  ;;  %v10294_v8 = vld [vmem:[#allocation166_spill] sm:$0xff] }
 0x1c1   : > { %v8041_v22 = vpop.permute.xlu1 %5064  ;;  %10290 = vst [vmem:[#allocation81_spill] sm:$0xff] %v8049_v44  ;;  %v5046_v42 = vunpack.i.l.bf16 %v7971_v14  ;;  %v3622_v3 = vsel %vm3590_vm12, 0.125, %v3558_v31  ;;  %vm3654_vm0 = vcmp.eq.f32.partialorder %v10279_v26, 9.0  ;;  %vm3144_vm1 = vcmp.eq.f32.partialorder %v10293_v23, 1.0  ;;  %v8058_v60 = vpop.permute.xlu0 %5069  ;;  %v10297_v44 = vld [vmem:[#allocation88_spill] sm:$0xff] }
 0x1c2   : > { %5349 = vrot.lane.b32.xlu0 %v10291_v25, %s5520_s13  ;;  %v3433_v17 = vsel %vm3401_vm2, 0.2, %v3369_v47  ;;  %vm3465_vm4 = vcmp.eq.f32.partialorder %v10286_v62, 6.0  ;;  %v3176_v37 = vsel %vm3144_vm1, 1.0, %v10157_v55  ;;  %vm3208_vm6 = vcmp.eq.f32.partialorder %v10293_v23, 2.0 }
 0x1c3   : > { %5354 = vrot.lane.b32.xlu1 %v10292_v40, %s5520_s13  ;;  %v5051_v5 = vunpack.i.l.bf16 %v7986_v61  ;;  %v5047_v57 = vunpack.i.h.bf16 %v7971_v14  ;;  %v3240_v31 = vsel %vm3208_vm6, 0.5, %v3176_v37  ;;  %vm3272_vm7 = vcmp.eq.f32.partialorder %v10293_v23, 3.0 }
 0x1c4   : > { %v8070_v40 = vsel %vm9851_vm5, %v7793_v48, %v5037_v58  ;;  %v5052_v47 = vunpack.i.h.bf16 %v7986_v61  ;;  %v10296_v53 = vpack.i.bf16 %v10294_v8, %v10295_v15  ;;  %v3304_v0 = vsel %vm3272_vm7, 0.33333334, %v3240_v31  ;;  %v10301_v31 = vld [vmem:[#allocation86_spill] sm:$0xff] }
 0x1c5   : > { %v8065_v25 = vpop.permute.xlu1 %5074  ;;  %vm3336_vm8 = vcmp.eq.f32.partialorder %v10293_v23, 4.0  ;;  %v5057_v14 = vunpack.i.h.bf16 %v7997_v34  ;;  %v5056_v37 = vunpack.i.l.bf16 %v7997_v34  ;;  %v3497_v48 = vsel %vm3465_vm4, 0.16666667, %v3433_v17  ;;  %v8096_v34 = vpop.permute.xlu0 %5079 }
 0x1c6   : > { %5359 = vrot.lane.b32.xlu0 %v10296_v53, %s5520_s13  ;;  %vm3529_vm9 = vcmp.eq.f32.partialorder %v10286_v62, 7.0  ;;  %v8086_v61 = vsel %vm9851_vm5, %v7800_v12, %v5041_v29  ;;  %v8090_v53 = vsel %vm9851_vm5, %v7809_v1, %v5042_v24  ;;  %v8094_v8 = vsel %vm9850_vm13, %v7845_v36, %v5046_v42  ;;  %v10298_v29 = vld [vmem:[#allocation14_spill] sm:$0xff]  ;;  %v10299_v42 = vld [vmem:[#allocation101_spill] sm:$0xff]  ;;  %s5449_s13 = scalar_lea.vmem %s9391_s9, 256 }
 0x1c7   : > { %3710 = vperm.xlu1 %4597, %v10297_v44   ;;  %v8100_v15 = vsel %vm3654_vm0, 0.11111111, %v3622_v3  ;;  %v8104_v58 = vsel %vm9850_vm13, %v7837_v59, %v5051_v5  ;;  %v8108_v12 = vsel %vm9850_vm13, %v7849_v16, %v5047_v57  ;;  %v3368_v24 = vsel %vm3336_vm8, 0.25, %v3304_v0  ;;  %p5450_p11 = scmp.ne.s32.totalorder %s9391_s9, %s5449_s13  ;;  %p5457_p1 = scmp.lt.s32.totalorder %s5455_s22, %s5449_s13 }
 0x1c8   : > { %vm3400_vm15 = vcmp.eq.f32.partialorder %v10293_v23, 5.0  ;;  %v8115_v36 = vsel %vm9850_vm13, %v7841_v52, %v5052_v47  ;;  %v5061_v26 = vunpack.i.l.bf16 %v8036_v51  ;;  %v3561_v44 = vsel %vm3529_vm9, 0.14285715, %v3497_v48 }
 0x1c9   : > { %v8110_v1 = vpop.permute.xlu1 %5084  ;;  %vm3593_vm14 = vcmp.eq.f32.partialorder %v10286_v62, 8.0  ;;  %v5062_v59 = vunpack.i.h.bf16 %v8036_v51  ;;  %v8123_v16 = vsel %vm9850_vm13, %v7855_v7, %v5056_v37  ;;  %v8127_v0 = vsel %vm9850_vm13, %v7866_v30, %v5057_v14  ;;  %v8132_v17 = vpop.permute.xlu0 %5089  ;;  %v10300_v51 = vld [vmem:[#allocation150_spill] sm:$0xff]  ;;  %p5451_p12 = pnand %p5450_p11, %p5586_p5  ;;  %p5458_p2 = por %p5457_p1, %p5456_p0 }
 0x1ca   : > { %3715 = vperm.xlu0 %4586, %v10298_v29   ;;  %v5067_v52 = vunpack.i.h.bf16 %v8041_v22  ;;  %v5066_v3 = vunpack.i.l.bf16 %v8041_v22  ;;  %v3432_v5 = vsel %vm3400_vm15, 0.2, %v3368_v24  ;;  %vm3464_vm12 = vcmp.eq.f32.partialorder %v10293_v23, 6.0 }
 0x1cb   : > { %3720 = vperm.xlu1 %4597, %v10299_v42   ;;  %vm3147_vm2 = vcmp.eq.f32.partialorder %v10300_v51, 1.0  ;;  %v3625_v57 = vsel %vm3593_vm14, 0.125, %v3561_v44  ;;  %vm3657_vm0 = vcmp.eq.f32.partialorder %v10286_v62, 9.0  ;;  %vm3211_vm1 = vcmp.eq.f32.partialorder %v10300_v51, 2.0  ;;  %p5452_p13 = pneg %p5451_p12 }
 0x1cc   : > { %v3179_v7 = vsel %vm3147_vm2, 1.0, %v10157_v55  ;;  %v8141_v30 = vsel %vm9850_vm13, %v7876_v39, %v5061_v26  ;;  %v5071_v22 = vunpack.i.l.bf16 %v8058_v60  ;;  %vm3275_vm4 = vcmp.eq.f32.partialorder %v10300_v51, 3.0 }
 0x1cd   : > { %v8145_v47 = vpop.permute.xlu1 %5094  ;;  %v3243_v14 = vsel %vm3211_vm1, 0.5, %v3179_v7  ;;  %v5072_v37 = vunpack.i.h.bf16 %v8058_v60  ;;  %v5077_v48 = vunpack.i.h.bf16 %v8065_v25  ;;  %v3496_v24 = vsel %vm3464_vm12, 0.16666667, %v3432_v5  ;;  %v8154_v29 = vpop.permute.xlu0 %5099  ;;  %p5459_p3 = pnand %p5458_p2, %p5452_p13 }
 0x1ce   : > { %3725 = vperm.xlu0 %4586, %v10301_v31   ;;  %vm3528_vm6 = vcmp.eq.f32.partialorder %v10293_v23, 7.0  ;;  %v5081_v39 = vunpack.i.l.bf16 %v8096_v34  ;;  %v5076_v26 = vunpack.i.l.bf16 %v8065_v25  ;;  %v3307_v44 = vsel %vm3275_vm4, 0.33333334, %v3243_v14 }
 0x1cf   : > { %3730 = vperm.xlu1 %4597, %v7591_v49   ;;  %vm3339_vm7 = vcmp.eq.f32.partialorder %v10300_v51, 4.0  ;;  %v8159_v42 = vsel %vm9850_vm13, %v7880_v56, %v5062_v59  ;;  %v8163_v60 = vsel %vm9850_vm13, %v7921_v9, %v5066_v3  ;;  %v5082_v49 = vunpack.i.h.bf16 %v8096_v34  ;;  %v10303_v3 = vld [vmem:[#allocation149_spill] sm:$0xff] }
 0x1d0   : > { %v8168_v5 = vsel %vm3657_vm0, 0.11111111, %v3625_v57  ;;  %v8172_v25 = vsel %vm9850_vm13, %v7913_v13, %v5071_v22  ;;  %v8176_v7 = vsel %vm9850_vm13, %v7925_v63, %v5067_v52  ;;  %v3560_v56 = vsel %vm3528_vm6, 0.14285715, %v3496_v24 }
 0x1d1   : > { %vm3592_vm8 = vcmp.eq.f32.partialorder %v10293_v23, 8.0  ;;  %v8182_v9 = vsel %vm9850_vm13, %v7917_v41, %v5072_v37  ;;  %v5086_v62 = vunpack.i.l.bf16 %v8110_v1  ;;  %v3371_v34 = vsel %vm3339_vm7, 0.25, %v3307_v44  ;;  %v8200_v59 = vpop.permute.xlu0 %5109 }
 0x1d2   : > { %3735 = vperm.xlu0 %4586, %v7447_v54   ;;  %vm3403_vm9 = vcmp.eq.f32.partialorder %v10300_v51, 5.0  ;;  %v8189_v13 = vsel %vm9850_vm13, %v7944_v38, %v5081_v39  ;;  %v8193_v54 = vsel %vm9850_vm13, %v7931_v27, %v5076_v26  ;;  %v8197_v63 = vsel %vm9850_vm13, %v7935_v11, %v5077_v48  ;;  %10302 = vst [vmem:[#allocation82_spill] sm:$0xff] %v8200_v59 }
 0x1d3   : > { %3740 = vperm.xlu1 %4597, %v7790_v20   ;;  %v5087_v41 = vunpack.i.h.bf16 %v8110_v1  ;;  %v8202_v20 = vpop.permute.xlu1 %5104  ;;  %v8206_v52 = vsel %vm9850_vm13, %v7955_v10, %v5082_v49  ;;  %v3624_v38 = vsel %vm3592_vm8, 0.125, %v3560_v56  ;;  %vm3656_vm15 = vcmp.eq.f32.partialorder %v10293_v23, 9.0 }
 0x1d4   : > { %vm3146_vm14 = vcmp.eq.f32.partialorder %v10303_v3, 1.0  ;;  %v3435_v27 = vsel %vm3403_vm9, 0.2, %v3371_v34  ;;  %vm3467_vm12 = vcmp.eq.f32.partialorder %v10300_v51, 6.0  ;;  %vm3210_vm2 = vcmp.eq.f32.partialorder %v10303_v3, 2.0 }
 0x1d5   : > { %v3178_v11 = vsel %vm3146_vm14, 1.0, %v10157_v55  ;;  %v5091_v1 = vunpack.i.l.bf16 %v8132_v17  ;;  %v8217_v10 = vsel %vm9850_vm13, %v7960_v6, %v5086_v62  ;;  %vm3274_vm0 = vcmp.eq.f32.partialorder %v10303_v3, 3.0  ;;  %v10304_v62 = vld [vmem:[#allocation152_spill] sm:$0xff] }
 0x1d6   : > { %3745 = vperm.xlu0 %4586, %v7733_v45   ;;  %v3242_v57 = vsel %vm3210_vm2, 0.5, %v3178_v11  ;;  %v5092_v45 = vunpack.i.h.bf16 %v8132_v17  ;;  %v5096_v22 = vunpack.i.l.bf16 %v8145_v47  ;;  %vm3338_vm1 = vcmp.eq.f32.partialorder %v10303_v3, 4.0 }
 0x1d7   : > { %3750 = vperm.xlu1 %4597, %v7950_v35   ;;  %v3306_v31 = vsel %vm3274_vm0, 0.33333334, %v3242_v57  ;;  %v3499_v14 = vsel %vm3467_vm12, 0.16666667, %v3435_v27  ;;  %vm3531_vm4 = vcmp.eq.f32.partialorder %v10300_v51, 7.0  ;;  %vm3402_vm6 = vcmp.eq.f32.partialorder %v10303_v3, 5.0  ;;  %v8231_v48 = vpop.permute.xlu0 %5119  ;;  %v5115_v17 = vpop.permute.xlu1 %5114 }
 0x1d8   : > { %v3370_v37 = vsel %vm3338_vm1, 0.25, %v3306_v31  ;;  %v8228_v6 = vsel %vm9850_vm13, %v7964_v32, %v5087_v41  ;;  %v5097_v35 = vunpack.i.h.bf16 %v8145_v47  ;;  %vm3466_vm7 = vcmp.eq.f32.partialorder %v10303_v3, 6.0 }
 0x1d9   : > { %v3434_v24 = vsel %vm3402_vm6, 0.2, %v3370_v37  ;;  %v8237_v39 = vsel %vm9850_vm13, %v7991_v18, %v5091_v1  ;;  %v3688_v32 = vsel %vm3656_vm15, 0.11111111, %v3624_v38  ;;  %vm3530_vm8 = vcmp.eq.f32.partialorder %v10303_v3, 7.0 }
 0x1da   : > { %3755 = vperm.xlu0 %4586, %v7861_v46   ;;  %v3498_v26 = vsel %vm3466_vm7, 0.16666667, %v3434_v24  ;;  %v3563_v47 = vsel %vm3531_vm4, 0.14285715, %v3499_v14  ;;  %vm3595_vm9 = vcmp.eq.f32.partialorder %v10300_v51, 8.0  ;;  %vm3594_vm14 = vcmp.eq.f32.partialorder %v10303_v3, 8.0 }
 0x1db   : > { %3760 = vperm.xlu1 %4597, %v8100_v15   ;;  %v3562_v44 = vsel %vm3530_vm8, 0.14285715, %v3498_v26  ;;  %v8247_v46 = vsel %vm9850_vm13, %v7995_v2, %v5092_v45  ;;  %v8251_v18 = vsel %vm9850_vm13, %v8004_v19, %v5096_v22  ;;  %vm3658_vm15 = vcmp.eq.f32.partialorder %v10303_v3, 9.0  ;;  %v8265_v41 = vpop.permute.xlu0 %5129  ;;  %v5125_v38 = vpop.permute.xlu1 %5124 }
 0x1dc   : > { %v3626_v15 = vsel %vm3594_vm14, 0.125, %v3562_v44  ;;  %v5102_v23 = vunpack.i.h.bf16 %v8154_v29  ;;  %v5101_v49 = vunpack.i.l.bf16 %v8154_v29  ;;  %v8258_v56 = vsel %vm9850_vm13, %v8020_v21, %v5097_v35  ;;  %v10308_v44 = vld [vmem:[#allocation151_spill] sm:$0xff] }
 0x1dd   : > { %vm3149_vm12 = vcmp.eq.f32.partialorder %v10304_v62, 1.0  ;;  %v5106_v2 = vunpack.i.l.bf16 %v8202_v20  ;;  %v3627_v19 = vsel %vm3595_vm9, 0.125, %v3563_v47  ;;  %vm3213_vm2 = vcmp.eq.f32.partialorder %v10304_v62, 2.0 }
 0x1de   : > { %3765 = vperm.xlu0 %4586, %v8026_v50   ;;  %v3181_v34 = vsel %vm3149_vm12, 1.0, %v10157_v55  ;;  %vm3659_vm0 = vcmp.eq.f32.partialorder %v10300_v51, 9.0  ;;  %v3690_v29 = vsel %vm3658_vm15, 0.11111111, %v3626_v15  ;;  %vm3277_vm1 = vcmp.eq.f32.partialorder %v10304_v62, 3.0 }
 0x1df   : > { %3770 = vperm.xlu1 %4597, %v3688_v32   ;;  %v3245_v21 = vsel %vm3213_vm2, 0.5, %v3181_v34  ;;  %v5107_v50 = vunpack.i.h.bf16 %v8202_v20  ;;  %v5116_v3 = vunpack.i.l.bf16 %v5115_v17  ;;  %vm1919_vm4 = vcmask 195584   ;;  %v5135_v24 = vpop.permute.xlu1 %5134 }
 0x1e0   : > { %v3309_v27 = vsel %vm3277_vm1, 0.33333334, %v3245_v21  ;;  %vm3341_vm6 = vcmp.eq.f32.partialorder %v10304_v62, 4.0  ;;  %v8273_v11 = vsel %vm9850_vm13, %v8012_v43, %v5101_v49  ;;  %v5117_v1 = vunpack.i.h.bf16 %v5115_v17  ;;  %v8302_v17 = vpop.permute.xlu0 %5139 }
 0x1e1   : > { %v3373_v57 = vsel %vm3341_vm6, 0.25, %v3309_v27  ;;  %vm3405_vm7 = vcmp.eq.f32.partialorder %v10304_v62, 5.0  ;;  %v8279_v51 = vsel %vm9850_vm13, %v8016_v28, %v5102_v23  ;;  %v3691_v20 = vsel %vm3659_vm0, 0.11111111, %v3627_v19  ;;  %v10307_v28 = vld [vmem:[#allocation81_spill] sm:$0xff] }
 0x1e2   : > { %3775 = vperm.xlu0 %4586, %v8168_v5   ;;  %v3437_v45 = vsel %vm3405_vm7, 0.2, %v3373_v57  ;;  %vm3469_vm8 = vcmp.eq.f32.partialorder %v10304_v62, 6.0  ;;  %v8284_v22 = vsel %vm9850_vm13, %v8030_v33, %v5106_v2  ;;  %v5121_v43 = vunpack.i.l.bf16 %v8231_v48 }
 0x1e3   : > { %3780 = vperm.xlu1 %4597, %v3690_v29   ;;  %10305 = vst [vmem:[#allocation35_spill] sm:$0xff] %v8284_v22  ;;  %v3501_v31 = vsel %vm3469_vm8, 0.16666667, %v3437_v45  ;;  %vm3533_vm9 = vcmp.eq.f32.partialorder %v10304_v62, 7.0  ;;  %v8290_v5 = vsel %vm9850_vm13, %v8034_v4, %v5107_v50  ;;  %v8294_v14 = vsel %vm9850_vm13, %v10307_v28, %v5116_v3  ;;  %v8342_v3 = vpop.permute.xlu1 %5144 }
 0x1e4   : > { %10306 = vst [vmem:[#allocation125_spill] sm:$0xff] %v8290_v5  ;;  %v3565_v37 = vsel %vm3533_vm9, 0.14285715, %v3501_v31  ;;  %vm3597_vm14 = vcmp.eq.f32.partialorder %v10304_v62, 8.0  ;;  %v5122_v35 = vunpack.i.h.bf16 %v8231_v48  ;;  %v8300_v33 = vsel %vm9850_vm13, %v8070_v40, %v5117_v1  ;;  %v8331_v29 = vpop.permute.xlu0 %5149  ;;  %v10309_v1 = vld [vmem:[#allocation154_spill] sm:$0xff] }
 0x1e5   : > { %v3629_v32 = vsel %vm3597_vm14, 0.125, %v3565_v37  ;;  %vm3661_vm15 = vcmp.eq.f32.partialorder %v10304_v62, 9.0  ;;  %v5127_v4 = vunpack.i.h.bf16 %v5125_v38  ;;  %v5126_v26 = vunpack.i.l.bf16 %v5125_v38  ;;  %v10310_v37 = vld [vmem:[#allocation153_spill] sm:$0xff] }
 0x1e6   : > { %3785 = vperm.xlu0 %4586, %v3691_v20   ;;  %v3693_v47 = vsel %vm3661_vm15, 0.11111111, %v3629_v32  ;;  %vm3148_vm12 = vcmp.eq.f32.partialorder %v10308_v44, 1.0  ;;  %v8308_v15 = vsel %vm9850_vm13, %v8086_v61, %v5121_v43  ;;  %v5132_v48 = vunpack.i.h.bf16 %v8265_v41 }
 0x1e7   : > { %v3180_v40 = vsel %vm3148_vm12, 1.0, %v10157_v55  ;;  %vm3212_vm2 = vcmp.eq.f32.partialorder %v10308_v44, 2.0  ;;  %v5131_v23 = vunpack.i.l.bf16 %v8265_v41  ;;  %v5136_v49 = vunpack.i.l.bf16 %v5135_v24 }
 0x1e8   : > { %v3244_v2 = vsel %vm3212_vm2, 0.5, %v3180_v40  ;;  %vm3276_vm0 = vcmp.eq.f32.partialorder %v10308_v44, 3.0  ;;  %vm3340_vm1 = vcmp.eq.f32.partialorder %v10308_v44, 4.0  ;;  %vm3404_vm6 = vcmp.eq.f32.partialorder %v10308_v44, 5.0  ;;  %v8363_v28 = vpop.permute.xlu0 %5159 }
 0x1e9   : > { %v3308_v62 = vsel %vm3276_vm0, 0.33333334, %v3244_v2  ;;  %vm3468_vm7 = vcmp.eq.f32.partialorder %v10308_v44, 6.0  ;;  %v8320_v61 = vsel %vm9850_vm13, %v8090_v53, %v5122_v35  ;;  %v5137_v19 = vunpack.i.h.bf16 %v5135_v24  ;;  %v8368_v35 = vpop.permute.xlu1 %5154 }
 0x1ea   : > { %3795 = vperm.xlu0 %4586, %v3693_v47   ;;  %v3372_v34 = vsel %vm3340_vm1, 0.25, %v3308_v62  ;;  %vm3532_vm8 = vcmp.eq.f32.partialorder %v10308_v44, 7.0  ;;  %v8325_v41 = vsel %vm1919_vm4, %v8094_v8, %v5126_v26  ;;  %v8329_v38 = vsel %vm1919_vm4, %v8108_v12, %v5127_v4 }
 0x1eb   : > { %v3436_v21 = vsel %vm3404_vm6, 0.2, %v3372_v34  ;;  %vm3596_vm9 = vcmp.eq.f32.partialorder %v10308_v44, 8.0  ;;  %v8336_v53 = vsel %vm1919_vm4, %v8104_v58, %v5131_v23  ;;  %v8340_v50 = vsel %vm1919_vm4, %v8115_v36, %v5132_v48 }
 0x1ec   : > { %v3500_v8 = vsel %vm3468_vm7, 0.16666667, %v3436_v21  ;;  %vm3660_vm14 = vcmp.eq.f32.partialorder %v10308_v44, 9.0  ;;  %v8347_v12 = vsel %vm1919_vm4, %v8123_v16, %v5136_v49  ;;  %vm3151_vm15 = vcmp.eq.f32.partialorder %v10309_v1, 1.0 }
 0x1ed   : > { %v3564_v27 = vsel %vm3532_vm8, 0.14285715, %v3500_v8  ;;  %vm3215_vm12 = vcmp.eq.f32.partialorder %v10309_v1, 2.0  ;;  %v5142_v58 = vunpack.i.h.bf16 %v8302_v17  ;;  %v5141_v57 = vunpack.i.l.bf16 %v8302_v17  ;;  %v8400_v8 = vpop.permute.xlu1 %5164 }
 0x1ee   : > { %v8355_v36 = vsel %vm1919_vm4, %v8127_v0, %v5137_v19  ;;  %v3628_v20 = vsel %vm3596_vm9, 0.125, %v3564_v27  ;;  %v3183_v43 = vsel %vm3151_vm15, 1.0, %v10157_v55  ;;  %vm3279_vm2 = vcmp.eq.f32.partialorder %v10309_v1, 3.0  ;;  %v8392_v19 = vpop.permute.xlu0 %5169 }
 0x1ef   : > { %v3692_v45 = vsel %vm3660_vm14, 0.11111111, %v3628_v20  ;;  %vm3343_vm0 = vcmp.eq.f32.partialorder %v10309_v1, 4.0  ;;  %v5146_v16 = vunpack.i.l.bf16 %v8342_v3  ;;  %v3247_v31 = vsel %vm3215_vm12, 0.5, %v3183_v43 }
 0x1f0   : > { %3790 = vperm.xlu1 %4597, %v3692_v45   ;;  %vm3407_vm1 = vcmp.eq.f32.partialorder %v10309_v1, 5.0  ;;  %vm3471_vm6 = vcmp.eq.f32.partialorder %v10309_v1, 6.0  ;;  %v3311_v0 = vsel %vm3279_vm2, 0.33333334, %v3247_v31  ;;  %vm3535_vm7 = vcmp.eq.f32.partialorder %v10309_v1, 7.0 }
 0x1f1   : > { %vm3599_vm8 = vcmp.eq.f32.partialorder %v10309_v1, 8.0  ;;  %vm3150_vm9 = vcmp.eq.f32.partialorder %v10310_v37, 1.0  ;;  %v3375_v17 = vsel %vm3343_vm0, 0.25, %v3311_v0  ;;  %vm3214_vm14 = vcmp.eq.f32.partialorder %v10310_v37, 2.0 }
 0x1f2   : > { %v3182_v24 = vsel %vm3150_vm9, 1.0, %v10157_v55  ;;  %vm3278_vm15 = vcmp.eq.f32.partialorder %v10310_v37, 3.0  ;;  %v3439_v32 = vsel %vm3407_vm1, 0.2, %v3375_v17  ;;  %vm3342_vm12 = vcmp.eq.f32.partialorder %v10310_v37, 4.0  ;;  %v8415_v31 = vpop.permute.xlu0 %5179 }
 0x1f3   : > { %v3246_v4 = vsel %vm3214_vm14, 0.5, %v3182_v24  ;;  %vm3406_vm2 = vcmp.eq.f32.partialorder %v10310_v37, 5.0  ;;  %v3503_v26 = vsel %vm3471_vm6, 0.16666667, %v3439_v32  ;;  %vm3663_vm13 = vcmp.eq.f32.partialorder %v10309_v1, 9.0  ;;  %v10311_v1 = vld [vmem:[#allocation156_spill] sm:$0xff] }
 0x1f4   : > { %v3310_v47 = vsel %vm3278_vm15, 0.33333334, %v3246_v4  ;;  %vm3470_vm5 = vcmp.eq.f32.partialorder %v10310_v37, 6.0  ;;  %v5147_v44 = vunpack.i.h.bf16 %v8342_v3  ;;  %v3567_v48 = vsel %vm3535_vm7, 0.14285715, %v3503_v26 }
 0x1f5   : > { %v3374_v40 = vsel %vm3342_vm12, 0.25, %v3310_v47  ;;  %vm3534_vm0 = vcmp.eq.f32.partialorder %v10310_v37, 7.0  ;;  %v8383_v23 = vsel %vm1919_vm4, %v8141_v30, %v5141_v57  ;;  %v3631_v49 = vsel %vm3599_vm8, 0.125, %v3567_v48 }
 0x1f6   : > { %v3438_v2 = vsel %vm3406_vm2, 0.2, %v3374_v40  ;;  %vm3598_vm1 = vcmp.eq.f32.partialorder %v10310_v37, 8.0  ;;  %v8390_v62 = vsel %vm1919_vm4, %v8159_v42, %v5142_v58  ;;  %v3695_v34 = vsel %vm3663_vm13, 0.11111111, %v3631_v49 }
 0x1f7   : > { %v3502_v21 = vsel %vm3470_vm5, 0.16666667, %v3438_v2  ;;  %vm3662_vm6 = vcmp.eq.f32.partialorder %v10310_v37, 9.0  ;;  %v5152_v3 = vunpack.i.h.bf16 %v8331_v29  ;;  %v8398_v30 = vsel %vm1919_vm4, %v8163_v60, %v5146_v16  ;;  %3805 = vperm.xlu0 %4586, %v3695_v34   ;;  %v10312_v16 = vld [vmem:[#allocation155_spill] sm:$0xff] }
 0x1f8   : > { %v3566_v27 = vsel %vm3534_vm0, 0.14285715, %v3502_v21  ;;  %vm3153_vm7 = vcmp.eq.f32.partialorder %v10311_v1, 1.0  ;;  %v5151_v42 = vunpack.i.l.bf16 %v8331_v29  ;;  %v5157_v58 = vunpack.i.h.bf16 %v8368_v35 }
 0x1f9   : > { %v3630_v57 = vsel %vm3598_vm1, 0.125, %v3566_v27  ;;  %v3185_v20 = vsel %vm3153_vm7, 1.0, %v10157_v55  ;;  %vm3217_vm5 = vcmp.eq.f32.partialorder %v10311_v1, 2.0  ;;  %vm3281_vm13 = vcmp.eq.f32.partialorder %v10311_v1, 3.0 }
 0x1fa   : > { %v3694_v45 = vsel %vm3662_vm6, 0.11111111, %v3630_v57  ;;  %vm3345_vm8 = vcmp.eq.f32.partialorder %v10311_v1, 4.0  ;;  %v5156_v60 = vunpack.i.l.bf16 %v8368_v35  ;;  %v3249_v43 = vsel %vm3217_vm5, 0.5, %v3185_v20  ;;  %v8420_v35 = vpop.permute.xlu1 %5174 }
 0x1fb   : > { %3800 = vperm.xlu1 %4597, %v3694_v45   ;;  %vm3409_vm9 = vcmp.eq.f32.partialorder %v10311_v1, 5.0  ;;  %vm3473_vm14 = vcmp.eq.f32.partialorder %v10311_v1, 6.0  ;;  %v3313_v29 = vsel %vm3281_vm13, 0.33333334, %v3249_v43  ;;  %vm3537_vm15 = vcmp.eq.f32.partialorder %v10311_v1, 7.0 }
 0x1fc   : > { %vm3601_vm12 = vcmp.eq.f32.partialorder %v10311_v1, 8.0  ;;  %vm3152_vm2 = vcmp.eq.f32.partialorder %v10312_v16, 1.0  ;;  %v3377_v0 = vsel %vm3345_vm8, 0.25, %v3313_v29  ;;  %vm3216_vm0 = vcmp.eq.f32.partialorder %v10312_v16, 2.0 }
 0x1fd   : > { %v3184_v37 = vsel %vm3152_vm2, 1.0, %v10157_v55  ;;  %vm3280_vm1 = vcmp.eq.f32.partialorder %v10312_v16, 3.0  ;;  %v3441_v17 = vsel %vm3409_vm9, 0.2, %v3377_v0  ;;  %vm3344_vm6 = vcmp.eq.f32.partialorder %v10312_v16, 4.0 }
 0x1fe   : > { %v3248_v24 = vsel %vm3216_vm0, 0.5, %v3184_v37  ;;  %vm3408_vm7 = vcmp.eq.f32.partialorder %v10312_v16, 5.0  ;;  %v3505_v32 = vsel %vm3473_vm14, 0.16666667, %v3441_v17  ;;  %vm3665_vm5 = vcmp.eq.f32.partialorder %v10311_v1, 9.0  ;;  %v8453_v1 = vpop.permute.xlu0 %5189  ;;  %v8458_v20 = vpop.permute.xlu1 %5184 }
 0x1ff   : > { %v3312_v4 = vsel %vm3280_vm1, 0.33333334, %v3248_v24  ;;  %vm3472_vm13 = vcmp.eq.f32.partialorder %v10312_v16, 6.0  ;;  %v8428_v26 = vsel %vm1919_vm4, %v8176_v7, %v5147_v44  ;;  %v3569_v47 = vsel %vm3537_vm15, 0.14285715, %v3505_v32  ;;  %10313 = vst [vmem:[#allocation85_spill] sm:$0xff] %v8453_v1 }
 0x200   : > { %v3376_v48 = vsel %vm3344_vm6, 0.25, %v3312_v4  ;;  %vm3536_vm8 = vcmp.eq.f32.partialorder %v10312_v16, 7.0  ;;  %v8435_v40 = vsel %vm1919_vm4, %v8172_v25, %v5151_v42  ;;  %v3633_v49 = vsel %vm3601_vm12, 0.125, %v3569_v47  ;;  %v10314_v42 = vld [vmem:[#allocation157_spill] sm:$0xff]  ;;  %10315 = vst [vmem:[#allocation71_spill] sm:$0xff] %v8458_v20 }
 0x201   : > { %v3440_v2 = vsel %vm3408_vm7, 0.2, %v3376_v48  ;;  %vm3600_vm9 = vcmp.eq.f32.partialorder %v10312_v16, 8.0  ;;  %v8442_v7 = vsel %vm1919_vm4, %v8182_v9, %v5152_v3  ;;  %v3697_v44 = vsel %vm3665_vm5, 0.11111111, %v3633_v49 }
 0x202   : > { %v3504_v34 = vsel %vm3472_vm13, 0.16666667, %v3440_v2  ;;  %vm3664_vm14 = vcmp.eq.f32.partialorder %v10312_v16, 9.0  ;;  %v8447_v21 = vsel %vm1919_vm4, %v8193_v54, %v5156_v60  ;;  %v8451_v25 = vsel %vm1919_vm4, %v8197_v63, %v5157_v58  ;;  %3815 = vperm.xlu0 %4586, %v3697_v44   ;;  %v10316_v60 = vld [vmem:[#allocation72_spill] sm:$0xff]  ;;  %v5200_v37 = vpop.permute.xlu0 %5199  ;;  %v5195_v32 = vpop.permute.xlu1 %5194 }
 0x203   : > { %v3568_v27 = vsel %vm3536_vm8, 0.14285715, %v3504_v34  ;;  %vm3155_vm15 = vcmp.eq.f32.partialorder %v10314_v42, 1.0  ;;  %v5162_v9 = vunpack.i.h.bf16 %v8363_v28  ;;  %v5161_v3 = vunpack.i.l.bf16 %v8363_v28 }
 0x204   : > { %v3632_v57 = vsel %vm3600_vm9, 0.125, %v3568_v27  ;;  %v3187_v54 = vsel %vm3155_vm15, 1.0, %v10157_v55  ;;  %vm3219_vm12 = vcmp.eq.f32.partialorder %v10314_v42, 2.0  ;;  %vm3283_vm2 = vcmp.eq.f32.partialorder %v10314_v42, 3.0 }
 0x205   : > { %v3696_v45 = vsel %vm3664_vm14, 0.11111111, %v3632_v57  ;;  %vm3347_vm0 = vcmp.eq.f32.partialorder %v10314_v42, 4.0  ;;  %v3251_v63 = vsel %vm3219_vm12, 0.5, %v3187_v54  ;;  %vm3411_vm1 = vcmp.eq.f32.partialorder %v10314_v42, 5.0 }
 0x206   : > { %3810 = vperm.xlu1 %4597, %v3696_v45   ;;  %vm3475_vm6 = vcmp.eq.f32.partialorder %v10314_v42, 6.0  ;;  %vm3539_vm7 = vcmp.eq.f32.partialorder %v10314_v42, 7.0  ;;  %v3315_v58 = vsel %vm3283_vm2, 0.33333334, %v3251_v63  ;;  %vm3603_vm5 = vcmp.eq.f32.partialorder %v10314_v42, 8.0 }
 0x207   : > { %vm3667_vm13 = vcmp.eq.f32.partialorder %v10314_v42, 9.0  ;;  %vm3154_vm8 = vcmp.eq.f32.partialorder %v10316_v60, 1.0  ;;  %v3379_v43 = vsel %vm3347_vm0, 0.25, %v3315_v58  ;;  %vm3218_vm9 = vcmp.eq.f32.partialorder %v10316_v60, 2.0 }
 0x208   : > { %v3186_v29 = vsel %vm3154_vm8, 1.0, %v10157_v55  ;;  %vm3282_vm14 = vcmp.eq.f32.partialorder %v10316_v60, 3.0  ;;  %v3443_v16 = vsel %vm3411_vm1, 0.2, %v3379_v43  ;;  %vm3346_vm15 = vcmp.eq.f32.partialorder %v10316_v60, 4.0  ;;  %v10319_v43 = vld [vmem:[#allocation158_spill] sm:$0xff] }
 0x209   : > { %v3250_v0 = vsel %vm3218_vm9, 0.5, %v3186_v29  ;;  %vm3410_vm12 = vcmp.eq.f32.partialorder %v10316_v60, 5.0  ;;  %v3507_v17 = vsel %vm3475_vm6, 0.16666667, %v3443_v16  ;;  %vm3474_vm2 = vcmp.eq.f32.partialorder %v10316_v60, 6.0 }
 0x20a   : > { %v3314_v24 = vsel %vm3282_vm14, 0.33333334, %v3250_v0  ;;  %vm3538_vm3 = vcmp.eq.f32.partialorder %v10316_v60, 7.0  ;;  %v3571_v4 = vsel %vm3539_vm7, 0.14285715, %v3507_v17  ;;  %vm3602_vm0 = vcmp.eq.f32.partialorder %v10316_v60, 8.0 }
 0x20b   : > { %v3378_v47 = vsel %vm3346_vm15, 0.25, %v3314_v24  ;;  %vm3666_vm1 = vcmp.eq.f32.partialorder %v10316_v60, 9.0  ;;  %v3635_v48 = vsel %vm3603_vm5, 0.125, %v3571_v4  ;;  %v5202_v2 = vunpack.i.h.bf16 %v5200_v37  ;;  %v10322_v60 = vld [vmem:[#allocation60_spill] sm:$0xff] }
 0x20c   : > { %v3442_v49 = vsel %vm3410_vm12, 0.2, %v3378_v47  ;;  %v5201_v44 = vunpack.i.l.bf16 %v5200_v37  ;;  %v3699_v34 = vsel %vm3667_vm13, 0.11111111, %v3635_v48  ;;  %v5197_v57 = vunpack.i.h.bf16 %v5195_v32 }
 0x20d   : > { %v3506_v27 = vsel %vm3474_vm2, 0.16666667, %v3442_v49  ;;  %v5196_v54 = vunpack.i.l.bf16 %v5195_v32  ;;  %3825 = vperm.xlu0 %4586, %v3699_v34   ;;  %v8491_v58 = vsel %vm1919_vm4, %v8320_v61, %v5202_v2  ;;  %vm3157_vm6 = vcmp.eq.f32.partialorder %v10319_v43, 1.0 }
 0x20e   : > { %v3570_v45 = vsel %vm3538_vm3, 0.14285715, %v3506_v27  ;;  %v8487_v63 = vsel %vm1919_vm4, %v8308_v15, %v5201_v44  ;;  %10318 = vst [vmem:[#allocation93_spill] sm:$0xff] %v8491_v58  ;;  %v8500_v16 = vsel %vm1919_vm4, %v8300_v33, %v5197_v57  ;;  %v3189_v0 = vsel %vm3157_vm6, 1.0, %v10157_v55 }
 0x20f   : > { %10317 = vst [vmem:[#allocation94_spill] sm:$0xff] %v8487_v63  ;;  %v3634_v29 = vsel %vm3602_vm0, 0.125, %v3570_v45  ;;  %v8496_v42 = vsel %vm1919_vm4, %v8294_v14, %v5196_v54  ;;  %10321 = vst [vmem:[#allocation96_spill] sm:$0xff] %v8500_v16  ;;  %vm3221_vm3 = vcmp.eq.f32.partialorder %v10319_v43, 2.0  ;;  %vm3285_vm7 = vcmp.eq.f32.partialorder %v10319_v43, 3.0 }
 0x210   : > { %10320 = vst [vmem:[#allocation95_spill] sm:$0xff] %v8496_v42  ;;  %v3698_v15 = vsel %vm3666_vm1, 0.11111111, %v3634_v29  ;;  %vm3349_vm5 = vcmp.eq.f32.partialorder %v10319_v43, 4.0  ;;  %v8510_v61 = vsel %vm1919_vm4, %v8189_v13, %v5161_v3  ;;  %v3253_v14 = vsel %vm3221_vm3, 0.5, %v3189_v0 }
 0x211   : > { %3820 = vperm.xlu1 %4597, %v3698_v15   ;;  %vm3413_vm13 = vcmp.eq.f32.partialorder %v10319_v43, 5.0  ;;  %vm3477_vm8 = vcmp.eq.f32.partialorder %v10319_v43, 6.0  ;;  %v3317_v33 = vsel %vm3285_vm7, 0.33333334, %v3253_v14  ;;  %vm3541_vm9 = vcmp.eq.f32.partialorder %v10319_v43, 7.0 }
 0x212   : > { %vm3605_vm14 = vcmp.eq.f32.partialorder %v10319_v43, 8.0  ;;  %vm3156_vm15 = vcmp.eq.f32.partialorder %v10322_v60, 1.0  ;;  %v3381_v37 = vsel %vm3349_vm5, 0.25, %v3317_v33  ;;  %vm3220_vm12 = vcmp.eq.f32.partialorder %v10322_v60, 2.0 }
 0x213   : > { %v3188_v17 = vsel %vm3156_vm15, 1.0, %v10157_v55  ;;  %vm3284_vm2 = vcmp.eq.f32.partialorder %v10322_v60, 3.0  ;;  %v3445_v13 = vsel %vm3413_vm13, 0.2, %v3381_v37  ;;  %vm3348_vm0 = vcmp.eq.f32.partialorder %v10322_v60, 4.0 }
 0x214   : > { %v3252_v3 = vsel %vm3220_vm12, 0.5, %v3188_v17  ;;  %vm3412_vm1 = vcmp.eq.f32.partialorder %v10322_v60, 5.0  ;;  %v3509_v24 = vsel %vm3477_vm8, 0.16666667, %v3445_v13  ;;  %vm3669_vm6 = vcmp.eq.f32.partialorder %v10319_v43, 9.0 }
 0x215   : > { %v3316_v32 = vsel %vm3284_vm2, 0.33333334, %v3252_v3  ;;  %vm3476_vm3 = vcmp.eq.f32.partialorder %v10322_v60, 6.0  ;;  %v5167_v4 = vunpack.i.h.bf16 %v8400_v8  ;;  %v3573_v47 = vsel %vm3541_vm9, 0.14285715, %v3509_v24 }
 0x216   : > { %v3380_v48 = vsel %vm3348_vm0, 0.25, %v3316_v32  ;;  %vm3540_vm7 = vcmp.eq.f32.partialorder %v10322_v60, 7.0  ;;  %v8532_v49 = vsel %vm1919_vm4, %v8206_v52, %v5162_v9  ;;  %v3637_v2 = vsel %vm3605_vm14, 0.125, %v3573_v47  ;;  %v10323_v52 = vld [vmem:[#allocation160_spill] sm:$0xff] }
 0x217   : > { %v3444_v44 = vsel %vm3412_vm1, 0.2, %v3380_v48  ;;  %vm3604_vm5 = vcmp.eq.f32.partialorder %v10322_v60, 8.0  ;;  %v5172_v34 = vunpack.i.h.bf16 %v8392_v19  ;;  %v3701_v27 = vsel %vm3669_vm6, 0.11111111, %v3637_v2 }
 0x218   : > { %v3508_v57 = vsel %vm3476_vm3, 0.16666667, %v3444_v44  ;;  %vm3668_vm13 = vcmp.eq.f32.partialorder %v10322_v60, 9.0  ;;  %v5171_v54 = vunpack.i.l.bf16 %v8392_v19  ;;  %v5166_v28 = vunpack.i.l.bf16 %v8400_v8  ;;  %3835 = vperm.xlu0 %4586, %v3701_v27   ;;  %v10325_v8 = vld [vmem:[#allocation159_spill] sm:$0xff] }
 0x219   : > { %v3572_v45 = vsel %vm3540_vm7, 0.14285715, %v3508_v57  ;;  %vm3159_vm8 = vcmp.eq.f32.partialorder %v10323_v52, 1.0  ;;  %v8544_v9 = vsel %vm1919_vm4, %v8228_v6, %v5167_v4  ;;  %vm3223_vm9 = vcmp.eq.f32.partialorder %v10323_v52, 2.0  ;;  %v10327_v27 = vld [vmem:[#allocation163_spill] sm:$0xff] }
 0x21a   : > { %10324 = vst [vmem:[#allocation39_spill] sm:$0xff] %v8544_v9  ;;  %v3636_v43 = vsel %vm3604_vm5, 0.125, %v3572_v45  ;;  %v3191_v29 = vsel %vm3159_vm8, 1.0, %v10157_v55  ;;  %vm3287_vm14 = vcmp.eq.f32.partialorder %v10323_v52, 3.0  ;;  %vm3351_vm15 = vcmp.eq.f32.partialorder %v10323_v52, 4.0 }
 0x21b   : > { %v3700_v0 = vsel %vm3668_vm13, 0.11111111, %v3636_v43  ;;  %v3255_v15 = vsel %vm3223_vm9, 0.5, %v3191_v29  ;;  %vm3415_vm12 = vcmp.eq.f32.partialorder %v10323_v52, 5.0  ;;  %vm3479_vm2 = vcmp.eq.f32.partialorder %v10323_v52, 6.0 }
 0x21c   : > { %3830 = vperm.xlu1 %4597, %v3700_v0   ;;  %v3319_v19 = vsel %vm3287_vm14, 0.33333334, %v3255_v15  ;;  %vm3543_vm0 = vcmp.eq.f32.partialorder %v10323_v52, 7.0  ;;  %vm3607_vm1 = vcmp.eq.f32.partialorder %v10323_v52, 8.0  ;;  %vm3671_vm6 = vcmp.eq.f32.partialorder %v10323_v52, 9.0  ;;  %v10329_v0 = vld [vmem:[#allocation162_spill] sm:$0xff] }
 0x21d   : > { %v3383_v6 = vsel %vm3351_vm15, 0.25, %v3319_v19  ;;  %vm3158_vm3 = vcmp.eq.f32.partialorder %v10325_v8, 1.0  ;;  %vm3222_vm7 = vcmp.eq.f32.partialorder %v10325_v8, 2.0  ;;  %vm3286_vm5 = vcmp.eq.f32.partialorder %v10325_v8, 3.0 }
 0x21e   : > { %v3447_v14 = vsel %vm3415_vm12, 0.2, %v3383_v6  ;;  %v3190_v33 = vsel %vm3158_vm3, 1.0, %v10157_v55  ;;  %vm3350_vm13 = vcmp.eq.f32.partialorder %v10325_v8, 4.0  ;;  %vm3414_vm8 = vcmp.eq.f32.partialorder %v10325_v8, 5.0 }
 0x21f   : > { %v3511_v60 = vsel %vm3479_vm2, 0.16666667, %v3447_v14  ;;  %v3254_v37 = vsel %vm3222_vm7, 0.5, %v3190_v33  ;;  %v8563_v17 = vsel %vm1919_vm4, %v8237_v39, %v5171_v54  ;;  %vm3478_vm9 = vcmp.eq.f32.partialorder %v10325_v8, 6.0 }
 0x220   : > { %v3575_v13 = vsel %vm3543_vm0, 0.14285715, %v3511_v60  ;;  %v3318_v3 = vsel %vm3286_vm5, 0.33333334, %v3254_v37  ;;  %v5181_v24 = vunpack.i.l.bf16 %v8415_v31  ;;  %vm3542_vm14 = vcmp.eq.f32.partialorder %v10325_v8, 7.0 }
 0x221   : > { %v3639_v32 = vsel %vm3607_vm1, 0.125, %v3575_v13  ;;  %v3382_v4 = vsel %vm3350_vm13, 0.25, %v3318_v3  ;;  %v8572_v47 = vsel %vm1919_vm4, %v8247_v46, %v5172_v34  ;;  %vm3606_vm15 = vcmp.eq.f32.partialorder %v10325_v8, 8.0 }
 0x222   : > { %v3703_v39 = vsel %vm3671_vm6, 0.11111111, %v3639_v32  ;;  %v3446_v48 = vsel %vm3414_vm8, 0.2, %v3382_v4  ;;  %v8579_v2 = vsel %vm1919_vm4, %v8217_v10, %v5166_v28  ;;  %vm3670_vm12 = vcmp.eq.f32.partialorder %v10325_v8, 9.0 }
 0x223   : > { %10326 = vst [vmem:[#allocation41_spill] sm:$0xff] %v8579_v2  ;;  %3845 = vperm.xlu0 %4586, %v3703_v39   ;;  %v3510_v44 = vsel %vm3478_vm9, 0.16666667, %v3446_v48  ;;  %vm3161_vm2 = vcmp.eq.f32.partialorder %v10327_v27, 1.0  ;;  %v5182_v57 = vunpack.i.h.bf16 %v8415_v31  ;;  %v5177_v46 = vunpack.i.h.bf16 %v8420_v35 }
 0x224   : > { %v3574_v34 = vsel %vm3542_vm14, 0.14285715, %v3510_v44  ;;  %v3193_v54 = vsel %vm3161_vm2, 1.0, %v10157_v55  ;;  %v8588_v45 = vsel %vm1919_vm4, %v8273_v11, %v5181_v24  ;;  %v5176_v10 = vunpack.i.l.bf16 %v8420_v35  ;;  %v8597_v11 = vpop.permute.xlu0 %5209  ;;  %v8599_v35 = vpop.permute.xlu1 %5204  ;;  %v10331_v44 = vld [vmem:[#allocation80_spill] sm:$0xff] }
 0x225   : > { %10328 = vst [vmem:[#allocation104_spill] sm:$0xff] %v8588_v45  ;;  %v3638_v28 = vsel %vm3606_vm15, 0.125, %v3574_v34  ;;  %vm3225_vm0 = vcmp.eq.f32.partialorder %v10327_v27, 2.0  ;;  %vm3289_vm1 = vcmp.eq.f32.partialorder %v10327_v27, 3.0  ;;  %vm3353_vm6 = vcmp.eq.f32.partialorder %v10327_v27, 4.0 }
 0x226   : > { %v3702_v52 = vsel %vm3670_vm12, 0.11111111, %v3638_v28  ;;  %v3257_v43 = vsel %vm3225_vm0, 0.5, %v3193_v54  ;;  %vm3417_vm3 = vcmp.eq.f32.partialorder %v10327_v27, 5.0  ;;  %vm3481_vm7 = vcmp.eq.f32.partialorder %v10327_v27, 6.0 }
 0x227   : > { %3840 = vperm.xlu1 %4597, %v3702_v52   ;;  %v3321_v31 = vsel %vm3289_vm1, 0.33333334, %v3257_v43  ;;  %vm3545_vm5 = vcmp.eq.f32.partialorder %v10327_v27, 7.0  ;;  %vm3609_vm13 = vcmp.eq.f32.partialorder %v10327_v27, 8.0  ;;  %vm3673_vm8 = vcmp.eq.f32.partialorder %v10327_v27, 9.0 }
 0x228   : > { %v3385_v29 = vsel %vm3353_vm6, 0.25, %v3321_v31  ;;  %vm3160_vm9 = vcmp.eq.f32.partialorder %v10329_v0, 1.0  ;;  %vm3224_vm14 = vcmp.eq.f32.partialorder %v10329_v0, 2.0  ;;  %vm3288_vm15 = vcmp.eq.f32.partialorder %v10329_v0, 3.0  ;;  %v8633_v39 = vpop.permute.xlu1 %5214  ;;  %v10332_v31 = vld [vmem:[#allocation79_spill] sm:$0xff] }
 0x229   : > { %v3449_v15 = vsel %vm3417_vm3, 0.2, %v3385_v29  ;;  %v3192_v19 = vsel %vm3160_vm9, 1.0, %v10157_v55  ;;  %vm3352_vm12 = vcmp.eq.f32.partialorder %v10329_v0, 4.0  ;;  %vm3416_vm2 = vcmp.eq.f32.partialorder %v10329_v0, 5.0 }
 0x22a   : > { %v3513_v6 = vsel %vm3481_vm7, 0.16666667, %v3449_v15  ;;  %v3256_v8 = vsel %vm3224_vm14, 0.5, %v3192_v19  ;;  %v8611_v14 = vsel %vm1919_vm4, %v8279_v51, %v5182_v57  ;;  %vm3480_vm0 = vcmp.eq.f32.partialorder %v10329_v0, 6.0 }
 0x22b   : > { %10330 = vst [vmem:[#allocation98_spill] sm:$0xff] %v8611_v14  ;;  %v3577_v33 = vsel %vm3545_vm5, 0.14285715, %v3513_v6  ;;  %v3320_v60 = vsel %vm3288_vm15, 0.33333334, %v3256_v8  ;;  %v8618_v37 = vsel %vm1919_vm4, %v8251_v18, %v5176_v10  ;;  %vm3544_vm1 = vcmp.eq.f32.partialorder %v10329_v0, 7.0  ;;  %v8631_v18 = vpop.permute.xlu0 %5219 }
 0x22c   : > { %v3641_v13 = vsel %vm3609_vm13, 0.125, %v3577_v33  ;;  %v3384_v3 = vsel %vm3352_vm12, 0.25, %v3320_v60  ;;  %v8625_v51 = vsel %vm1919_vm4, %v8258_v56, %v5177_v46  ;;  %vm3608_vm6 = vcmp.eq.f32.partialorder %v10329_v0, 8.0  ;;  %v8652_v29 = vpop.permute.xlu1 %5224  ;;  %v10341_v8 = vld [vmem:[#allocation83_spill] sm:$0xff] }
 0x22d   : > { %v3705_v24 = vsel %vm3673_vm8, 0.11111111, %v3641_v13  ;;  %v3448_v32 = vsel %vm3416_vm2, 0.2, %v3384_v3  ;;  %vm3672_vm3 = vcmp.eq.f32.partialorder %v10329_v0, 9.0  ;;  %vm3163_vm7 = vcmp.eq.f32.partialorder %v10331_v44, 1.0 }
 0x22e   : > { %3855 = vperm.xlu0 %4586, %v3705_v24   ;;  %v3512_v48 = vsel %vm3480_vm0, 0.16666667, %v3448_v32  ;;  %vm1952_vm5 = vcmask 228352   ;;  %v3195_v57 = vsel %vm3163_vm7, 1.0, %v10157_v55  ;;  %v5212_v46 = vunpack.i.h.bf16 %v8597_v11 }
 0x22f   : > { %v3576_v27 = vsel %vm3544_vm1, 0.14285715, %v3512_v48  ;;  %v5211_v34 = vunpack.i.l.bf16 %v8597_v11  ;;  %vm3227_vm13 = vcmp.eq.f32.partialorder %v10331_v44, 2.0  ;;  %vm3291_vm8 = vcmp.eq.f32.partialorder %v10331_v44, 3.0  ;;  %v8650_v11 = vpop.permute.xlu0 %5229 }
 0x230   : > { %v3640_v54 = vsel %vm3608_vm6, 0.125, %v3576_v27  ;;  %v3259_v28 = vsel %vm3227_vm13, 0.5, %v3195_v57  ;;  %vm3355_vm9 = vcmp.eq.f32.partialorder %v10331_v44, 4.0  ;;  %vm3419_vm14 = vcmp.eq.f32.partialorder %v10331_v44, 5.0  ;;  %v10333_v57 = vld [vmem:[#allocation11_spill] sm:$0xff] }
 0x231   : > { %v3704_v10 = vsel %vm3672_vm3, 0.11111111, %v3640_v54  ;;  %v3323_v52 = vsel %vm3291_vm8, 0.33333334, %v3259_v28  ;;  %vm3483_vm15 = vcmp.eq.f32.partialorder %v10331_v44, 6.0  ;;  %vm3547_vm12 = vcmp.eq.f32.partialorder %v10331_v44, 7.0 }
 0x232   : > { %3850 = vperm.xlu1 %4597, %v3704_v10   ;;  %v3387_v43 = vsel %vm3355_vm9, 0.25, %v3323_v52  ;;  %vm3611_vm2 = vcmp.eq.f32.partialorder %v10331_v44, 8.0  ;;  %vm3675_vm0 = vcmp.eq.f32.partialorder %v10331_v44, 9.0  ;;  %vm3162_vm1 = vcmp.eq.f32.partialorder %v10332_v31, 1.0 }
 0x233   : > { %v3451_v0 = vsel %vm3419_vm14, 0.2, %v3387_v43  ;;  %v3194_v15 = vsel %vm3162_vm1, 1.0, %v10157_v55  ;;  %vm3226_vm6 = vcmp.eq.f32.partialorder %v10332_v31, 2.0  ;;  %vm3290_vm3 = vcmp.eq.f32.partialorder %v10332_v31, 3.0  ;;  %v8683_v52 = vpop.permute.xlu0 %5239  ;;  %v8685_v43 = vpop.permute.xlu1 %5234 }
 0x234   : > { %v3515_v19 = vsel %vm3483_vm15, 0.16666667, %v3451_v0  ;;  %v3258_v6 = vsel %vm3226_vm6, 0.5, %v3194_v15  ;;  %vm3354_vm7 = vcmp.eq.f32.partialorder %v10332_v31, 4.0  ;;  %vm3418_vm13 = vcmp.eq.f32.partialorder %v10332_v31, 5.0  ;;  %v10335_v0 = vld [vmem:[#allocation8_spill] sm:$0xff] }
 0x235   : > { %v3579_v33 = vsel %vm3547_vm12, 0.14285715, %v3515_v19  ;;  %v3322_v60 = vsel %vm3290_vm3, 0.33333334, %v3258_v6  ;;  %vm3482_vm8 = vcmp.eq.f32.partialorder %v10332_v31, 6.0  ;;  %v8665_v55 = vsel %vm1952_vm5, %v8340_v50, %v5212_v46  ;;  %v10334_v46 = vld [vmem:[#allocation10_spill] sm:$0xff] }
 0x236   : > { %v3643_v13 = vsel %vm3611_vm2, 0.125, %v3579_v33  ;;  %v3386_v3 = vsel %vm3354_vm7, 0.25, %v3322_v60  ;;  %vm3546_vm9 = vcmp.eq.f32.partialorder %v10332_v31, 7.0  ;;  %vm3610_vm14 = vcmp.eq.f32.partialorder %v10332_v31, 8.0  ;;  %v10336_v15 = vld [vmem:[#allocation5_spill] sm:$0xff] }
 0x237   : > { %v3707_v32 = vsel %vm3675_vm0, 0.11111111, %v3643_v13  ;;  %v3450_v48 = vsel %vm3418_vm13, 0.2, %v3386_v3  ;;  %v8676_v27 = vsel %vm1952_vm5, %v8336_v53, %v5211_v34  ;;  %vm3674_vm15 = vcmp.eq.f32.partialorder %v10332_v31, 9.0  ;;  %v10337_v53 = vld [vmem:[#allocation6_spill] sm:$0xff] }
 0x238   : > { %3865 = vperm.xlu0 %4586, %v3707_v32   ;;  %v3514_v50 = vsel %vm3482_vm8, 0.16666667, %v3450_v48  ;;  %v2703_v54 = vmax.f32 %v10334_v46, %v10333_v57  ;;  %v5222_v10 = vunpack.i.h.bf16 %v8631_v18  ;;  %v5221_v28 = vunpack.i.l.bf16 %v8631_v18  ;;  %v10339_v60 = vld [vmem:[#allocation13_spill] sm:$0xff]  ;;  %v10340_v18 = vld [vmem:[#allocation87_spill] sm:$0xff] }
 0x239   : > { %v3578_v44 = vsel %vm3546_vm9, 0.14285715, %v3514_v50  ;;  %v10338_v34 = vmax.f32 %v10336_v15, %v10337_v53  ;;  %v5217_v6 = vunpack.i.h.bf16 %v8633_v39  ;;  %v5216_v31 = vunpack.i.l.bf16 %v8633_v39 }
 0x23a   : > { %v3642_v33 = vsel %vm3610_vm14, 0.125, %v3578_v44  ;;  %v2751_v13 = vmax.f32 %v2703_v54, %v10339_v60  ;;  %v2852_v48 = vrot.slane %v10340_v18, 1  ;;  %v2996_v56 = vrot.slane %v10340_v18, 2  ;;  %v10345_v44 = vld [vmem:[#allocation89_spill] sm:$0xff] }
 0x23b   : > { %v2752_v19 = vmax.f32 %v10338_v34, %v10335_v0  ;;  %v3706_v3 = vsel %vm3674_vm15, 0.11111111, %v3642_v33  ;;  %v10342_v15 = vrot.slane %v10341_v8, 1  ;;  %v10343_v34 = vld [vmem:[#allocation84_spill] sm:$0xff]  ;;  %v10346_v54 = vrot.slane %v10345_v44, 1 }
 0x23c   : > { %3860 = vperm.xlu1 %4597, %v3706_v3   ;;  %v2849_v46 = vrot.slane %v2751_v13, 1  ;;  %v2993_v4 = vrot.slane %v2751_v13, 2  ;;  %v10344_v24 = vrot.slane %v10343_v34, 1  ;;  %v10348_v14 = vrot.slane %v10341_v8, 2 }
 0x23d   : > { %v2850_v32 = vrot.slane %v2752_v19, 1  ;;  %v2994_v50 = vrot.slane %v2752_v19, 2  ;;  %v10347_v33 = vmov %v10342_v15  ;;  %v10349_v18 = vrot.slane %v10343_v34, 2 }
 0x23e   : > { %v2846_v1 = vsel %vm798_vm10, %v10344_v24, %v10342_v15  ;;  %v2848_v59 = vsel %vm798_vm10, %v10347_v33, %v10346_v54  ;;  %v10350_v54 = vrot.slane %v10345_v44, 2  ;;  %vm2103_vm12 = vcmask 1041408  }
 0x23f   : > { %v2853_v39 = vsel %vm798_vm10, %v2850_v32, %v2852_v48  ;;  %v2956_v3 = vmax.f32 %v10343_v34, %v2846_v1  ;;  %v2990_v45 = vsel %vm879_vm11, %v10349_v18, %v10348_v14  ;;  %v2851_v42 = vsel %vm798_vm10, %v2849_v46, %v2850_v32  ;;  %v8722_v34 = vpop.permute.xlu0 %5249 }
 0x240   : > { %v2959_v5 = vmax.f32 %v2752_v19, %v2853_v39  ;;  %v2995_v24 = vsel %vm879_vm11, %v2993_v4, %v2994_v50  ;;  %v2997_v48 = vsel %vm879_vm11, %v2994_v50, %v2996_v56  ;;  %v2958_v15 = vmax.f32 %v2751_v13, %v2851_v42  ;;  %v10353_v13 = vld [vmem:[#allocation18_spill] sm:$0xff]  ;;  %v10355_v50 = vld [vmem:[#allocation15_spill] sm:$0xff]  ;;  %v10357_v39 = vld [vmem:[#allocation16_spill] sm:$0xff] }
 0x241   : > { %v2957_v22 = vmax.f32 %v10341_v8, %v2848_v59  ;;  %v10351_v1 = vmov %v10348_v14  ;;  %v3100_v20 = vmax.f32 %v2956_v3, %v2990_v45  ;;  %v8724_v14 = vpop.permute.xlu1 %5244  ;;  %v8728_v19 = vsel %vm1952_vm5, %v8383_v23, %v5221_v28  ;;  %v10359_v3 = vld [vmem:[#allocation23_spill] sm:$0xff] }
 0x242   : > { %v2992_v33 = vsel %vm879_vm11, %v10351_v1, %v10350_v54  ;;  %10352 = vst [vmem:[#allocation100_spill] sm:$0xff] %v8724_v14  ;;  %v8732_v42 = vsel %vm1952_vm5, %v8390_v62, %v5222_v10  ;;  %v8736_v59 = vsel %vm1952_vm5, %v8347_v12, %v5216_v31  ;;  %v3103_v4 = vmax.f32 %v2959_v5, %v2997_v48  ;;  %v10354_v62 = vld [vmem:[#allocation19_spill] sm:$0xff]  ;;  %v10356_v12 = vld [vmem:[#allocation9_spill] sm:$0xff] }
 0x243   : > { %v8740_v45 = vsel %vm1952_vm5, %v8355_v36, %v5217_v6  ;;  %v3102_v56 = vmax.f32 %v2958_v15, %v2995_v24  ;;  %v3101_v8 = vmax.f32 %v2957_v22, %v2992_v33  ;;  %v2709_v32 = vmax.f32 %v10339_v60, %v10353_v13  ;;  %v10358_v6 = vld [vmem:[#allocation22_spill] sm:$0xff]  ;;  %v10360_v24 = vld [vmem:[#allocation7_spill] sm:$0xff]  ;;  %v8761_v33 = vpop.permute.xlu0 %5259 }
 0x244   : > { %v5232_v23 = vunpack.i.h.bf16 %v8650_v11  ;;  %v5231_v28 = vunpack.i.l.bf16 %v8650_v11  ;;  %v2710_v10 = vmax.f32 %v10335_v0, %v10354_v62  ;;  %v2711_v31 = vmax.f32 %v10356_v12, %v10355_v50  ;;  %10361 = vst [vmem:[#allocation99_spill] sm:$0xff] %v8761_v33 }
 0x245   : > { %v5368_v5 = vpack.i.bf16 %v3103_v4, %v3102_v56  ;;  %v5363_v46 = vpack.i.bf16 %v3101_v8, %v3100_v20  ;;  %v2757_v36 = vmax.f32 %v2709_v32, %v10357_v39  ;;  %v2706_v22 = vmax.f32 %v10333_v57, %v10339_v60  ;;  %v8763_v57 = vpop.permute.xlu1 %5254 }
 0x246   : > { %v2758_v44 = vmax.f32 %v2710_v10, %v10358_v6  ;;  %v2759_v18 = vmax.f32 %v2711_v31, %v10359_v3  ;;  %v2707_v11 = vmax.f32 %v10337_v53, %v10335_v0  ;;  %v2708_v48 = vmax.f32 %v10360_v24, %v10356_v12 }
 0x247   : > { %v5226_v15 = vunpack.i.l.bf16 %v8652_v29  ;;  %5369 = vperm.xlu0 %4586, %v5368_v5   ;;  %5364 = vperm.xlu1 %4597, %v5363_v46   ;;  %v2859_v20 = vrot.slane %v2757_v36, 1  ;;  %v3003_v54 = vrot.slane %v2757_v36, 2  ;;  %v2754_v1 = vmax.f32 %v2706_v22, %v10353_v13 }
 0x248   : > { %v2860_v60 = vrot.slane %v2758_v44, 1  ;;  %v2862_v4 = vrot.slane %v2759_v18, 1  ;;  %v3004_v56 = vrot.slane %v2758_v44, 2  ;;  %v3006_v8 = vrot.slane %v2759_v18, 2 }
 0x249   : > { %v2755_v0 = vmax.f32 %v2707_v11, %v10354_v62  ;;  %v2756_v53 = vmax.f32 %v2708_v48, %v10355_v50  ;;  %v2854_v32 = vrot.slane %v2754_v1, 1  ;;  %v2998_v10 = vrot.slane %v2754_v1, 2 }
 0x24a   : > { %v2861_v12 = vsel %vm798_vm10, %v2859_v20, %v2860_v60  ;;  %v2863_v31 = vsel %vm798_vm10, %v2860_v60, %v2862_v4  ;;  %v3005_v5 = vsel %vm879_vm11, %v3003_v54, %v3004_v56  ;;  %v3007_v46 = vsel %vm879_vm11, %v3004_v56, %v3006_v8  ;;  %v8778_v4 = vpop.permute.xlu0 %5269 }
 0x24b   : > { %v2962_v22 = vmax.f32 %v2757_v36, %v2861_v12  ;;  %v2963_v24 = vmax.f32 %v2758_v44, %v2863_v31  ;;  %v2855_v16 = vrot.slane %v2755_v0, 1  ;;  %v2857_v63 = vrot.slane %v2756_v53, 1  ;;  %10363 = vst [vmem:[#allocation120_spill] sm:$0xff] %v8778_v4  ;;  %v8780_v36 = vpop.permute.xlu1 %5264  ;;  %v10365_v12 = vld [vmem:[#allocation20_spill] sm:$0xff]  ;;  %v10368_v31 = vld [vmem:[#allocation27_spill] sm:$0xff] }
 0x24c   : > { %v8773_v18 = vsel %vm1952_vm5, %v8435_v40, %v5231_v28  ;;  %v5227_v11 = vunpack.i.h.bf16 %v8652_v29  ;;  %v2999_v48 = vrot.slane %v2755_v0, 2  ;;  %v3001_v58 = vrot.slane %v2756_v53, 2 }
 0x24d   : > { %10362 = vst [vmem:[#allocation68_spill] sm:$0xff] %v8773_v18  ;;  %v3106_v9 = vmax.f32 %v2962_v22, %v3005_v5  ;;  %v3107_v20 = vmax.f32 %v2963_v24, %v3007_v46  ;;  %v2856_v60 = vsel %vm798_vm10, %v2854_v32, %v2855_v16  ;;  %v2858_v54 = vsel %vm798_vm10, %v2855_v16, %v2857_v63  ;;  %v10369_v46 = vld [vmem:[#allocation24_spill] sm:$0xff] }
 0x24e   : > { %v2960_v44 = vmax.f32 %v2754_v1, %v2856_v60  ;;  %v2961_v56 = vmax.f32 %v2755_v0, %v2858_v54  ;;  %v3000_v8 = vsel %vm879_vm11, %v2998_v10, %v2999_v48  ;;  %v3002_v40 = vsel %vm879_vm11, %v2999_v48, %v3001_v58  ;;  %v10366_v0 = vld [vmem:[#allocation21_spill] sm:$0xff] }
 0x24f   : > { %v8786_v29 = vsel %vm1952_vm5, %v8442_v7, %v5232_v23  ;;  %v8790_v28 = vsel %vm1952_vm5, %v8398_v30, %v5226_v15  ;;  %v5242_v63 = vunpack.i.h.bf16 %v8683_v52  ;;  %v5378_v16 = vpack.i.bf16 %v3107_v20, %v3106_v9  ;;  %v10367_v23 = vld [vmem:[#allocation26_spill] sm:$0xff] }
 0x250   : > { %10364 = vst [vmem:[#allocation121_spill] sm:$0xff] %v8786_v29  ;;  %v3104_v53 = vmax.f32 %v2960_v44, %v3000_v8  ;;  %v3105_v32 = vmax.f32 %v2961_v56, %v3002_v40  ;;  %v2715_v1 = vmax.f32 %v10357_v39, %v10365_v12  ;;  %v2716_v10 = vmax.f32 %v10358_v6, %v10366_v0  ;;  %v8812_v44 = vpop.permute.xlu0 %5279 }
 0x251   : > { %v5241_v58 = vunpack.i.l.bf16 %v8683_v52  ;;  %v5237_v7 = vunpack.i.h.bf16 %v8685_v43  ;;  %5379 = vperm.xlu0 %4586, %v5378_v16   ;;  %v2717_v30 = vmax.f32 %v10359_v3, %v10367_v23  ;;  %v2712_v15 = vmax.f32 %v10353_v13, %v10357_v39  ;;  %v10370_v52 = vld [vmem:[#allocation25_spill] sm:$0xff]  ;;  %10371 = vst [vmem:[#allocation114_spill] sm:$0xff] %v8812_v44  ;;  %v8814_v13 = vpop.permute.xlu1 %5274 }
 0x252   : > { %v5373_v9 = vpack.i.bf16 %v3105_v32, %v3104_v53  ;;  %v2763_v5 = vmax.f32 %v2715_v1, %v10368_v31  ;;  %v2764_v22 = vmax.f32 %v2716_v10, %v10369_v46  ;;  %v2713_v24 = vmax.f32 %v10354_v62, %v10358_v6  ;;  %10372 = vst [vmem:[#allocation122_spill] sm:$0xff] %v8814_v13  ;;  %v5443_v13 = vld [vmem:[%s9546_s1 + $0x10] ss:$0 sps:$4 sm:$0x33]  }
 0x253   : > { %v5236_v48 = vunpack.i.l.bf16 %v8685_v43  ;;  %v2765_v20 = vmax.f32 %v2717_v30, %v10370_v52  ;;  %v2714_v60 = vmax.f32 %v10355_v50, %v10359_v3  ;;  %v2760_v54 = vmax.f32 %v2712_v15, %v10365_v12  ;;  %4533 = vmatprep.subr.msk.bf16.mxu0 %vm2103_vm12, %v5443_v13  ;;  %4534 = vmatprep.subr.msk.bf16.mxu1 %vm2103_vm12, %v5443_v13 }
 0x254   : > { %5374 = vperm.xlu1 %4597, %v5373_v9   ;;  %v2869_v39 = vrot.slane %v2763_v5, 1  ;;  %v2870_v56 = vrot.slane %v2764_v22, 1  ;;  %v3013_v8 = vrot.slane %v2763_v5, 2  ;;  %v3014_v40 = vrot.slane %v2764_v22, 2 }
 0x255   : > { %v2872_v16 = vrot.slane %v2765_v20, 1  ;;  %v3016_v62 = vrot.slane %v2765_v20, 2  ;;  %v2761_v43 = vmax.f32 %v2713_v24, %v10366_v0  ;;  %v2762_v6 = vmax.f32 %v2714_v60, %v10367_v23 }
 0x256   : > { %v2871_v53 = vsel %vm798_vm10, %v2869_v39, %v2870_v56  ;;  %v3015_v50 = vsel %vm879_vm11, %v3013_v8, %v3014_v40  ;;  %v2864_v3 = vrot.slane %v2760_v54, 1  ;;  %v3008_v32 = vrot.slane %v2760_v54, 2 }
 0x257   : > { %v2873_v1 = vsel %vm798_vm10, %v2870_v56, %v2872_v16  ;;  %v2966_v10 = vmax.f32 %v2763_v5, %v2871_v53  ;;  %v3017_v30 = vsel %vm879_vm11, %v3014_v40, %v3016_v62  ;;  %v2865_v15 = vrot.slane %v2761_v43, 1  ;;  %v8831_v56 = vpop.permute.xlu0 %5289  ;;  %v8833_v5 = vpop.permute.xlu1 %5284 }
 0x258   : > { %v2967_v9 = vmax.f32 %v2764_v22, %v2873_v1  ;;  %v2867_v4 = vrot.slane %v2762_v6, 1  ;;  %v3009_v2 = vrot.slane %v2761_v43, 2  ;;  %v3011_v20 = vrot.slane %v2762_v6, 2  ;;  %v10380_v1 = vld [vmem:[#allocation31_spill] sm:$0xff] }
 0x259   : > { %v8824_v24 = vsel %vm1952_vm5, %v8428_v26, %v5227_v11  ;;  %v8828_v60 = vsel %vm1952_vm5, %v8510_v61, %v5241_v58  ;;  %v3110_v39 = vmax.f32 %v2966_v10, %v3015_v50  ;;  %v2866_v8 = vsel %vm798_vm10, %v2864_v3, %v2865_v15  ;;  %v10378_v50 = vld [vmem:[#allocation30_spill] sm:$0xff] }
 0x25a   : > { %10373 = vst [vmem:[#allocation126_spill] sm:$0xff] %v8828_v60  ;;  %v3111_v40 = vmax.f32 %v2967_v9, %v3017_v30  ;;  %v2868_v22 = vsel %vm798_vm10, %v2865_v15, %v2867_v4  ;;  %v2964_v16 = vmax.f32 %v2760_v54, %v2866_v8  ;;  %v3010_v62 = vsel %vm879_vm11, %v3008_v32, %v3009_v2  ;;  %v10377_v54 = vld [vmem:[#allocation29_spill] sm:$0xff]  ;;  %v10385_v8 = vld [vmem:[#allocation44_spill] sm:$0xff] }
 0x25b   : > { %v8839_v26 = vsel %vm1952_vm5, %v8532_v49, %v5242_v63  ;;  %v8843_v61 = vsel %vm1952_vm5, %v8447_v21, %v5236_v48  ;;  %v2965_v11 = vmax.f32 %v2761_v43, %v2868_v22  ;;  %v3012_v58 = vsel %vm879_vm11, %v3009_v2, %v3011_v20  ;;  %v10379_v63 = vld [vmem:[#allocation36_spill] sm:$0xff]  ;;  %v10381_v21 = vld [vmem:[#allocation38_spill] sm:$0xff]  ;;  %v10383_v30 = vld [vmem:[#allocation33_spill] sm:$0xff] }
 0x25c   : > { %10374 = vst [vmem:[#allocation127_spill] sm:$0xff] %v8839_v26  ;;  %10375 = vst [vmem:[#allocation32_spill] sm:$0xff] %v8843_v61  ;;  %v8848_v6 = vsel %vm1952_vm5, %v8451_v25, %v5237_v7  ;;  %v5388_v53 = vpack.i.bf16 %v3111_v40, %v3110_v39  ;;  %v3108_v4 = vmax.f32 %v2964_v16, %v3010_v62  ;;  %v10382_v48 = vld [vmem:[#allocation28_spill] sm:$0xff]  ;;  %v5251_v2 = vunpack.i.l.bf16 %v8722_v34  ;;  %v10384_v20 = vld [vmem:[#allocation34_spill] sm:$0xff]  ;;  %v8867_v16 = vpop.permute.xlu0 %5299  ;;  %v8869_v62 = vpop.permute.xlu1 %5294 }
 0x25d   : > { %10376 = vst [vmem:[#allocation129_spill] sm:$0xff] %v8848_v6  ;;  %v2724_v3 = vmax.f32 %v10378_v50, %v10377_v54  ;;  %v3109_v49 = vmax.f32 %v2965_v11, %v3012_v58  ;;  %v2725_v10 = vmax.f32 %v10380_v1, %v10379_v63  ;;  %v2726_v43 = vmax.f32 %v10382_v48, %v10381_v21  ;;  %v5444_v6 = vld [vmem:[%s9546_s1 + $0x8] sm:$0xff]  }
 0x25e   : > { %5389 = vperm.xlu0 %4586, %v5388_v53   ;;  %v2718_v7 = vmax.f32 %v10365_v12, %v10368_v31  ;;  %v2719_v15 = vmax.f32 %v10366_v0, %v10369_v46  ;;  %v2720_v22 = vmax.f32 %v10367_v23, %v10370_v52  ;;  %vm1985_vm2 = vcmask 261120  }
 0x25f   : > { %v2772_v25 = vmax.f32 %v2724_v3, %v10383_v30  ;;  %v5383_v9 = vpack.i.bf16 %v3109_v49, %v3108_v4  ;;  %v2773_v39 = vmax.f32 %v2725_v10, %v10384_v20  ;;  %v2774_v40 = vmax.f32 %v2726_v43, %v10385_v8 }
 0x260   : > { %v2766_v53 = vmax.f32 %v2718_v7, %v10378_v50  ;;  %v2767_v12 = vmax.f32 %v2719_v15, %v10380_v1  ;;  %v2768_v10 = vmax.f32 %v2720_v22, %v10382_v48  ;;  %vm2054_vm0 = vcmask 293888  }
 0x261   : > { %v2884_v11 = vrot.slane %v2772_v25, 1  ;;  %v3028_v58 = vrot.slane %v2772_v25, 2  ;;  %5384 = vperm.xlu1 %4597, %v5383_v9   ;;  %v2885_v0 = vrot.slane %v2773_v39, 1  ;;  %v2887_v4 = vrot.slane %v2774_v40, 1 }
 0x262   : > { %v3029_v3 = vrot.slane %v2773_v39, 2  ;;  %v3031_v49 = vrot.slane %v2774_v40, 2  ;;  %v2874_v43 = vrot.slane %v2766_v53, 1  ;;  %v2875_v32 = vrot.slane %v2767_v12, 1 }
 0x263   : > { %v3018_v23 = vrot.slane %v2766_v53, 2  ;;  %v2886_v26 = vsel %vm798_vm10, %v2884_v11, %v2885_v0  ;;  %v2888_v7 = vsel %vm798_vm10, %v2885_v0, %v2887_v4  ;;  %v2877_v22 = vrot.slane %v2768_v10, 1  ;;  %v8885_v11 = vpop.permute.xlu0 %5309  ;;  %v8887_v0 = vpop.permute.xlu1 %5304 }
 0x264   : > { %v3030_v15 = vsel %vm879_vm11, %v3028_v58, %v3029_v3  ;;  %v3032_v9 = vsel %vm879_vm11, %v3029_v3, %v3031_v49  ;;  %v2972_v60 = vmax.f32 %v2772_v25, %v2886_v26  ;;  %v2973_v44 = vmax.f32 %v2773_v39, %v2888_v7  ;;  %v10390_v7 = vld [vmem:[#allocation42_spill] sm:$0xff] }
 0x265   : > { %v2876_v40 = vsel %vm798_vm10, %v2874_v43, %v2875_v32  ;;  %v3019_v29 = vrot.slane %v2767_v12, 2  ;;  %v3021_v18 = vrot.slane %v2768_v10, 2  ;;  %v2878_v26 = vsel %vm798_vm10, %v2875_v32, %v2877_v22  ;;  %v10392_v22 = vld [vmem:[#allocation52_spill] sm:$0xff] }
 0x266   : > { %v2968_v61 = vmax.f32 %v2766_v53, %v2876_v40  ;;  %v3116_v58 = vmax.f32 %v2972_v60, %v3030_v15  ;;  %v3117_v4 = vmax.f32 %v2973_v44, %v3032_v9  ;;  %v2105_v25 = vsel %vm2103_vm12, %v5443_v13, 0  ;;  %v5445_v13 = vld [vmem:[%s9546_s1] sm:$0xff]   ;;  %v10391_v9 = vld [vmem:[#allocation43_spill] sm:$0xff] }
 0x267   : > { %v2969_v3 = vmax.f32 %v2767_v12, %v2878_v26  ;;  %v3020_v49 = vsel %vm879_vm11, %v3018_v23, %v3019_v29  ;;  %v3022_v53 = vsel %vm879_vm11, %v3019_v29, %v3021_v18  ;;  %4490 = vmatpush3.bf16.msra.mxu0 %v2105_v25  ;;  %4530 = vmatpush3.bf16.msra.mxu1 %v2105_v25  ;;  %v10387_v12 = vunpack.i.h.bf16 %v8722_v34  ;;  %v8920_v26 = vpop.permute.xlu0 %5319  ;;  %v8922_v25 = vpop.permute.xlu1 %5314 }
 0x268   : > { %v8895_v10 = vsel %vm1952_vm5, %v8563_v17, %v5251_v2  ;;  %v5398_v60 = vpack.i.bf16 %v3117_v4, %v3116_v58  ;;  %v3112_v32 = vmax.f32 %v2968_v61, %v3020_v49  ;;  %4491 = vmatprep.subr.bf16.mxu0 %v5444_v6  ;;  %4528 = vmatprep.subr.bf16.mxu1 %v5444_v6  ;;  %v10389_v2 = vld [vmem:[#allocation45_spill] sm:$0xff]  ;;  %v5257_v23 = vunpack.i.h.bf16 %v8763_v57 }
 0x269   : > { %10386 = vst [vmem:[#allocation61_spill] sm:$0xff] %v8895_v10  ;;  %v8905_v18 = vsel %vm1952_vm5, %v8572_v47, %v10387_v12  ;;  %v3113_v17 = vmax.f32 %v2969_v3, %v3022_v53  ;;  %v2730_v43 = vmax.f32 %v10383_v30, %v10389_v2  ;;  %v2731_v15 = vmax.f32 %v10384_v20, %v10390_v7  ;;  %v10395_v3 = vld [vmem:[#allocation55_spill] sm:$0xff]  ;;  %v10396_v53 = vld [vmem:[#allocation49_spill] sm:$0xff] }
 0x26a   : > { %10388 = vst [vmem:[#allocation40_spill] sm:$0xff] %v8905_v18  ;;  %5399 = vperm.xlu0 %4586, %v5398_v60   ;;  %v2732_v34 = vmax.f32 %v10385_v8, %v10391_v9  ;;  %v5256_v47 = vunpack.i.l.bf16 %v8763_v57  ;;  %v2727_v4 = vmax.f32 %v10377_v54, %v10383_v30  ;;  %10393 = vst [vmem:[#allocation47_spill] sm:$0xff] %v8920_v26  ;;  %vm10476_vm1 = vcmask 130048  }
 0x26b   : > { %v5393_v40 = vpack.i.bf16 %v3113_v17, %v3112_v32  ;;  %v2778_v58 = vmax.f32 %v2730_v43, %v10392_v22  ;;  %4492 = vmatpush3.bf16.msra.mxu0 %v5444_v6  ;;  %10394 = vst [vmem:[#allocation144_spill] sm:$0xff] %v8922_v25  ;;  %v2779_v49 = vmax.f32 %v2731_v15, %v10395_v3  ;;  %v8937_v10 = vpop.permute.xlu0 %5329  ;;  %v5292_v25 = vunpack.i.h.bf16 %v8831_v56  ;;  %vm10479_vm6 = vmmov %vm10476_vm1 }
 0x26c   : > { %v2780_v60 = vmax.f32 %v2732_v34, %v10396_v53  ;;  %v2728_v12 = vmax.f32 %v10379_v63, %v10384_v20  ;;  %v2729_v57 = vmax.f32 %v10381_v21, %v10385_v8  ;;  %4493 = vmatprep.subr.bf16.mxu0 %v5445_v13  ;;  %v2775_v30 = vmax.f32 %v2727_v4, %v10389_v2 }
 0x26d   : > { %5394 = vperm.xlu1 %4597, %v5393_v40   ;;  %v2894_v32 = vrot.slane %v2778_v58, 1  ;;  %v3038_v17 = vrot.slane %v2778_v58, 2  ;;  %4531 = vmatpush3.bf16.msra.mxu1 %v5444_v6  ;;  %v2895_v43 = vrot.slane %v2779_v49, 1  ;;  %v3039_v61 = vrot.slane %v2779_v49, 2 }
 0x26e   : > { %v2897_v29 = vrot.slane %v2780_v60, 1  ;;  %v3041_v15 = vrot.slane %v2780_v60, 2  ;;  %4529 = vmatprep.subr.bf16.mxu1 %v5445_v13  ;;  %v2776_v34 = vmax.f32 %v2728_v12, %v10390_v7  ;;  %v2777_v20 = vmax.f32 %v2729_v57, %v10391_v9  ;;  %v8939_v12 = vpop.permute.xlu1 %5324 }
 0x26f   : > { %v2889_v39 = vrot.slane %v2775_v30, 1  ;;  %v3033_v44 = vrot.slane %v2775_v30, 2  ;;  %4494 = vmatpush3.bf16.msra.mxu0 %v5445_v13  ;;  %v2896_v8 = vsel %vm798_vm10, %v2894_v32, %v2895_v43  ;;  %v3040_v4 = vsel %vm879_vm11, %v3038_v17, %v3039_v61 }
 0x270   : > { %v2898_v40 = vsel %vm798_vm10, %v2895_v43, %v2897_v29  ;;  %v3042_v6 = vsel %vm879_vm11, %v3039_v61, %v3041_v15  ;;  %v2976_v33 = vmax.f32 %v2778_v58, %v2896_v8  ;;  %v2890_v18 = vrot.slane %v2776_v34, 1 }
 0x271   : > { %v2977_v14 = vmax.f32 %v2779_v49, %v2898_v40  ;;  %v2892_v60 = vrot.slane %v2777_v20, 1  ;;  %4532 = vmatpush3.bf16.msra.mxu1 %v5445_v13  ;;  %v3034_v57 = vrot.slane %v2776_v34, 2  ;;  %v3036_v26 = vrot.slane %v2777_v20, 2  ;;  %v8972_v40 = vpop.permute.xlu0 %5339 }
 0x272   : > { %v5291_v32 = vunpack.i.l.bf16 %v8831_v56  ;;  %v3120_v29 = vmax.f32 %v2976_v33, %v3040_v4  ;;  %v2891_v17 = vsel %vm798_vm10, %v2889_v39, %v2890_v18  ;;  %v8949_v13 = vsel %vm1952_vm5, %v8618_v37, %v5256_v47  ;;  %v10399_v37 = vld [vmem:[#allocation50_spill] sm:$0xff]  ;;  %10402 = vst [vmem:[#allocation147_spill] sm:$0xff] %v8972_v40 }
 0x273   : > { %v3121_v43 = vmax.f32 %v2977_v14, %v3042_v6  ;;  %v2893_v61 = vsel %vm798_vm10, %v2890_v18, %v2892_v60  ;;  %v2974_v58 = vmax.f32 %v2775_v30, %v2891_v17  ;;  %v3035_v15 = vsel %vm879_vm11, %v3033_v44, %v3034_v57  ;;  %10397 = vst [vmem:[#allocation92_spill] sm:$0xff] %v8949_v13  ;;  %v10403_v60 = vld [vmem:[#allocation57_spill] sm:$0xff] }
 0x274   : > { %v2975_v49 = vmax.f32 %v2776_v34, %v2893_v61  ;;  %v3037_v8 = vsel %vm879_vm11, %v3034_v57, %v3036_v26  ;;  %v8953_v20 = vsel %vm1952_vm5, %v8625_v51, %v5257_v23  ;;  %v8958_v18 = vsel %vm1985_vm2, %v8676_v27, %v5291_v32  ;;  %v10400_v26 = vld [vmem:[#allocation62_spill] sm:$0xff]  ;;  %v10401_v23 = vld [vmem:[#allocation63_spill] sm:$0xff]  ;;  %v8974_v27 = vpop.permute.xlu1 %5334 }
 0x275   : > { %10398 = vst [vmem:[#allocation145_spill] sm:$0xff] %v8953_v20  ;;  %v5408_v33 = vpack.i.bf16 %v3121_v43, %v3120_v29  ;;  %v3118_v56 = vmax.f32 %v2974_v58, %v3035_v15  ;;  %v8962_v44 = vsel %vm1985_vm2, %v8665_v55, %v5292_v25  ;;  %v2736_v47 = vmax.f32 %v10392_v22, %v10399_v37  ;;  %v10404_v32 = vld [vmem:[#allocation58_spill] sm:$0xff]  ;;  %v10405_v43 = vld [vmem:[#allocation69_spill] sm:$0xff] }
 0x276   : > { %v3119_v39 = vmax.f32 %v2975_v49, %v3037_v8  ;;  %v2737_v51 = vmax.f32 %v10395_v3, %v10400_v26  ;;  %v2738_v30 = vmax.f32 %v10396_v53, %v10401_v23  ;;  %v2733_v34 = vmax.f32 %v10389_v2, %v10392_v22 }
 0x277   : > { %5409 = vperm.xlu0 %4586, %v5408_v33   ;;  %v2734_v25 = vmax.f32 %v10390_v7, %v10395_v3  ;;  %v2735_v6 = vmax.f32 %v10391_v9, %v10396_v53  ;;  %v2784_v57 = vmax.f32 %v2736_v47, %v10403_v60  ;;  %v5286_v61 = vunpack.i.l.bf16 %v8833_v5 }
 0x278   : > { %v5403_v4 = vpack.i.bf16 %v3119_v39, %v3118_v56  ;;  %v2785_v29 = vmax.f32 %v2737_v51, %v10404_v32  ;;  %v2786_v17 = vmax.f32 %v2738_v30, %v10405_v43  ;;  %v2781_v2 = vmax.f32 %v2733_v34, %v10399_v37  ;;  %v8992_v34 = vpop.permute.xlu0 %5349 }
 0x279   : > { %v2782_v58 = vmax.f32 %v2734_v25, %v10400_v26  ;;  %v2783_v7 = vmax.f32 %v2735_v6, %v10401_v23  ;;  %v2904_v3 = vrot.slane %v2784_v57, 1  ;;  %v3048_v49 = vrot.slane %v2784_v57, 2  ;;  %10406 = vst [vmem:[#allocation138_spill] sm:$0xff] %v8992_v34 }
 0x27a   : > { %5404 = vperm.xlu1 %4597, %v5403_v4   ;;  %v2905_v9 = vrot.slane %v2785_v29, 1  ;;  %v2907_v53 = vrot.slane %v2786_v17, 1  ;;  %v3049_v15 = vrot.slane %v2785_v29, 2  ;;  %v3051_v8 = vrot.slane %v2786_v17, 2  ;;  %v8994_v4 = vpop.permute.xlu1 %5344 }
 0x27b   : > { %v2899_v33 = vrot.slane %v2781_v2, 1  ;;  %v2900_v56 = vrot.slane %v2782_v58, 1  ;;  %v2902_v51 = vrot.slane %v2783_v7, 1  ;;  %v3043_v30 = vrot.slane %v2781_v2, 2  ;;  %10407 = vst [vmem:[#allocation148_spill] sm:$0xff] %v8994_v4 }
 0x27c   : > { %v2906_v39 = vsel %vm798_vm10, %v2904_v3, %v2905_v9  ;;  %v2908_v47 = vsel %vm798_vm10, %v2905_v9, %v2907_v53  ;;  %v3050_v14 = vsel %vm879_vm11, %v3048_v49, %v3049_v15  ;;  %v3052_v22 = vsel %vm879_vm11, %v3049_v15, %v3051_v8 }
 0x27d   : > { %v2980_v25 = vmax.f32 %v2784_v57, %v2906_v39  ;;  %v2981_v6 = vmax.f32 %v2785_v29, %v2908_v47  ;;  %v2901_v17 = vsel %vm798_vm10, %v2899_v33, %v2900_v56  ;;  %v2903_v55 = vsel %vm798_vm10, %v2900_v56, %v2902_v51  ;;  %v10412_v51 = vld [vmem:[#allocation75_spill] sm:$0xff] }
 0x27e   : > { %v3044_v40 = vrot.slane %v2782_v58, 2  ;;  %v3046_v3 = vrot.slane %v2783_v7, 2  ;;  %v2978_v53 = vmax.f32 %v2781_v2, %v2901_v17  ;;  %v2979_v13 = vmax.f32 %v2782_v58, %v2903_v55  ;;  %v10408_v2 = vld [vmem:[#allocation70_spill] sm:$0xff]  ;;  %v9012_v58 = vpop.permute.xlu0 %5359  ;;  %v9014_v7 = vpop.permute.xlu1 %5354 }
 0x27f   : > { %v3124_v20 = vmax.f32 %v2980_v25, %v3050_v14  ;;  %v3125_v9 = vmax.f32 %v2981_v6, %v3052_v22  ;;  %v5302_v57 = vunpack.i.h.bf16 %v8867_v16  ;;  %v5297_v29 = vunpack.i.h.bf16 %v8869_v62  ;;  %v10409_v22 = vld [vmem:[#allocation64_spill] sm:$0xff] }
 0x280   : > { %v3045_v34 = vsel %vm879_vm11, %v3043_v30, %v3044_v40  ;;  %v3047_v4 = vsel %vm879_vm11, %v3044_v40, %v3046_v3  ;;  %v5301_v33 = vunpack.i.l.bf16 %v8867_v16  ;;  %v5296_v56 = vunpack.i.l.bf16 %v8869_v62 }
 0x281   : > { %v5418_v49 = vpack.i.bf16 %v3125_v9, %v3124_v20  ;;  %v3122_v15 = vmax.f32 %v2978_v53, %v3045_v34  ;;  %v3123_v8 = vmax.f32 %v2979_v13, %v3047_v4  ;;  %v1991_v14 = vsel %vm1985_vm2, %v8740_v45, %v5297_v29  ;;  %v10410_v13 = vld [vmem:[#allocation161_spill] sm:$0xff]  ;;  %v10413_v34 = vld [vmem:[#allocation76_spill] sm:$0xff] }
 0x282   : > { %v2742_v55 = vmax.f32 %v10403_v60, %v10408_v2  ;;  %v2743_v40 = vmax.f32 %v10404_v32, %v10409_v22  ;;  %v2917_v39 = vrot.slane %v10410_v13, 1  ;;  %v3061_v16 = vrot.slane %v10410_v13, 2 }
 0x283   : > { %5419 = vperm.xlu0 %4586, %v5418_v49   ;;  %v5413_v20 = vpack.i.bf16 %v3123_v8, %v3122_v15  ;;  %v10411_v62 = vunpack.i.l.bf16 %v8599_v35  ;;  %v1990_v47 = vsel %vm1985_vm2, %v8736_v59, %v5296_v56  ;;  %v10414_v25 = vunpack.i.h.bf16 %v8599_v35  ;;  %v9034_v15 = vpop.permute.xlu0 %3715  ;;  %v9036_v8 = vpop.permute.xlu1 %3710 }
 0x284   : > { %v2790_v30 = vmax.f32 %v2742_v55, %v10412_v51  ;;  %v2791_v4 = vmax.f32 %v2743_v40, %v10413_v34  ;;  %v2020_v17 = vpack.c.bf16 %v1991_v14, %v1990_v47  ;;  %v10415_v9 = vunpack.i.h.bf16 %v8833_v5 }
 0x285   : > { %v1953_v45 = vsel %vm1952_vm5, %v8325_v41, %v10411_v62  ;;  %v1954_v6 = vsel %vm1952_vm5, %v8329_v38, %v10414_v25  ;;  %5414 = vperm.xlu1 %4597, %v5413_v20   ;;  %v2739_v38 = vmax.f32 %v10399_v37, %v10403_v60  ;;  %v2741_v5 = vmax.f32 %v10401_v23, %v10405_v43 }
 0x286   : > { %v1986_v3 = vsel %vm1985_vm2, %v1953_v45, %v5286_v61  ;;  %v1987_v41 = vsel %vm1985_vm2, %v1954_v6, %v10415_v9  ;;  %v2914_v53 = vrot.slane %v2790_v30, 1  ;;  %v2915_v59 = vrot.slane %v2791_v4, 1 }
 0x287   : > { %v3058_v29 = vrot.slane %v2790_v30, 2  ;;  %v3059_v49 = vrot.slane %v2791_v4, 2  ;;  %v2018_v35 = vpack.c.bf16 %v1987_v41, %v1986_v3  ;;  %v2740_v61 = vmax.f32 %v10400_v26, %v10404_v32  ;;  %v10416_v32 = vld [vmem:[#allocation65_spill] sm:$0xff] }
 0x288   : > { %v2916_v56 = vsel %vm798_vm10, %v2914_v53, %v2915_v59  ;;  %v2918_v14 = vsel %vm798_vm10, %v2915_v59, %v2917_v39  ;;  %v2787_v37 = vmax.f32 %v2739_v38, %v10408_v2  ;;  %v1992_v26 = vsel %vm1985_vm2, %v8728_v19, %v5301_v33 }
 0x289   : > { %v3060_v55 = vsel %vm879_vm11, %v3058_v29, %v3059_v49  ;;  %v3062_v40 = vsel %vm879_vm11, %v3059_v49, %v3061_v16  ;;  %v2984_v20 = vmax.f32 %v2790_v30, %v2916_v56  ;;  %v2985_v13 = vmax.f32 %v2791_v4, %v2918_v14  ;;  %4495 = vmatprep.mubr.msk.bf16.mxu0 %vm2054_vm0, %v2018_v35  ;;  %v10418_v29 = vld [vmem:[#allocation77_spill] sm:$0xff] }
 0x28a   : > { %v2788_v60 = vmax.f32 %v2740_v61, %v10409_v22  ;;  %v1993_v23 = vsel %vm1985_vm2, %v8732_v42, %v5302_v57  ;;  %v2789_v43 = vmax.f32 %v2741_v5, %v10416_v32  ;;  %v10417_v39 = vpack.c.bf16 %v8962_v44, %v8958_v18  ;;  %v9062_v42 = vpop.permute.xlu0 %3725  ;;  %v9064_v57 = vpop.permute.xlu1 %3720  ;;  %v10420_v35 = vld [vmem:[#allocation73_spill] sm:$0xff]  ;;  %v10422_v5 = vld [vmem:[#allocation78_spill] sm:$0xff] }
 0x28b   : > { %v5307_v16 = vunpack.i.h.bf16 %v8887_v0  ;;  %v3128_v62 = vmax.f32 %v2984_v20, %v3060_v55  ;;  %v3129_v45 = vmax.f32 %v2985_v13, %v3062_v40  ;;  %v2909_v2 = vrot.slane %v2787_v37, 1 }
 0x28c   : > { %4496 = vmatmul.mubr.msk.bf16.vlgmr.msra.gmra.mxu0 %vm2054_vm0, %v10417_v39  ;;  %v2910_v47 = vrot.slane %v2788_v60, 1  ;;  %v2912_v22 = vrot.slane %v2789_v43, 1  ;;  %v3053_v19 = vrot.slane %v2787_v37, 2  ;;  %v3054_v33 = vrot.slane %v2788_v60, 2 }
 0x28d   : > { %4499 = vmatprep.mubr.msk.bf16.mxu0 %vm2054_vm0, %v2020_v17  ;;  %v3056_v51 = vrot.slane %v2789_v43, 2  ;;  %v2021_v30 = vpack.c.bf16 %v1993_v23, %v1992_v26  ;;  %v5428_v18 = vpack.i.bf16 %v3129_v45, %v3128_v62  ;;  %v5312_v34 = vunpack.i.h.bf16 %v8885_v11 }
 0x28e   : > { %v2911_v44 = vsel %vm798_vm10, %v2909_v2, %v2910_v47  ;;  %v2913_v4 = vsel %vm798_vm10, %v2910_v47, %v2912_v22  ;;  %v3055_v6 = vsel %vm879_vm11, %v3053_v19, %v3054_v33  ;;  %v5311_v9 = vunpack.i.l.bf16 %v8885_v11  ;;  %v10429_v22 = vld [vmem:[#allocation68_spill] sm:$0xff] }
 0x28f   : > { %v2982_v25 = vmax.f32 %v2787_v37, %v2911_v44  ;;  %v3057_v17 = vsel %vm879_vm11, %v3054_v33, %v3056_v51  ;;  %5429 = vperm.xlu0 %4586, %v5428_v18   ;;  %v2983_v3 = vmax.f32 %v2788_v60, %v2913_v4  ;;  %v5306_v41 = vunpack.i.l.bf16 %v8887_v0  ;;  %v10430_v33 = vld [vmem:[#allocation121_spill] sm:$0xff] }
 0x290   : > { %v1995_v53 = vsel %vm1985_vm2, %v8824_v24, %v5307_v16  ;;  %v10419_v49 = vrot.slane %v10418_v29, 1  ;;  %v10421_v38 = vrot.slane %v10420_v35, 1  ;;  %v10423_v56 = vrot.slane %v10422_v5, 1  ;;  %v9106_v16 = vpop.permute.xlu1 %3730 }
 0x291   : > { %v3126_v59 = vmax.f32 %v2982_v25, %v3055_v6  ;;  %v10425_v11 = vrot.slane %v10418_v29, 2  ;;  %v10426_v0 = vrot.slane %v10420_v35, 2  ;;  %v3127_v24 = vmax.f32 %v2983_v3, %v3057_v17  ;;  %v10432_v17 = vld [vmem:[#allocation47_spill] sm:$0xff] }
 0x292   : > { %v2921_v61 = vsel %vm798_vm10, %v10421_v38, %v10419_v49  ;;  %v10424_v14 = vmov %v10419_v49  ;;  %v1994_v20 = vsel %vm1985_vm2, %v8790_v28, %v5306_v41  ;;  %v10427_v26 = vrot.slane %v10422_v5, 2  ;;  %v9104_v28 = vpop.permute.xlu0 %3735  ;;  %v10433_v41 = vld [vmem:[#allocation32_spill] sm:$0xff] }
 0x293   : > { %v2923_v55 = vsel %vm798_vm10, %v10424_v14, %v10423_v56  ;;  %v3065_v40 = vsel %vm879_vm11, %v10426_v0, %v10425_v11  ;;  %v2986_v13 = vmax.f32 %v10420_v35, %v2921_v61  ;;  %v2022_v60 = vpack.c.bf16 %v1995_v53, %v1994_v20  ;;  %v10434_v61 = vld [vmem:[#allocation129_spill] sm:$0xff] }
 0x294   : > { %v2987_v37 = vmax.f32 %v10418_v29, %v2923_v55  ;;  %v10428_v23 = vmov %v10425_v11  ;;  %v2721_v43 = vmax.f32 %v10368_v31, %v10378_v50  ;;  %v2722_v39 = vmax.f32 %v10369_v46, %v10380_v1  ;;  %4500 = vmatmul.mubr.msk.bf16.gmra.mxu0 %vm2054_vm0, %v2021_v30  ;;  %v10431_v30 = vld [vmem:[#allocation144_spill] sm:$0xff]  ;;  %v9128_v29 = vpop.permute.xlu1 %3740 }
 0x295   : > { %v3067_v32 = vsel %vm879_vm11, %v10428_v23, %v10427_v26  ;;  %v5423_v62 = vpack.i.bf16 %v3127_v24, %v3126_v59  ;;  %v3130_v45 = vmax.f32 %v2986_v13, %v3065_v40  ;;  %v2723_v47 = vmax.f32 %v10370_v52, %v10382_v48  ;;  %4503 = vmatprep.mubr.msk.bf16.mxu0 %vm2054_vm0, %v2022_v60  ;;  %v10435_v40 = vld [vmem:[#allocation114_spill] sm:$0xff]  ;;  %v10437_v23 = vld [vmem:[#allocation127_spill] sm:$0xff] }
 0x296   : > { %v3131_v2 = vmax.f32 %v2987_v37, %v3067_v32  ;;  %v1996_v19 = vsel %vm1985_vm2, %v10429_v22, %v5311_v9  ;;  %v1997_v31 = vsel %vm1985_vm2, %v10430_v33, %v5312_v34  ;;  %v2769_v46 = vmax.f32 %v2721_v43, %v10377_v54  ;;  %v9126_v59 = vpop.permute.xlu0 %3745  ;;  %v10436_v60 = vld [vmem:[#allocation126_spill] sm:$0xff] }
 0x297   : > { %v2770_v50 = vmax.f32 %v2722_v39, %v10379_v63  ;;  %5424 = vperm.xlu1 %4597, %v5423_v62   ;;  %v2771_v51 = vmax.f32 %v2723_v47, %v10381_v21  ;;  %v5317_v18 = vunpack.i.h.bf16 %v10431_v30  ;;  %v5316_v52 = vunpack.i.l.bf16 %v10431_v30  ;;  %v10439_v62 = vld [vmem:[#allocation40_spill] sm:$0xff] }
 0x298   : > { %v5438_v1 = vpack.i.bf16 %v3131_v2, %v3130_v45  ;;  %v2879_v48 = vrot.slane %v2769_v46, 1  ;;  %v3023_v4 = vrot.slane %v2769_v46, 2  ;;  %v2023_v6 = vpack.c.bf16 %v1997_v31, %v1996_v19  ;;  %v10440_v19 = vld [vmem:[#allocation122_spill] sm:$0xff]  ;;  %v9160_v30 = vpop.permute.xlu1 %3750 }
 0x299   : > { %v2880_v44 = vrot.slane %v2770_v50, 1  ;;  %v3024_v25 = vrot.slane %v2770_v50, 2  ;;  %v2882_v34 = vrot.slane %v2771_v51, 1  ;;  %v3026_v54 = vrot.slane %v2771_v51, 2 }
 0x29a   : > { %5439 = vperm.xlu0 %4586, %v5438_v1   ;;  %v5322_v63 = vunpack.i.h.bf16 %v10432_v17  ;;  %v5321_v21 = vunpack.i.l.bf16 %v10432_v17  ;;  %v1998_v53 = vsel %vm1985_vm2, %v10433_v41, %v5316_v52  ;;  %v1999_v5 = vsel %vm1985_vm2, %v10434_v61, %v5317_v18  ;;  %v9158_v51 = vpop.permute.xlu0 %3755  ;;  %v10444_v18 = vld [vmem:[#allocation92_spill] sm:$0xff] }
 0x29b   : > { %v2881_v3 = vsel %vm798_vm10, %v2879_v48, %v2880_v44  ;;  %v3025_v9 = vsel %vm879_vm11, %v3023_v4, %v3024_v25  ;;  %v2883_v49 = vsel %vm798_vm10, %v2880_v44, %v2882_v34  ;;  %v3027_v38 = vsel %vm879_vm11, %v3024_v25, %v3026_v54  ;;  %v10445_v48 = vld [vmem:[#allocation145_spill] sm:$0xff]  ;;  %v10447_v4 = vld [vmem:[#allocation39_spill] sm:$0xff] }
 0x29c   : > { %v2970_v35 = vmax.f32 %v2769_v46, %v2881_v3  ;;  %v2971_v56 = vmax.f32 %v2770_v50, %v2883_v49  ;;  %v2024_v14 = vpack.c.bf16 %v1999_v5, %v1998_v53  ;;  %v5332_v55 = vunpack.i.h.bf16 %v8937_v10  ;;  %4504 = vmatmul.mubr.msk.bf16.gmra.mxu0 %vm2054_vm0, %v2023_v6  ;;  %v10441_v46 = vld [vmem:[#allocation100_spill] sm:$0xff]  ;;  %v10448_v34 = vld [vmem:[#allocation93_spill] sm:$0xff]  ;;  %v10449_v49 = vld [vmem:[#allocation94_spill] sm:$0xff] }
 0x29d   : > { %v5331_v11 = vunpack.i.l.bf16 %v8937_v10  ;;  %v5266_v0 = vunpack.i.l.bf16 %v8780_v36  ;;  %v5282_v24 = vunpack.i.h.bf16 %v10435_v40  ;;  %v5326_v13 = vunpack.i.l.bf16 %v8939_v12  ;;  %v10438_v10 = vld [vmem:[#allocation61_spill] sm:$0xff] }
 0x29e   : > { %v3114_v20 = vmax.f32 %v2970_v35, %v3025_v9  ;;  %v3115_v37 = vmax.f32 %v2971_v56, %v3027_v38  ;;  %v2000_v26 = vsel %vm1985_vm2, %v10436_v60, %v5321_v21  ;;  %v2001_v32 = vsel %vm1985_vm2, %v10437_v23, %v5322_v63  ;;  %4507 = vmatprep.mubr.msk.bf16.mxu0 %vm2054_vm0, %v2024_v14  ;;  %v10450_v38 = vld [vmem:[#allocation96_spill] sm:$0xff]  ;;  %v10451_v14 = vld [vmem:[#allocation147_spill] sm:$0xff]  ;;  %v9195_v23 = vpop.permute.xlu1 %3760 }
 0x29f   : > { %v5327_v43 = vunpack.i.h.bf16 %v8939_v12  ;;  %v2004_v39 = vsel %vm1985_vm2, %v10438_v10, %v5331_v11  ;;  %v2005_v45 = vsel %vm1985_vm2, %v10439_v62, %v5332_v55  ;;  %v5337_v2 = vunpack.i.h.bf16 %v8974_v27  ;;  %v10443_v12 = vld [vmem:[#allocation41_spill] sm:$0xff]  ;;  %v10455_v10 = vld [vmem:[#allocation35_spill] sm:$0xff] }
 0x2a0   : > { %v5336_v47 = vunpack.i.l.bf16 %v8974_v27  ;;  %v5281_v22 = vunpack.i.l.bf16 %v10435_v40  ;;  %v5277_v33 = vunpack.i.h.bf16 %v10440_v19  ;;  %v5433_v31 = vpack.i.bf16 %v3115_v37, %v3114_v20  ;;  %v10452_v40 = vld [vmem:[#allocation148_spill] sm:$0xff] }
 0x2a1   : > { %v10442_v50 = vunpack.i.l.bf16 %v10441_v46  ;;  %v2007_v27 = vsel %vm1985_vm2, %v10445_v48, %v5337_v2  ;;  %v10446_v44 = vunpack.i.h.bf16 %v10441_v46  ;;  %v1984_v54 = vsel %vm1952_vm5, %v10448_v34, %v5282_v24 }
 0x2a2   : > { %v2006_v52 = vsel %vm1985_vm2, %v10444_v18, %v5336_v47  ;;  %5434 = vperm.xlu1 %4597, %v5433_v31   ;;  %v2025_v17 = vpack.c.bf16 %v2001_v32, %v2000_v26  ;;  %v2027_v63 = vpack.c.bf16 %v2005_v45, %v2004_v39  ;;  %v5276_v9 = vunpack.i.l.bf16 %v10440_v19  ;;  %v9193_v26 = vpop.permute.xlu0 %3765  ;;  %v10453_v32 = vld [vmem:[#allocation71_spill] sm:$0xff]  ;;  %v10457_v45 = vld [vmem:[#allocation125_spill] sm:$0xff]  ;;  %v10461_v31 = vld [vmem:[#allocation104_spill] sm:$0xff] }
 0x2a3   : > { %v1969_v1 = vsel %vm1952_vm5, %v10443_v12, %v10442_v50  ;;  %v1970_v25 = vsel %vm1952_vm5, %v10447_v4, %v10446_v44  ;;  %v2028_v21 = vpack.c.bf16 %v2007_v27, %v2006_v52  ;;  %v5362_v53 = vunpack.i.h.bf16 %v9012_v58  ;;  %v10458_v47 = vld [vmem:[#allocation95_spill] sm:$0xff]  ;;  %v10463_v12 = vld [vmem:[#allocation98_spill] sm:$0xff] }
 0x2a4   : > { %v2002_v6 = vsel %vm1985_vm2, %v1969_v1, %v5326_v13  ;;  %v2003_v3 = vsel %vm1985_vm2, %v1970_v25, %v5327_v43  ;;  %v1983_v35 = vsel %vm1952_vm5, %v10449_v49, %v5281_v22  ;;  %v1982_v61 = vsel %vm1952_vm5, %v10450_v38, %v5277_v33  ;;  %4508 = vmatmul.mubr.msk.bf16.gmra.mxu0 %vm2054_vm0, %v2025_v17  ;;  %v10459_v19 = vld [vmem:[#allocation99_spill] sm:$0xff]  ;;  %v10473_v49 = vld [vmem:[#allocation85_spill] sm:$0xff] }
 0x2a5   : > { %v2026_v41 = vpack.c.bf16 %v2003_v3, %v2002_v6  ;;  %v5361_v5 = vunpack.i.l.bf16 %v9012_v58  ;;  %v5357_v56 = vunpack.i.h.bf16 %v9014_v7  ;;  %v5342_v55 = vunpack.i.h.bf16 %v10451_v14  ;;  %v10465_v6 = vld [vmem:[#allocation82_spill] sm:$0xff] }
 0x2a6   : > { %v5341_v11 = vunpack.i.l.bf16 %v10451_v14  ;;  %v5347_v24 = vunpack.i.h.bf16 %v10452_v40  ;;  %v2017_v20 = vsel %vm1985_vm2, %v1984_v54, %v5362_v53  ;;  %v5346_v13 = vunpack.i.l.bf16 %v10452_v40  ;;  %v10477_v14 = vld [vmem:[#allocation120_spill] sm:$0xff] }
 0x2a7   : > { %4511 = vmatprep.mubr.msk.bf16.mxu1 %vm2054_vm0, %v2026_v41  ;;  %v2016_v58 = vsel %vm1985_vm2, %v1983_v35, %v5361_v5  ;;  %v5356_v37 = vunpack.i.l.bf16 %v9014_v7  ;;  %v2015_v60 = vsel %vm1985_vm2, %v1982_v61, %v5357_v56  ;;  %v10454_v43 = vunpack.i.l.bf16 %v10453_v32  ;;  %v10471_v41 = vld [vmem:[#allocation113_spill] sm:$0xff] }
 0x2a8   : > { %4512 = vmatmul.mubr.msk.bf16.vlgmr.msra.gmra.mxu1 %vm2054_vm0, %v2027_v63  ;;  %v10456_v62 = vunpack.i.h.bf16 %v10453_v32  ;;  %v1981_v22 = vsel %vm1952_vm5, %v10458_v47, %v5276_v9  ;;  %v2033_v7 = vpack.c.bf16 %v2017_v20, %v2016_v58  ;;  %v10460_v33 = vunpack.i.l.bf16 %v10459_v19  ;;  %v10468_v9 = vld [vmem:[#allocation106_spill] sm:$0xff]  ;;  %v10474_v61 = vld [vmem:[#allocation133_spill] sm:$0xff]  ;;  %v9244_v20 = vpop.permute.xlu1 %3770 }
 0x2a9   : > { %v1944_v39 = vsel %vm1919_vm4, %v10455_v10, %v10454_v43  ;;  %4515 = vmatprep.mubr.msk.bf16.mxu1 %vm2054_vm0, %v2028_v21  ;;  %v10462_v50 = vunpack.i.h.bf16 %v10459_v19  ;;  %v10464_v18 = vunpack.i.h.bf16 %v8780_v36  ;;  %v2014_v48 = vsel %vm1985_vm2, %v1981_v22, %v5356_v37  ;;  %v10466_v36 = vld [vmem:[#allocation123_spill] sm:$0xff]  ;;  %v10480_v37 = vld [vmem:[#allocation138_spill] sm:$0xff] }
 0x2aa   : > { %v1945_v2 = vsel %vm1919_vm4, %v10457_v45, %v10456_v62  ;;  %v1975_v46 = vsel %vm1952_vm5, %v10461_v31, %v10460_v33  ;;  %v1977_v27 = vsel %vm1952_vm5, %v1944_v39, %v5266_v0  ;;  %v2032_v25 = vpack.c.bf16 %v2015_v60, %v2014_v48 }
 0x2ab   : > { %v1976_v1 = vsel %vm1952_vm5, %v10463_v12, %v10462_v50  ;;  %v1978_v52 = vsel %vm1952_vm5, %v1945_v2, %v10464_v18  ;;  %v2008_v44 = vsel %vm1985_vm2, %v1975_v46, %v5341_v11  ;;  %v5112_v34 = vunpack.i.h.bf16 %v10465_v6 }
 0x2ac   : > { %v2009_v4 = vsel %vm1985_vm2, %v1976_v1, %v5342_v55  ;;  %v5111_v54 = vunpack.i.l.bf16 %v10465_v6  ;;  %v2010_v17 = vsel %vm1985_vm2, %v1977_v27, %v5346_v13  ;;  %v2011_v63 = vsel %vm1985_vm2, %v1978_v52, %v5347_v24  ;;  %v9242_v24 = vpop.permute.xlu0 %3775  ;;  %v9263_v31 = vpop.permute.xlu1 %3780 }
 0x2ad   : > { %v10467_v3 = vunpack.i.l.bf16 %v10466_v36  ;;  %vm10469_vm10 = vcmask 97280   ;;  %v10470_v0 = vunpack.i.h.bf16 %v10466_v36  ;;  %v5192_v35 = vunpack.i.h.bf16 %v10473_v49 }
 0x2ae   : > { %vm10472_vm11 = vmmov %vm10469_vm10  ;;  %v5191_v38 = vunpack.i.l.bf16 %v10473_v49  ;;  %v10475_v5 = vunpack.i.l.bf16 %v10474_v61  ;;  %v5272_v55 = vunpack.i.h.bf16 %v10477_v14  ;;  %v5271_v11 = vunpack.i.l.bf16 %v10477_v14 }
 0x2af   : > { %v1847_v21 = vsel %vm10469_vm10, %v10468_v9, %v10467_v3  ;;  %v1848_v53 = vsel %vm10472_vm11, %v10471_v41, %v10470_v0  ;;  %v2029_v40 = vpack.c.bf16 %v2009_v4, %v2008_v44  ;;  %v10478_v13 = vunpack.i.h.bf16 %v10474_v61 }
 0x2b0   : > { %v1880_v56 = vsel %vm10476_vm1, %v1847_v21, %v10475_v5  ;;  %v5352_v60 = vunpack.i.h.bf16 %v10480_v37  ;;  %v5351_v32 = vunpack.i.l.bf16 %v10480_v37  ;;  %v2030_v43 = vpack.c.bf16 %v2011_v63, %v2010_v17  ;;  %v9261_v33 = vpop.permute.xlu0 %3785  ;;  %v9269_v12 = vpop.permute.xlu1 %3790 }
 0x2b1   : > { %v1881_v58 = vsel %vm10479_vm6, %v1848_v53, %v10478_v13  ;;  %vm10481_vm3 = vcmask 162816   ;;  %4516 = vmatmul.mubr.msk.bf16.gmra.mxu1 %vm2054_vm0, %v2029_v40  ;;  %v4099_v53 = vlaneseq  ;;  %vm4249_vm13 = vcmask 1042434  }
 0x2b2   : > { %v1913_v10 = vsel %vm10481_vm3, %v1880_v56, %v5111_v54  ;;  %vm10482_vm7 = vmmov %vm10481_vm3  ;;  %4519 = vmatprep.mubr.msk.bf16.mxu1 %vm2054_vm0, %v2030_v43  ;;  %vm4251_vm8 = vcmask 1043459   ;;  %vm4253_vm9 = vcmask 1044484   ;;  %vm4255_vm14 = vcmask 1045509  }
 0x2b3   : > { %v1914_v39 = vsel %vm10482_vm7, %v1881_v58, %v5112_v34  ;;  %v1946_v62 = vsel %vm1919_vm4, %v1913_v10, %v5191_v38  ;;  %v4100_v38 = vand.u32 127, %v4099_v53  ;;  %v4102_v61 = vshrl.u32 %v4099_v53, 7 }
 0x2b4   : > { %v1947_v45 = vsel %vm1919_vm4, %v1914_v39, %v5192_v35  ;;  %v1979_v2 = vsel %vm1952_vm5, %v1946_v62, %v5271_v11  ;;  %v9267_v50 = vpop.permute.xlu0 %3795  ;;  %v9274_v18 = vpop.permute.xlu1 %3800  ;;  %vm4110_vm4 = vcmask 130112   ;;  %vm4259_vm15 = vcmask 1047559  }
 0x2b5   : > { %v1980_v47 = vsel %vm1952_vm5, %v1947_v45, %v5272_v55  ;;  %v2012_v22 = vsel %vm1985_vm2, %v1979_v2, %v5351_v32  ;;  %v4105_v5 = vadd.s32 4294967288, %v4100_v38  ;;  %v9310_v58 = vsub.s32 %v4100_v38, %v4102_v61 }
 0x2b6   : > { %v2013_v19 = vsel %vm1985_vm2, %v1980_v47, %v5352_v60  ;;  %vm4247_vm5 = vcmask 1041409   ;;  %vm4257_vm12 = vcmask 1046534   ;;  %vm10486_vm2 = vmmov %vm10476_vm1 }
 0x2b7   : > { %v2031_v46 = vpack.c.bf16 %v2013_v19, %v2012_v22  ;;  %v9308_v55 = vsub.s32 %v4105_v5, %v4102_v61 }
 0x2b8   : > { %v9272_v1 = vpop.permute.xlu0 %3805  ;;  %v9278_v48 = vpop.permute.xlu1 %3810 }
 0x2b9   : > { %4520 = vmatmul.mubr.msk.bf16.gmra.mxu1 %vm2054_vm0, %v2031_v46 }
 0x2ba   : > { %4523 = vmatprep.mubr.msk.bf16.mxu1 %vm2054_vm0, %v2032_v25 }
 0x2bc   : > { %v9276_v52 = vpop.permute.xlu0 %3815  ;;  %v9282_v44 = vpop.permute.xlu1 %3820 }
 0x2c0   : > { %v9280_v27 = vpop.permute.xlu0 %3825  ;;  %v9286_v25 = vpop.permute.xlu1 %3830 }
 0x2c1   : > { %4524 = vmatmul.mubr.msk.bf16.gmra.mxu1 %vm2054_vm0, %v2033_v7  ;;  %vm10487_vm0 = vmmov %vm10476_vm1 }
 0x2c4   : > { %v9284_v4 = vpop.permute.xlu0 %3835  ;;  %v9290_v34 = vpop.permute.xlu1 %3840 }
 0x2c8   : > { %v9288_v6 = vpop.permute.xlu0 %3845  ;;  %v9294_v54 = vpop.permute.xlu1 %3850 }
 0x2c9   : > { %10484 = vst [vmem:[#allocation102_spill] sm:$0xff] %v9294_v54 }
 0x2cc   : > { %v9292_v7 = vpop.permute.xlu0 %3855  ;;  %v9298_v63 = vpop.permute.xlu1 %3860 }
 0x2cd   : > { %10483 = vst [vmem:[#allocation74_spill] sm:$0xff] %v9292_v7 }
 0x2d0   : > { %v9296_v17 = vpop.permute.xlu0 %3865  ;;  %v5365_v3 = vpop.permute.xlu1 %5364 }
 0x2d1   : > { %10485 = vst [vmem:[#allocation105_spill] sm:$0xff] %v9296_v17  ;;  %v5367_v60 = vunpack.i.h.bf16 %v5365_v3  ;;  %v5366_v10 = vunpack.i.l.bf16 %v5365_v3 }
 0x2d3   : > { %v4109_v38 = vrot.slane %v5367_v60, %v9308_v55 }
 0x2d4   : > { %v5370_v36 = vpop.permute.xlu0 %5369  ;;  %v5375_v21 = vpop.permute.xlu1 %5374 }
 0x2d5   : > { %v5372_v11 = vunpack.i.h.bf16 %v5370_v36  ;;  %v5371_v37 = vunpack.i.l.bf16 %v5370_v36  ;;  %v5377_v61 = vunpack.i.h.bf16 %v5375_v21  ;;  %v5376_v3 = vunpack.i.l.bf16 %v5375_v21 }
 0x2d7   : > { %v4119_v45 = vrot.slane %v5372_v11, %v9308_v55  ;;  %v4115_v36 = vrot.slane %v5371_v37, %v9310_v58  ;;  %v4128_v17 = vrot.slane %v5377_v61, %v9308_v55 }
 0x2d8   : > { %v9300_v9 = vpop.permute.xlu0 %5379 }
 0x2d9   : > { %v5382_v5 = vunpack.i.h.bf16 %v9300_v9  ;;  %v5381_v60 = vunpack.i.l.bf16 %v9300_v9 }
 0x2db   : > { %v4137_v61 = vrot.slane %v5382_v5, %v9308_v55 }
 0x2dc   : > { %v9302_v0 = vpop.permute.xlu0 %5389  ;;  %v9304_v41 = vpop.permute.xlu1 %5384 }
 0x2e5   : > { %v5400_v49 = vpop.permute.xlu0 %5399 }
 0x2e6   : > { %v5402_v39 = vunpack.i.h.bf16 %v5400_v49  ;;  %v5401_v62 = vunpack.i.l.bf16 %v5400_v49  ;;  %v4104_v49 = vrot.slane %v5366_v10, %v9310_v58 }
 0x2e8   : > { %v9306_v35 = vpop.permute.xlu1 %5394 }
 0x2f2   : > { %v5410_v56 = vpop.permute.xlu0 %5409 }
 0x2f3   : > { %v5412_v2 = vunpack.i.h.bf16 %v5410_v56  ;;  %v5411_v47 = vunpack.i.l.bf16 %v5410_v56  ;;  %v4182_v56 = vrot.slane %v5402_v39, %v9308_v55  ;;  %v4124_v39 = vrot.slane %v5376_v3, %v9310_v58 }
 0x2f5   : > { %v5405_v14 = vpop.permute.xlu1 %5404  ;;  %v4200_v11 = vrot.slane %v5412_v2, %v9308_v55  ;;  %v4129_v3 = vsel %vm4110_vm4, %v4128_v17, %v4124_v39 }
 0x2f6   : > { %v5407_v40 = vunpack.i.h.bf16 %v5405_v14  ;;  %v5406_v13 = vunpack.i.l.bf16 %v5405_v14  ;;  %v4178_v14 = vrot.slane %v5401_v62, %v9310_v58 }
 0x2f8   : > { %v4191_v22 = vrot.slane %v5407_v40, %v9308_v55  ;;  %v4187_v19 = vrot.slane %v5406_v13, %v9310_v58  ;;  %v4196_v40 = vrot.slane %v5411_v47, %v9310_v58  ;;  %v4120_v47 = vsel %vm4110_vm4, %v4119_v45, %v4115_v36 }
 0x2f9   : > { %v4183_v54 = vsel %vm4110_vm4, %v4182_v56, %v4178_v14  ;;  %v4133_v45 = vrot.slane %v5381_v60, %v9310_v58  ;;  %v5386_v56 = vunpack.i.l.bf16 %v9304_v41 }
 0x2fa   : > { %v4192_v21 = vsel %vm4110_vm4, %v4191_v22, %v4187_v19  ;;  %v4201_v9 = vsel %vm4110_vm4, %v4200_v11, %v4196_v40  ;;  %v5392_v40 = vunpack.i.h.bf16 %v9302_v0 }
 0x2fb   : > { %v4261_v22 = vsel %vm4247_vm5, %v4192_v21, %v4183_v54  ;;  %v4142_v39 = vrot.slane %v5386_v56, %v9310_v58  ;;  %v4138_v56 = vsel %vm4110_vm4, %v4137_v61, %v4133_v45 }
 0x2fe   : > { %v5420_v32 = vpop.permute.xlu0 %5419 }
 0x2ff   : > { %v5422_v13 = vunpack.i.h.bf16 %v5420_v32  ;;  %v5421_v37 = vunpack.i.l.bf16 %v5420_v32  ;;  %v5387_v32 = vunpack.i.h.bf16 %v9304_v41 }
 0x300   : > { %v5415_v43 = vpop.permute.xlu1 %5414 }
 0x301   : > { %v5417_v46 = vunpack.i.h.bf16 %v5415_v43  ;;  %v5416_v53 = vunpack.i.l.bf16 %v5415_v43  ;;  %v4218_v19 = vrot.slane %v5422_v13, %v9308_v55  ;;  %v5391_v13 = vunpack.i.l.bf16 %v9302_v0 }
 0x302   : > { %v5396_v0 = vunpack.i.l.bf16 %v9306_v35 }
 0x303   : > { %v4209_v10 = vrot.slane %v5417_v46, %v9308_v55  ;;  %v4205_v7 = vrot.slane %v5416_v53, %v9310_v58  ;;  %v4214_v46 = vrot.slane %v5421_v37, %v9310_v58  ;;  %v4111_v53 = vsel %vm4110_vm4, %v4109_v38, %v4104_v49 }
 0x304   : > { %v4262_v38 = vsel %vm4249_vm13, %v4201_v9, %v4261_v22 }
 0x305   : > { %v4210_v36 = vsel %vm4110_vm4, %v4209_v10, %v4205_v7  ;;  %v4146_v7 = vrot.slane %v5387_v32, %v9308_v55  ;;  %v4219_v17 = vsel %vm4110_vm4, %v4218_v19, %v4214_v46 }
 0x306   : > { %v4263_v41 = vsel %vm4251_vm8, %v4210_v36, %v4262_v38  ;;  %v4248_v36 = vsel %vm4247_vm5, %v4120_v47, %v4111_v53  ;;  %v4151_v38 = vrot.slane %v5391_v13, %v9310_v58  ;;  %v4160_v47 = vrot.slane %v5396_v0, %v9310_v58 }
 0x307   : > { %v4264_v9 = vsel %vm4253_vm9, %v4219_v17, %v4263_v41 }
 0x30a   : > { %v5430_v43 = vpop.permute.xlu0 %5429 }
 0x30b   : > { %v5432_v62 = vunpack.i.h.bf16 %v5430_v43  ;;  %v5431_v2 = vunpack.i.l.bf16 %v5430_v43 }
 0x30d   : > { %v4236_v14 = vrot.slane %v5432_v62, %v9308_v55  ;;  %v4232_v54 = vrot.slane %v5431_v2, %v9310_v58  ;;  %v5397_v62 = vunpack.i.h.bf16 %v9306_v35 }
 0x30f   : > { %v4237_v2 = vsel %vm4110_vm4, %v4236_v14, %v4232_v54  ;;  %v4250_v14 = vsel %vm4249_vm13, %v4129_v3, %v4248_v36  ;;  %v4155_v54 = vrot.slane %v5392_v40, %v9308_v55  ;;  %v4164_v17 = vrot.slane %v5397_v62, %v9308_v55 }
 0x310   : > { %v4252_v53 = vsel %vm4251_vm8, %v4138_v56, %v4250_v14 }
 0x311   : > { %v4156_v45 = vsel %vm4110_vm4, %v4155_v54, %v4151_v38 }
 0x312   : > { %v5425_v11 = vpop.permute.xlu1 %5424 }
 0x313   : > { %v5427_v49 = vunpack.i.h.bf16 %v5425_v11  ;;  %v5426_v5 = vunpack.i.l.bf16 %v5425_v11 }
 0x315   : > { %v5440_v37 = vpop.permute.xlu0 %5439  ;;  %v4227_v43 = vrot.slane %v5427_v49, %v9308_v55  ;;  %v4223_v60 = vrot.slane %v5426_v5, %v9310_v58  ;;  %v4147_v5 = vsel %vm4110_vm4, %v4146_v7, %v4142_v39  ;;  %v4165_v7 = vsel %vm4110_vm4, %v4164_v17, %v4160_v47 }
 0x316   : > { %v5442_v21 = vunpack.i.h.bf16 %v5440_v37  ;;  %v5441_v10 = vunpack.i.l.bf16 %v5440_v37  ;;  %v4254_v3 = vsel %vm4253_vm9, %v4147_v5, %v4252_v53 }
 0x317   : > { %v4228_v32 = vsel %vm4110_vm4, %v4227_v43, %v4223_v60  ;;  %v4256_v43 = vsel %vm4255_vm14, %v4156_v45, %v4254_v3 }
 0x318   : > { %v4245_v22 = vrot.slane %v5442_v21, %v9308_v55  ;;  %v4241_v19 = vrot.slane %v5441_v10, %v9310_v58  ;;  %v4265_v46 = vsel %vm4255_vm14, %v4228_v32, %v4264_v9  ;;  %v4258_v60 = vsel %vm4257_vm12, %v4165_v7, %v4256_v43 }
 0x319   : > { %v4266_v35 = vsel %vm4257_vm12, %v4237_v2, %v4265_v46 }
 0x31a   : > { %v4246_v11 = vsel %vm4110_vm4, %v4245_v22, %v4241_v19 }
 0x31b   : > { %v4267_v49 = vsel %vm4259_vm15, %v4246_v11, %v4266_v35 }
 0x31c   : > { %4271 = vst.msk [vmem:[%s198_s6 + $0x8] sm:$0xff] %vm10486_vm2, %v4267_v49 }
 0x31d   : > { %v5435_v61 = vpop.permute.xlu1 %5434 }
 0x31e   : > { %v5437_v40 = vunpack.i.h.bf16 %v5435_v61  ;;  %v5436_v13 = vunpack.i.l.bf16 %v5435_v61 }
 0x320   : > { %v4173_v41 = vrot.slane %v5437_v40, %v9308_v55  ;;  %v4169_v37 = vrot.slane %v5436_v13, %v9310_v58 }
 0x322   : > { %v4174_v21 = vsel %vm4110_vm4, %v4173_v41, %v4169_v37 }
 0x323   : > { %v4260_v55 = vsel %vm4259_vm15, %v4174_v21, %v4258_v60 }
 0x324   : > { %4270 = vst.msk [vmem:[%s198_s6] sm:$0xff] %vm10487_vm0, %v4260_v55 }
 0x325   : > { %5462 = shalt.err (!%p5459_p3)
}
 0x326   : > { %s5463_s23 = scalar_lea.hbm %s9387_s12, 256  ;;  %s5467_s30 = scalar_lea.hbm %s9549_s4, 512 }
 0x327   : > { %p5464_p4 = scmp.ne.s32.totalorder %s9387_s12, %s5463_s23  ;;  %p5468_p9 = scmp.lt.s32.totalorder %s9387_s12, %s9549_s4 }
 0x328   : > { %p5469_p10 = scmp.lt.s32.totalorder %s5467_s30, %s5463_s23 }
 0x329   : > { %p5465_p7 = pnand %p5464_p4, %p5586_p5 }
 0x32a   : > { %p5470_p11 = por %p5469_p10, %p5468_p9 }
 0x32b   : > { %p5466_p8 = pneg %p5465_p7 }
 0x32d   : > { %p5471_p12 = pnand %p5470_p11, %p5466_p8 }
 0x32f   : > { %5474 = shalt.err (!%p5471_p12)
}
 0x330   : > { %s5522_s7 = smov 128   ;;  %s4468_s10 = sshll.u32 %s5598_s27, 8  ;;  %v9425_v10 = vld [vmem:[%s9547_s2] ss:$0 sm:$0xff] }
 0x331   : > { %4536 = dma.vmem_to_hbm [thread:$0]  (%p5586_p5), %s9391_s9, 256, %s9387_s12, %s9397_s19, %s5522_s7, %s5522_s7, %s5515_s8  }
 0x332   : > { %s9431_s22 = scalar_lea.vmem %s9548_s3, %s4468_s10 }
 0x34c   : > { %v4497_v58 = vpop.f32.mrf.mxu0 }
 0x34d   : > { %v3870_v39 = vmul.f32 %v4497_v58, %v9064_v57 }
 0x34e   : > { %v2141_v62 = vpop.f32.mrf.mxu0 }
 0x34f   : > { %v3909_v0 = vadd.f32 %v9425_v10, %v3870_v39  ;;  %v3868_v2 = vmul.f32 %v9036_v8, %v2141_v62 }
 0x350   : > { %v4498_v32 = vpop.f32.mrf.mxu0 }
 0x351   : > { %3941 = vst [vmem:[%s9431_s22 + $0x10] sm:$0xff] %v3909_v0  ;;  %v3907_v9 = vadd.f32 %v9425_v10, %v3868_v2  ;;  %v3871_v57 = vmul.f32 %v4498_v32, %v9062_v42 }
 0x352   : > { %v2144_v22 = vpop.f32.mrf.mxu0 }
 0x353   : > { %3939 = vst [vmem:[%s9431_s22] sm:$0xff] %v3907_v9  ;;  %v3910_v19 = vadd.f32 %v9425_v10, %v3871_v57  ;;  %v3869_v46 = vmul.f32 %v9034_v15, %v2144_v22 }
 0x354   : > { %v4501_v36 = vpop.f32.mrf.mxu0 }
 0x355   : > { %3942 = vst [vmem:[%s9431_s22 + $0x18] sm:$0xff] %v3910_v19  ;;  %v3908_v56 = vadd.f32 %v9425_v10, %v3869_v46  ;;  %v3874_v8 = vmul.f32 %v4501_v36, %v9128_v29 }
 0x356   : > { %v2157_v11 = vpop.f32.mrf.mxu0 }
 0x357   : > { %3940 = vst [vmem:[%s9431_s22 + $0x8] sm:$0xff] %v3908_v56  ;;  %v3913_v35 = vadd.f32 %v9425_v10, %v3874_v8  ;;  %v3872_v42 = vmul.f32 %v9106_v16, %v2157_v11 }
 0x358   : > { %v4502_v14 = vpop.f32.mrf.mxu0 }
 0x359   : > { %3945 = vst [vmem:[%s9431_s22 + $0x30] sm:$0xff] %v3913_v35  ;;  %v3911_v54 = vadd.f32 %v9425_v10, %v3872_v42  ;;  %v3875_v15 = vmul.f32 %v4502_v14, %v9126_v59 }
 0x35a   : > { %v2160_v38 = vpop.f32.mrf.mxu0 }
 0x35b   : > { %3943 = vst [vmem:[%s9431_s22 + $0x20] sm:$0xff] %v3911_v54  ;;  %v3914_v49 = vadd.f32 %v9425_v10, %v3875_v15  ;;  %v3873_v29 = vmul.f32 %v9104_v28, %v2160_v38 }
 0x35c   : > { %v4505_v5 = vpop.f32.mrf.mxu0 }
 0x35d   : > { %3946 = vst [vmem:[%s9431_s22 + $0x38] sm:$0xff] %v3914_v49  ;;  %v3912_v17 = vadd.f32 %v9425_v10, %v3873_v29  ;;  %v3878_v16 = vmul.f32 %v4505_v5, %v9195_v23 }
 0x35e   : > { %v2173_v47 = vpop.f32.mrf.mxu0 }
 0x35f   : > { %3944 = vst [vmem:[%s9431_s22 + $0x28] sm:$0xff] %v3912_v17  ;;  %v3917_v53 = vadd.f32 %v9425_v10, %v3878_v16  ;;  %v3876_v59 = vmul.f32 %v9160_v30, %v2173_v47 }
 0x360   : > { %v4506_v61 = vpop.f32.mrf.mxu0 }
 0x361   : > { %3949 = vst [vmem:[%s9431_s22 + $0x50] sm:$0xff] %v3917_v53  ;;  %v3915_v45 = vadd.f32 %v9425_v10, %v3876_v59  ;;  %v3879_v28 = vmul.f32 %v4506_v61, %v9193_v26 }
 0x362   : > { %v2176_v3 = vpop.f32.mrf.mxu0 }
 0x363   : > { %3947 = vst [vmem:[%s9431_s22 + $0x40] sm:$0xff] %v3915_v45  ;;  %v3918_v40 = vadd.f32 %v9425_v10, %v3879_v28  ;;  %v3877_v23 = vmul.f32 %v9158_v51, %v2176_v3  ;;  %v10489_v28 = vld [vmem:[#allocation105_spill] sm:$0xff] }
 0x364   : > { %v4509_v13 = vpop.f32.mrf.mxu0 }
 0x365   : > { %3950 = vst [vmem:[%s9431_s22 + $0x58] sm:$0xff] %v3918_v40  ;;  %v3916_v7 = vadd.f32 %v9425_v10, %v3877_v23  ;;  %v3882_v30 = vmul.f32 %v4509_v13, %v9263_v31  ;;  %v10490_v23 = vld [vmem:[#allocation74_spill] sm:$0xff] }
 0x366   : > { %v2189_v37 = vpop.f32.mrf.mxu0 }
 0x367   : > { %3948 = vst [vmem:[%s9431_s22 + $0x48] sm:$0xff] %v3916_v7  ;;  %v3921_v26 = vadd.f32 %v9425_v10, %v3882_v30  ;;  %v3880_v60 = vmul.f32 %v9244_v20, %v2189_v37 }
 0x368   : > { %v4513_v41 = vpop.f32.mrf.mxu1  ;;  %v4510_v51 = vpop.f32.mrf.mxu0 }
 0x369   : > { %v3886_v43 = vmul.f32 %v4513_v41, %v9274_v18  ;;  %3953 = vst [vmem:[%s9431_s22 + $0x70] sm:$0xff] %v3921_v26  ;;  %v3919_v31 = vadd.f32 %v9425_v10, %v3880_v60  ;;  %v3883_v39 = vmul.f32 %v4510_v51, %v9261_v33 }
 0x36a   : > { %v2205_v21 = vpop.f32.mrf.mxu1  ;;  %v2192_v62 = vpop.f32.mrf.mxu0 }
 0x36b   : > { %v3925_v55 = vadd.f32 %v9425_v10, %v3886_v43  ;;  %v3884_v58 = vmul.f32 %v9269_v12, %v2205_v21  ;;  %3951 = vst [vmem:[%s9431_s22 + $0x60] sm:$0xff] %v3919_v31  ;;  %v3922_v2 = vadd.f32 %v9425_v10, %v3883_v39  ;;  %v3881_v12 = vmul.f32 %v9242_v24, %v2192_v62 }
 0x36c   : > { %v4514_v18 = vpop.f32.mrf.mxu1 }
 0x36d   : > { %3957 = vst [vmem:[%s9431_s22 + $0x90] sm:$0xff] %v3925_v55  ;;  %v3923_v20 = vadd.f32 %v9425_v10, %v3884_v58  ;;  %v3887_v0 = vmul.f32 %v4514_v18, %v9272_v1  ;;  %3954 = vst [vmem:[%s9431_s22 + $0x78] sm:$0xff] %v3922_v2  ;;  %v3920_v57 = vadd.f32 %v9425_v10, %v3881_v12 }
 0x36e   : > { %v2208_v32 = vpop.f32.mrf.mxu1 }
 0x36f   : > { %3955 = vst [vmem:[%s9431_s22 + $0x80] sm:$0xff] %v3923_v20  ;;  %v3926_v33 = vadd.f32 %v9425_v10, %v3887_v0  ;;  %v3885_v9 = vmul.f32 %v9267_v50, %v2208_v32  ;;  %3952 = vst [vmem:[%s9431_s22 + $0x68] sm:$0xff] %v3920_v57 }
 0x371   : > { %v4517_v22 = vpop.f32.mrf.mxu1  ;;  %3958 = vst [vmem:[%s9431_s22 + $0x98] sm:$0xff] %v3926_v33  ;;  %v3924_v1 = vadd.f32 %v9425_v10, %v3885_v9 }
 0x372   : > { %v3890_v19 = vmul.f32 %v4517_v22, %v9282_v44 }
 0x373   : > { %v2221_v24 = vpop.f32.mrf.mxu1  ;;  %3956 = vst [vmem:[%s9431_s22 + $0x88] sm:$0xff] %v3924_v1 }
 0x374   : > { %v3929_v46 = vadd.f32 %v9425_v10, %v3890_v19  ;;  %v3888_v36 = vmul.f32 %v9278_v48, %v2221_v24 }
 0x375   : > { %v4518_v50 = vpop.f32.mrf.mxu1 }
 0x376   : > { %3961 = vst [vmem:[%s9431_s22 + $0xb0] sm:$0xff] %v3929_v46  ;;  %v3927_v56 = vadd.f32 %v9425_v10, %v3888_v36  ;;  %v3891_v8 = vmul.f32 %v4518_v50, %v9280_v27 }
 0x377   : > { %v2224_v11 = vpop.f32.mrf.mxu1 }
 0x378   : > { %3959 = vst [vmem:[%s9431_s22 + $0xa0] sm:$0xff] %v3927_v56  ;;  %v3930_v44 = vadd.f32 %v9425_v10, %v3891_v8  ;;  %v3889_v35 = vmul.f32 %v9276_v52, %v2224_v11 }
 0x379   : > { %v4521_v42 = vpop.f32.mrf.mxu1 }
 0x37a   : > { %3962 = vst [vmem:[%s9431_s22 + $0xb8] sm:$0xff] %v3930_v44  ;;  %v3928_v14 = vadd.f32 %v9425_v10, %v3889_v35  ;;  %v3894_v48 = vmul.f32 %v4521_v42, %v9290_v34 }
 0x37b   : > { %v2237_v54 = vpop.f32.mrf.mxu1 }
 0x37c   : > { %3960 = vst [vmem:[%s9431_s22 + $0xa8] sm:$0xff] %v3928_v14  ;;  %v3933_v15 = vadd.f32 %v9425_v10, %v3894_v48  ;;  %v3892_v27 = vmul.f32 %v9286_v25, %v2237_v54 }
 0x37d   : > { %v4522_v38 = vpop.f32.mrf.mxu1 }
 0x37e   : > { %3965 = vst [vmem:[%s9431_s22 + $0xd0] sm:$0xff] %v3933_v15  ;;  %v3931_v49 = vadd.f32 %v9425_v10, %v3892_v27  ;;  %v3895_v52 = vmul.f32 %v4522_v38, %v9288_v6  ;;  %v10488_v6 = vld [vmem:[#allocation102_spill] sm:$0xff] }
 0x37f   : > { %v2240_v29 = vpop.f32.mrf.mxu1 }
 0x380   : > { %3963 = vst [vmem:[%s9431_s22 + $0xc0] sm:$0xff] %v3931_v49  ;;  %v3934_v5 = vadd.f32 %v9425_v10, %v3895_v52  ;;  %v3893_v34 = vmul.f32 %v9284_v4, %v2240_v29 }
 0x381   : > { %v4525_v17 = vpop.f32.mrf.mxu1 }
 0x382   : > { %3966 = vst [vmem:[%s9431_s22 + $0xd8] sm:$0xff] %v3934_v5  ;;  %v3932_v16 = vadd.f32 %v9425_v10, %v3893_v34  ;;  %v3898_v25 = vmul.f32 %v4525_v17, %v9298_v63 }
 0x383   : > { %v2253_v47 = vpop.f32.mrf.mxu1 }
 0x384   : > { %3964 = vst [vmem:[%s9431_s22 + $0xc8] sm:$0xff] %v3932_v16  ;;  %v3937_v53 = vadd.f32 %v9425_v10, %v3898_v25  ;;  %v3896_v59 = vmul.f32 %v10488_v6, %v2253_v47 }
 0x385   : > { %v4526_v61 = vpop.f32.mrf.mxu1 }
 0x386   : > { %3969 = vst [vmem:[%s9431_s22 + $0xf0] sm:$0xff] %v3937_v53  ;;  %v3935_v45 = vadd.f32 %v9425_v10, %v3896_v59  ;;  %v3899_v4 = vmul.f32 %v4526_v61, %v10489_v28 }
 0x387   : > { %v2256_v3 = vpop.f32.mrf.mxu1 }
 0x388   : > { %3967 = vst [vmem:[%s9431_s22 + $0xe0] sm:$0xff] %v3935_v45  ;;  %v3938_v40 = vadd.f32 %v9425_v10, %v3899_v4  ;;  %v3897_v13 = vmul.f32 %v10490_v23, %v2256_v3 }
 0x38a   : > { %3970 = vst [vmem:[%s9431_s22 + $0xf8] sm:$0xff] %v3938_v40  ;;  %v3936_v63 = vadd.f32 %v9425_v10, %v3897_v13 }
 0x38c   : > { %3968 = vst [vmem:[%s9431_s22 + $0xe8] sm:$0xff] %v3936_v63 }
 0x38d PF: > { %p4542_p5 = scmp.ge.s32.totalorder %s5509_s18, 2  ;;  %s4317_s25 = sand.u32 1, %s5497_s15  }
 0x38e   : > { %s4318_s27 = scalar_lea.sflag [#allocation3], %s4317_s25 }
 0x38f   : > { %p4539_p13 = pnand %p4542_p5, %p5590_p6 }
 0x391   : > { %p4540_p0 = pneg %p4539_p13 }
 0x393   : > { %5492 = dma.done.wait (%p4540_p0), %s4318_s27, 256  }
 0x394   : > { %5494 = vsyncadd (%p4540_p0), %s4318_s27, 4294967040  ;;  %p15_p1 = scmp.ge.s32.totalorder %s5573_s21, 4   ;;  %s10491_s15 = smov %s5501_s16 }
 0x395   : > { %s10492_s16 = smov %s5505_s17  ;;  %s10493_s17 = smov %s5584_s24 }
 0x396   : > { %s10494_s18 = smov %s5573_s21  ;;  %17 = sbr.rel (!%p15_p1) target bundleno = 3 (0x3), region = 79 }
 0x39b   :  { %4323 = vsyncpa [#allocation3], 1 }
 0x39c   :  { %4325 = vsyncpa [#allocation3 + $0x1], 1 }

</bundles_post_ra>
